<compile_context>
chip_gen: v7x
topology: tpu7x:2x2x1
jax: 0.10.0
libtpu: 0.0.40
codegen_flags: <defaults>
</compile_context>

<pallas_src>
import jax
import jax.numpy as jnp
from jax import lax
from jax.experimental import pallas as pl
from jax.experimental.pallas import tpu as pltpu


# ----------------------------- padding helpers ------------------------------

def calculate_required_padding(kernel, strides, in_height, in_width):
    k_height, k_width = kernel
    assert k_height % 2 == 1 and k_width % 2 == 1
    stride_height, stride_width = strides
    pad_left = k_width // 2
    pad_top = k_height // 2
    d_right = (in_width - 1) % stride_width
    d_bottom = (in_height - 1) % stride_height
    pad_right = k_width // 2 - d_right
    pad_bottom = k_height // 2 - d_bottom
    # Negative pads would silently wrap wrong data -> hard fail instead.
    assert min(pad_left, pad_right, pad_top, pad_bottom) >= 0, \
        (pad_left, pad_right, pad_top, pad_bottom)
    return pad_left, pad_right, pad_top, pad_bottom


def toric_pad(x, kernel, strides):
    """Exact port of toric_pad.forward; pads the last two (H, W) dims.

    Works for any leading layout ([N,C,H,W] or [C,N,H,W])."""
    in_height, in_width = x.shape[-2], x.shape[-1]
    pad_left, pad_right, pad_top, pad_bottom = calculate_required_padding(
        kernel, strides, in_height, in_width)
    if pad_top != 0:
        x = jnp.concatenate([x[..., -pad_top:, :], x], axis=-2)
    if pad_left != 0:
        x = jnp.concatenate([x[..., :, -pad_left:], x], axis=-1)
    if pad_bottom != 0:
        x = jnp.concatenate([x, x[..., pad_top:pad_top + pad_bottom, :]], axis=-2)
    if pad_right != 0:
        x = jnp.concatenate([x, x[..., :, pad_left:pad_left + pad_right]], axis=-1)
    return x


# ------------------------------ tile selection -------------------------------

# Double-buffered f32 working-set budget per conv call; comfortably under every
# generation's scoped-VMEM default (32 MiB on v6e/v7x), so no vmem_limit_bytes
# override is needed even at hw_t = 2048.
_VMEM_TILE_BUDGET = 20 * 1024 * 1024


def _divisor_candidates(n, mult, caps):
    cands = [c for c in caps if c <= n and n % c == 0 and c % mult == 0]
    return cands if cands else [n]


def _pick_conv_tiles(o, nhw, k):
    """Largest (o_t, hw_t) whose double-buffered f32 footprint fits the budget.

    If that gives a single-cell grid, split one dimension so both v7x
    TensorCores get work (costs one extra ~0.35us grid step on v5e/v6e)."""
    o_cands = _divisor_candidates(
        o, 8, (512, 384, 256, 192, 128, 96, 64, 48, 32, 16, 8))
    hw_cands = _divisor_candidates(nhw, 128, (2048, 1024, 512, 256, 128))

    def footprint(ot, ht):  # 2x double buffering, f32; scale/bias negligible
        return 8 * (k * ht + ot * k + ot * ht)

    best = (o_cands[-1], hw_cands[-1])
    for ot in o_cands:
        for ht in hw_cands:
            if footprint(ot, ht) <= _VMEM_TILE_BUDGET and ot * ht > best[0] * best[1]:
                best = (ot, ht)
    ot, ht = best
    if (o // ot) * (nhw // ht) == 1:
        if ht >= 256 and (ht // 2) % 128 == 0:
            ht //= 2
        elif ot >= 16 and (ot // 2) % 8 == 0:
            ot //= 2
    return ot, ht


# ------------------------------ Pallas kernels -------------------------------

def _conv_bn_relu_kernel(xcol_ref, w_ref, scale_ref, bias_ref, o_ref):
    # xcol_ref: (K, HWt)  w_ref: (Ot, K)  scale/bias: (Ot, 1)  o_ref: (Ot, HWt)
    acc = jnp.dot(w_ref[...], xcol_ref[...],
                  preferred_element_type=jnp.float32)        # one MXU GEMM
    y = acc * scale_ref[...] + bias_ref[...]                 # fused eval-mode BN
    o_ref[...] = jnp.maximum(y, 0.0).astype(o_ref.dtype)     # fused ReLU, lane-dense store


def _maxpool3x3s2_kernel(ph_ref, o_ref):
    # ph_ref: (2, 2, nc_t, Ho+1, Wo+1) phase-split input; o_ref: (nc_t, Ho, Wo)
    Ho, Wo = o_ref.shape[1], o_ref.shape[2]
    phases = [[ph_ref[0, 0], ph_ref[0, 1]],
              [ph_ref[1, 0], ph_ref[1, 1]]]
    m = None
    for kh in range(3):                                      # 9 unit-stride taps on VPU
        for kw in range(3):
            t = phases[kh % 2][kw % 2][:, kh // 2:kh // 2 + Ho, kw // 2:kw // 2 + Wo]
            m = t if m is None else jnp.maximum(m, t)
    o_ref[...] = m


# ------------------------------ conv wrapper ---------------------------------

def toroidal_conv_bn_relu(x_cnhw, weight, bn_scale, bn_bias, *, kernel_size, stride):
    """Toric-padded conv + eval-mode BN + ReLU.

    x_cnhw: [C, N, H, W] f32; weight: [O, C, kH, kW]; bn_scale/bias: [O].
    Returns ([O, N*Ho*Wo], (Ho, Wo)) — channels on sublanes, batch*spatial on lanes.
    """
    if isinstance(kernel_size, int):
        kernel_size = (kernel_size, kernel_size)
    if isinstance(stride, int):
        stride = (stride, stride)
    kH, kW = kernel_size
    sH, sW = stride

    xp = toric_pad(x_cnhw, kernel_size, stride)              # [C, N, Hp, Wp]
    C, N, Hp, Wp = xp.shape
    O = weight.shape[0]
    Ho = (Hp - kH) // sH + 1
    Wo = (Wp - kW) // sW + 1
    T = kH * kW
    K = T * C
    NHW = N * Ho * Wo

    # im2col with K (= tap*C + c) on sublanes and batch*spatial flattened on lanes.
    # TODO(synk): this gather is still an XLA-materialized HBM tensor (~T x read
    # amplification of xp); a fully in-kernel tap construction needs strided lane
    # slices / halo DMAs whose stride-2 Mosaic lowering is fragile, so the robust
    # XLA-fused gather is kept.
    if T == 1:
        xcol = xp.reshape(C, NHW)                            # 1x1 conv: no duplication
    else:
        taps = [
            xp[:, :, kh:kh + (Ho - 1) * sH + 1:sH, kw:kw + (Wo - 1) * sW + 1:sW]
            for kh in range(kH) for kw in range(kW)
        ]
        xcol = jnp.stack(taps, axis=0).reshape(K, NHW)       # (T*C, N*Ho*Wo)

    # Weight as (O, K) with K ordered tap*C + c (matches the tap stack above).
    wmat = jnp.transpose(weight, (0, 2, 3, 1)).reshape(O, K)
    scale2 = bn_scale.reshape(O, 1).astype(jnp.float32)
    bias2 = bn_bias.reshape(O, 1).astype(jnp.float32)

    o_t, hw_t = _pick_conv_tiles(O, NHW, K)
    grid = (O // o_t, NHW // hw_t)                           # NHW innermost: weights stay resident

    out = pl.pallas_call(
        _conv_bn_relu_kernel,
        out_shape=jax.ShapeDtypeStruct((O, NHW), x_cnhw.dtype),
        grid_spec=pltpu.PrefetchScalarGridSpec(
            num_scalar_prefetch=0,
            grid=grid,
            in_specs=[
                pl.BlockSpec((K, hw_t), lambda oi, hwi: (0, hwi)),
                pl.BlockSpec((o_t, K), lambda oi, hwi: (oi, 0)),
                pl.BlockSpec((o_t, 1), lambda oi, hwi: (oi, 0)),
                pl.BlockSpec((o_t, 1), lambda oi, hwi: (oi, 0)),
            ],
            out_specs=pl.BlockSpec((o_t, hw_t), lambda oi, hwi: (oi, hwi)),
        ),
        compiler_params=pltpu.CompilerParams(
            dimension_semantics=("parallel", "parallel")),
    )(xcol, wmat, scale2, bias2)

    return out, (Ho, Wo)


def maxpool3x3_stride2(xp_cnhw):
    """3x3 / stride-2 VALID max pool of an already wrap-padded [C, N, Hp, Wp] input.

    The stride-2 taps are phase-split (space-to-depth) on the host — a ~1x-traffic
    relayout XLA fuses with the wrap-pad — so the kernel only takes unit-stride
    VMEM slices and the 9-tap stack is never materialized in HBM.
    """
    C, N, Hp, Wp = xp_cnhw.shape
    Ho = (Hp - 3) // 2 + 1
    Wo = (Wp - 3) // 2 + 1
    Hq, Wq = Ho + 1, Wo + 1                                  # padded phase extents
    NC = C * N
    neg = jnp.finfo(xp_cnhw.dtype).min                       # never selected (pad rows unused)

    rows = []
    for ph in range(2):
        cols = []
        for pw in range(2):
            p = xp_cnhw[:, :, ph::2, pw::2]
            p = p.reshape(NC, p.shape[2], p.shape[3])
            p = jnp.pad(p, ((0, 0), (0, Hq - p.shape[1]), (0, Wq - p.shape[2])),
                        constant_values=neg)
            cols.append(p)
        rows.append(jnp.stack(cols, axis=0))
    phases = jnp.stack(rows, axis=0)                         # (2, 2, NC, Hq, Wq)

    nc_t = NC // 2 if (NC % 2 == 0 and NC >= 2) else NC      # >=2 cells when possible (v7x)
    grid = (NC // nc_t,)

    out = pl.pallas_call(
        _maxpool3x3s2_kernel,
        out_shape=jax.ShapeDtypeStruct((NC, Ho, Wo), xp_cnhw.dtype),
        grid_spec=pltpu.PrefetchScalarGridSpec(
            num_scalar_prefetch=0,
            grid=grid,
            in_specs=[pl.BlockSpec((2, 2, nc_t, Hq, Wq), lambda i: (0, 0, i, 0, 0))],
            out_specs=pl.BlockSpec((nc_t, Ho, Wo), lambda i: (i, 0, 0)),
        ),
        compiler_params=pltpu.CompilerParams(
            dimension_semantics=("parallel",)),
    )(phases)
    return out.reshape(C, N * Ho * Wo), (Ho, Wo)


# ------------------------------ InceptionB forward ---------------------------

def fold_bn(gamma, beta, mean, var, eps=1e-3):
    scale = gamma / jnp.sqrt(var + eps)
    bias = beta - mean * scale
    return scale, bias


def inception_b_forward(x, params):
    """x: [N, C, H, W] -> [N, 384+96+C, H//2, W//2] (matches PyTorch InceptionB)."""
    N, C, H, W = x.shape
    # Working layout: channels on sublanes, batch*spatial on lanes.
    xc = jnp.transpose(x, (1, 0, 2, 3))                      # [C, N, H, W]

    s, b = fold_bn(*params["b3x3"]["bn"])
    b3, (Ho, Wo) = toroidal_conv_bn_relu(xc, params["b3x3"]["w"], s, b,
                                         kernel_size=3, stride=2)

    # TODO(synk): dbl1->dbl2->dbl3 still round-trips its (tiny) intermediates
    # through HBM; fusing the chain into one pallas_call needs in-kernel toric
    # padding + im2col, omitted for lowering robustness.
    s, b = fold_bn(*params["dbl1"]["bn"])
    d, _ = toroidal_conv_bn_relu(xc, params["dbl1"]["w"], s, b, kernel_size=1, stride=1)
    d = d.reshape(-1, N, H, W)
    s, b = fold_bn(*params["dbl2"]["bn"])
    d, _ = toroidal_conv_bn_relu(d, params["dbl2"]["w"], s, b, kernel_size=3, stride=1)
    d = d.reshape(-1, N, H, W)
    s, b = fold_bn(*params["dbl3"]["bn"])
    d, _ = toroidal_conv_bn_relu(d, params["dbl3"]["w"], s, b, kernel_size=3, stride=2)

    # branch_pool: exact wrap-pad from the PyTorch forward, then 3x3/s2 max pool.
    xp = jnp.concatenate([xc[:, :, -1:, :], xc], axis=2)
    xp = jnp.concatenate([xp[:, :, :, -1:], xp], axis=3)
    bp, _ = maxpool3x3_stride2(xp)

    # Channel concat in the (Ctot, N*HW) working layout; XLA fuses it with the single
    # final relayout back to NCHW (one small output pass, no per-branch transposes).
    out = jnp.concatenate([b3, d, bp], axis=0)               # (384+96+C, N*Ho*Wo)
    return out.reshape(-1, N, Ho, Wo).transpose(1, 0, 2, 3)  # NCHW


# ------------------------------ pure-JAX reference ---------------------------

def _ref_conv_bn_relu(x, w, bn, kernel_size, stride):
    gamma, beta, mean, var = bn
    ks = (kernel_size, kernel_size)
    st = (stride, stride)
    xp = toric_pad(x, ks, st)
    y = lax.conv_general_dilated(
        xp, w, window_strides=st, padding="VALID",
        dimension_numbers=("NCHW", "OIHW", "NCHW"),
        precision=lax.Precision.HIGHEST)
    scale = gamma / jnp.sqrt(var + 1e-3)
    bias = beta - mean * scale
    y = y * scale[None, :, None, None] + bias[None, :, None, None]
    return jnp.maximum(y, 0.0)


def inception_b_reference(x, params):
    b3 = _ref_conv_bn_relu(x, params["b3x3"]["w"], params["b3x3"]["bn"], 3, 2)
    d = _ref_conv_bn_relu(x, params["dbl1"]["w"], params["dbl1"]["bn"], 1, 1)
    d = _ref_conv_bn_relu(d, params["dbl2"]["w"], params["dbl2"]["bn"], 3, 1)
    d = _ref_conv_bn_relu(d, params["dbl3"]["w"], params["dbl3"]["bn"], 3, 2)
    xp = jnp.concatenate([x[:, :, -1:, :], x], axis=2)
    xp = jnp.concatenate([xp[:, :, :, -1:], xp], axis=3)
    bp = lax.reduce_window(xp, -jnp.inf, lax.max,
                           (1, 1, 3, 3), (1, 1, 2, 2), "VALID")
    return jnp.concatenate([b3, d, bp], axis=1)


# --------------------------------- driver ------------------------------------

def make_params(key, in_ch):
    def conv_bn(k, cin, cout, ks):
        k1, k2, k3, k4, k5 = jax.random.split(k, 5)
        w = jax.random.normal(k1, (cout, cin, ks, ks), jnp.float32) * 0.1
        gamma = 1.0 + 0.1 * jax.random.normal(k2, (cout,), jnp.float32)
        beta = 0.1 * jax.random.normal(k3, (cout,), jnp.float32)
        mean = 0.1 * jax.random.normal(k4, (cout,), jnp.float32)
        var = jax.random.uniform(k5, (cout,), jnp.float32, minval=0.5, maxval=1.5)
        return {"w": w, "bn": (gamma, beta, mean, var)}

    k1, k2, k3, k4 = jax.random.split(key, 4)
    return {
        "b3x3": conv_bn(k1, in_ch, 384, 3),
        "dbl1": conv_bn(k2, in_ch, 64, 1),
        "dbl2": conv_bn(k3, 64, 96, 3),
        "dbl3": conv_bn(k4, 96, 96, 3),
    }


if __name__ == "__main__":
    key = jax.random.PRNGKey(0)
    kx, kp = jax.random.split(key)

    N, C, H, W = 2, 4, 16, 16
    x = jax.random.normal(kx, (N, C, H, W), dtype=jnp.float32)
    params = make_params(kp, C)

    y = jax.jit(inception_b_forward)(x, params)
    y = jax.block_until_ready(y)

    y_ref = jax.jit(inception_b_reference)(x, params)
    y_ref = jax.block_until_ready(y_ref)

    assert y.shape == (N, 384 + 96 + C, H // 2, W // 2), y.shape
    max_err = float(jnp.max(jnp.abs(y - y_ref)))
    assert jnp.allclose(y, y_ref, atol=2e-3, rtol=2e-3), max_err

    print("KERNEL_OK")
</pallas_src>

<mosaic_0001>
module attributes {stable_mosaic.version = 11 : i64} {
  func.func @_conv_bn_relu_kernel(%arg0: i32, %arg1: i32, %arg2: memref<4x256xf32, #tpu.memory_space<vmem>>, %arg3: memref<64x4xf32, #tpu.memory_space<vmem>>, %arg4: memref<64x1xf32, #tpu.memory_space<vmem>>, %arg5: memref<64x1xf32, #tpu.memory_space<vmem>>, %arg6: memref<64x256xf32, #tpu.memory_space<vmem>>) attributes {dimension_semantics = [#tpu.dimension_semantics<parallel>, #tpu.dimension_semantics<parallel>], iteration_bounds = array<i64: 1, 2>, scalar_prefetch = 0 : i64, scratch_operands = 0 : i64, tpu.core_type = #tpu.core_type<tc>, window_params = [{transform_indices = @transform_0, window_bounds = array<i64: 4, 256>}, {transform_indices = @transform_1, window_bounds = array<i64: 64, 4>}, {transform_indices = @transform_2, window_bounds = array<i64: 64, 1>}, {transform_indices = @transform_3, window_bounds = array<i64: 64, 1>}, {transform_indices = @transform_4, window_bounds = array<i64: 64, 256>}]} {
    %c0 = arith.constant 0 : index
    %c0_0 = arith.constant 0 : index
    %0 = vector.load %arg3[%c0, %c0_0] : memref<64x4xf32, #tpu.memory_space<vmem>>, vector<64x4xf32>
    %c0_1 = arith.constant 0 : index
    %c0_2 = arith.constant 0 : index
    %1 = vector.load %arg2[%c0_1, %c0_2] : memref<4x256xf32, #tpu.memory_space<vmem>>, vector<4x256xf32>
    %cst = arith.constant dense<0.000000e+00> : vector<64x256xf32>
    %2 = tpu.matmul %0, %1, %cst {dimension_numbers = #tpu.dot_dimension_numbers<[1], [0], [0], [1], [0, 0, 1, 1], [], []>} : vector<64x4xf32>, vector<4x256xf32>, vector<64x256xf32> -> vector<64x256xf32>
    %c0_3 = arith.constant 0 : index
    %c0_4 = arith.constant 0 : index
    %3 = vector.load %arg4[%c0_3, %c0_4] : memref<64x1xf32, #tpu.memory_space<vmem>>, vector<64x1xf32>
    %4 = vector.broadcast %3 : vector<64x1xf32> to vector<64x256xf32>
    %5 = arith.mulf %2, %4 : vector<64x256xf32>
    %c0_5 = arith.constant 0 : index
    %c0_6 = arith.constant 0 : index
    %6 = vector.load %arg5[%c0_5, %c0_6] : memref<64x1xf32, #tpu.memory_space<vmem>>, vector<64x1xf32>
    %7 = vector.broadcast %6 : vector<64x1xf32> to vector<64x256xf32>
    %8 = arith.addf %5, %7 : vector<64x256xf32>
    %cst_7 = arith.constant 0.000000e+00 : f32
    %9 = vector.broadcast %cst_7 : f32 to vector<64x256xf32>
    %10 = arith.maximumf %8, %9 : vector<64x256xf32>
    %c0_8 = arith.constant 0 : index
    %c0_9 = arith.constant 0 : index
    %11 = vector.load %arg6[%c0_8, %c0_9] : memref<64x256xf32, #tpu.memory_space<vmem>>, vector<64x256xf32>
    tpu.vector_store %arg6[%c0_8, %c0_9], %10 {strides = array<i32>} : memref<64x256xf32, #tpu.memory_space<vmem>>, vector<64x256xf32>,
    return
  }
  func.func @transform_0(%arg0: i32, %arg1: i32) -> (i32, i32) {
    %c0_i32 = arith.constant 0 : i32
    %c0_i32_0 = arith.constant 0 : i32
    return %c0_i32, %arg1 : i32, i32
  }
  func.func @transform_1(%arg0: i32, %arg1: i32) -> (i32, i32) {
    %c0_i32 = arith.constant 0 : i32
    %c0_i32_0 = arith.constant 0 : i32
    return %arg0, %c0_i32 : i32, i32
  }
  func.func @transform_2(%arg0: i32, %arg1: i32) -> (i32, i32) {
    %c0_i32 = arith.constant 0 : i32
    %c0_i32_0 = arith.constant 0 : i32
    return %arg0, %c0_i32 : i32, i32
  }
  func.func @transform_3(%arg0: i32, %arg1: i32) -> (i32, i32) {
    %c0_i32 = arith.constant 0 : i32
    %c0_i32_0 = arith.constant 0 : i32
    return %arg0, %c0_i32 : i32, i32
  }
  func.func @transform_4(%arg0: i32, %arg1: i32) -> (i32, i32) {
    %c0_i32 = arith.constant 0 : i32
    return %arg0, %arg1 : i32, i32
  }
}

module attributes {stable_mosaic.version = 11 : i64} {
  func.func @_conv_bn_relu_kernel(%arg0: i32, %arg1: i32, %arg2: memref<576x256xf32, #tpu.memory_space<vmem>>, %arg3: memref<96x576xf32, #tpu.memory_space<vmem>>, %arg4: memref<96x1xf32, #tpu.memory_space<vmem>>, %arg5: memref<96x1xf32, #tpu.memory_space<vmem>>, %arg6: memref<96x256xf32, #tpu.memory_space<vmem>>) attributes {dimension_semantics = [#tpu.dimension_semantics<parallel>, #tpu.dimension_semantics<parallel>], iteration_bounds = array<i64: 1, 2>, scalar_prefetch = 0 : i64, scratch_operands = 0 : i64, tpu.core_type = #tpu.core_type<tc>, window_params = [{transform_indices = @transform_0, window_bounds = array<i64: 576, 256>}, {transform_indices = @transform_1, window_bounds = array<i64: 96, 576>}, {transform_indices = @transform_2, window_bounds = array<i64: 96, 1>}, {transform_indices = @transform_3, window_bounds = array<i64: 96, 1>}, {transform_indices = @transform_4, window_bounds = array<i64: 96, 256>}]} {
    %c0 = arith.constant 0 : index
    %c0_0 = arith.constant 0 : index
    %0 = vector.load %arg3[%c0, %c0_0] : memref<96x576xf32, #tpu.memory_space<vmem>>, vector<96x576xf32>
    %c0_1 = arith.constant 0 : index
    %c0_2 = arith.constant 0 : index
    %1 = vector.load %arg2[%c0_1, %c0_2] : memref<576x256xf32, #tpu.memory_space<vmem>>, vector<576x256xf32>
    %cst = arith.constant dense<0.000000e+00> : vector<96x256xf32>
    %2 = tpu.matmul %0, %1, %cst {dimension_numbers = #tpu.dot_dimension_numbers<[1], [0], [0], [1], [0, 0, 1, 1], [], []>} : vector<96x576xf32>, vector<576x256xf32>, vector<96x256xf32> -> vector<96x256xf32>
    %c0_3 = arith.constant 0 : index
    %c0_4 = arith.constant 0 : index
    %3 = vector.load %arg4[%c0_3, %c0_4] : memref<96x1xf32, #tpu.memory_space<vmem>>, vector<96x1xf32>
    %4 = vector.broadcast %3 : vector<96x1xf32> to vector<96x256xf32>
    %5 = arith.mulf %2, %4 : vector<96x256xf32>
    %c0_5 = arith.constant 0 : index
    %c0_6 = arith.constant 0 : index
    %6 = vector.load %arg5[%c0_5, %c0_6] : memref<96x1xf32, #tpu.memory_space<vmem>>, vector<96x1xf32>
    %7 = vector.broadcast %6 : vector<96x1xf32> to vector<96x256xf32>
    %8 = arith.addf %5, %7 : vector<96x256xf32>
    %cst_7 = arith.constant 0.000000e+00 : f32
    %9 = vector.broadcast %cst_7 : f32 to vector<96x256xf32>
    %10 = arith.maximumf %8, %9 : vector<96x256xf32>
    %c0_8 = arith.constant 0 : index
    %c0_9 = arith.constant 0 : index
    %11 = vector.load %arg6[%c0_8, %c0_9] : memref<96x256xf32, #tpu.memory_space<vmem>>, vector<96x256xf32>
    tpu.vector_store %arg6[%c0_8, %c0_9], %10 {strides = array<i32>} : memref<96x256xf32, #tpu.memory_space<vmem>>, vector<96x256xf32>,
    return
  }
  func.func @transform_0(%arg0: i32, %arg1: i32) -> (i32, i32) {
    %c0_i32 = arith.constant 0 : i32
    %c0_i32_0 = arith.constant 0 : i32
    return %c0_i32, %arg1 : i32, i32
  }
  func.func @transform_1(%arg0: i32, %arg1: i32) -> (i32, i32) {
    %c0_i32 = arith.constant 0 : i32
    %c0_i32_0 = arith.constant 0 : i32
    return %arg0, %c0_i32 : i32, i32
  }
  func.func @transform_2(%arg0: i32, %arg1: i32) -> (i32, i32) {
    %c0_i32 = arith.constant 0 : i32
    %c0_i32_0 = arith.constant 0 : i32
    return %arg0, %c0_i32 : i32, i32
  }
  func.func @transform_3(%arg0: i32, %arg1: i32) -> (i32, i32) {
    %c0_i32 = arith.constant 0 : i32
    %c0_i32_0 = arith.constant 0 : i32
    return %arg0, %c0_i32 : i32, i32
  }
  func.func @transform_4(%arg0: i32, %arg1: i32) -> (i32, i32) {
    %c0_i32 = arith.constant 0 : i32
    return %arg0, %arg1 : i32, i32
  }
}

module attributes {stable_mosaic.version = 11 : i64} {
  func.func @_conv_bn_relu_kernel(%arg0: i32, %arg1: i32, %arg2: memref<864x128xf32, #tpu.memory_space<vmem>>, %arg3: memref<48x864xf32, #tpu.memory_space<vmem>>, %arg4: memref<48x1xf32, #tpu.memory_space<vmem>>, %arg5: memref<48x1xf32, #tpu.memory_space<vmem>>, %arg6: memref<48x128xf32, #tpu.memory_space<vmem>>) attributes {dimension_semantics = [#tpu.dimension_semantics<parallel>, #tpu.dimension_semantics<parallel>], iteration_bounds = array<i64: 2, 1>, scalar_prefetch = 0 : i64, scratch_operands = 0 : i64, tpu.core_type = #tpu.core_type<tc>, window_params = [{transform_indices = @transform_0, window_bounds = array<i64: 864, 128>}, {transform_indices = @transform_1, window_bounds = array<i64: 48, 864>}, {transform_indices = @transform_2, window_bounds = array<i64: 48, 1>}, {transform_indices = @transform_3, window_bounds = array<i64: 48, 1>}, {transform_indices = @transform_4, window_bounds = array<i64: 48, 128>}]} {
    %c0 = arith.constant 0 : index
    %c0_0 = arith.constant 0 : index
    %0 = vector.load %arg3[%c0, %c0_0] : memref<48x864xf32, #tpu.memory_space<vmem>>, vector<48x864xf32>
    %c0_1 = arith.constant 0 : index
    %c0_2 = arith.constant 0 : index
    %1 = vector.load %arg2[%c0_1, %c0_2] : memref<864x128xf32, #tpu.memory_space<vmem>>, vector<864x128xf32>
    %cst = arith.constant dense<0.000000e+00> : vector<48x128xf32>
    %2 = tpu.matmul %0, %1, %cst {dimension_numbers = #tpu.dot_dimension_numbers<[1], [0], [0], [1], [0, 0, 1, 1], [], []>} : vector<48x864xf32>, vector<864x128xf32>, vector<48x128xf32> -> vector<48x128xf32>
    %c0_3 = arith.constant 0 : index
    %c0_4 = arith.constant 0 : index
    %3 = vector.load %arg4[%c0_3, %c0_4] : memref<48x1xf32, #tpu.memory_space<vmem>>, vector<48x1xf32>
    %4 = vector.broadcast %3 : vector<48x1xf32> to vector<48x128xf32>
    %5 = arith.mulf %2, %4 : vector<48x128xf32>
    %c0_5 = arith.constant 0 : index
    %c0_6 = arith.constant 0 : index
    %6 = vector.load %arg5[%c0_5, %c0_6] : memref<48x1xf32, #tpu.memory_space<vmem>>, vector<48x1xf32>
    %7 = vector.broadcast %6 : vector<48x1xf32> to vector<48x128xf32>
    %8 = arith.addf %5, %7 : vector<48x128xf32>
    %cst_7 = arith.constant 0.000000e+00 : f32
    %9 = vector.broadcast %cst_7 : f32 to vector<48x128xf32>
    %10 = arith.maximumf %8, %9 : vector<48x128xf32>
    %c0_8 = arith.constant 0 : index
    %c0_9 = arith.constant 0 : index
    %11 = vector.load %arg6[%c0_8, %c0_9] : memref<48x128xf32, #tpu.memory_space<vmem>>, vector<48x128xf32>
    tpu.vector_store %arg6[%c0_8, %c0_9], %10 {strides = array<i32>} : memref<48x128xf32, #tpu.memory_space<vmem>>, vector<48x128xf32>,
    return
  }
  func.func @transform_0(%arg0: i32, %arg1: i32) -> (i32, i32) {
    %c0_i32 = arith.constant 0 : i32
    %c0_i32_0 = arith.constant 0 : i32
    return %c0_i32, %arg1 : i32, i32
  }
  func.func @transform_1(%arg0: i32, %arg1: i32) -> (i32, i32) {
    %c0_i32 = arith.constant 0 : i32
    %c0_i32_0 = arith.constant 0 : i32
    return %arg0, %c0_i32 : i32, i32
  }
  func.func @transform_2(%arg0: i32, %arg1: i32) -> (i32, i32) {
    %c0_i32 = arith.constant 0 : i32
    %c0_i32_0 = arith.constant 0 : i32
    return %arg0, %c0_i32 : i32, i32
  }
  func.func @transform_3(%arg0: i32, %arg1: i32) -> (i32, i32) {
    %c0_i32 = arith.constant 0 : i32
    %c0_i32_0 = arith.constant 0 : i32
    return %arg0, %c0_i32 : i32, i32
  }
  func.func @transform_4(%arg0: i32, %arg1: i32) -> (i32, i32) {
    %c0_i32 = arith.constant 0 : i32
    return %arg0, %arg1 : i32, i32
  }
}

module attributes {stable_mosaic.version = 11 : i64} {
  func.func @_conv_bn_relu_kernel(%arg0: i32, %arg1: i32, %arg2: memref<36x128xf32, #tpu.memory_space<vmem>>, %arg3: memref<192x36xf32, #tpu.memory_space<vmem>>, %arg4: memref<192x1xf32, #tpu.memory_space<vmem>>, %arg5: memref<192x1xf32, #tpu.memory_space<vmem>>, %arg6: memref<192x128xf32, #tpu.memory_space<vmem>>) attributes {dimension_semantics = [#tpu.dimension_semantics<parallel>, #tpu.dimension_semantics<parallel>], iteration_bounds = array<i64: 2, 1>, scalar_prefetch = 0 : i64, scratch_operands = 0 : i64, tpu.core_type = #tpu.core_type<tc>, window_params = [{transform_indices = @transform_0, window_bounds = array<i64: 36, 128>}, {transform_indices = @transform_1, window_bounds = array<i64: 192, 36>}, {transform_indices = @transform_2, window_bounds = array<i64: 192, 1>}, {transform_indices = @transform_3, window_bounds = array<i64: 192, 1>}, {transform_indices = @transform_4, window_bounds = array<i64: 192, 128>}]} {
    %c0 = arith.constant 0 : index
    %c0_0 = arith.constant 0 : index
    %0 = vector.load %arg3[%c0, %c0_0] : memref<192x36xf32, #tpu.memory_space<vmem>>, vector<192x36xf32>
    %c0_1 = arith.constant 0 : index
    %c0_2 = arith.constant 0 : index
    %1 = vector.load %arg2[%c0_1, %c0_2] : memref<36x128xf32, #tpu.memory_space<vmem>>, vector<36x128xf32>
    %cst = arith.constant dense<0.000000e+00> : vector<192x128xf32>
    %2 = tpu.matmul %0, %1, %cst {dimension_numbers = #tpu.dot_dimension_numbers<[1], [0], [0], [1], [0, 0, 1, 1], [], []>} : vector<192x36xf32>, vector<36x128xf32>, vector<192x128xf32> -> vector<192x128xf32>
    %c0_3 = arith.constant 0 : index
    %c0_4 = arith.constant 0 : index
    %3 = vector.load %arg4[%c0_3, %c0_4] : memref<192x1xf32, #tpu.memory_space<vmem>>, vector<192x1xf32>
    %4 = vector.broadcast %3 : vector<192x1xf32> to vector<192x128xf32>
    %5 = arith.mulf %2, %4 : vector<192x128xf32>
    %c0_5 = arith.constant 0 : index
    %c0_6 = arith.constant 0 : index
    %6 = vector.load %arg5[%c0_5, %c0_6] : memref<192x1xf32, #tpu.memory_space<vmem>>, vector<192x1xf32>
    %7 = vector.broadcast %6 : vector<192x1xf32> to vector<192x128xf32>
    %8 = arith.addf %5, %7 : vector<192x128xf32>
    %cst_7 = arith.constant 0.000000e+00 : f32
    %9 = vector.broadcast %cst_7 : f32 to vector<192x128xf32>
    %10 = arith.maximumf %8, %9 : vector<192x128xf32>
    %c0_8 = arith.constant 0 : index
    %c0_9 = arith.constant 0 : index
    %11 = vector.load %arg6[%c0_8, %c0_9] : memref<192x128xf32, #tpu.memory_space<vmem>>, vector<192x128xf32>
    tpu.vector_store %arg6[%c0_8, %c0_9], %10 {strides = array<i32>} : memref<192x128xf32, #tpu.memory_space<vmem>>, vector<192x128xf32>,
    return
  }
  func.func @transform_0(%arg0: i32, %arg1: i32) -> (i32, i32) {
    %c0_i32 = arith.constant 0 : i32
    %c0_i32_0 = arith.constant 0 : i32
    return %c0_i32, %arg1 : i32, i32
  }
  func.func @transform_1(%arg0: i32, %arg1: i32) -> (i32, i32) {
    %c0_i32 = arith.constant 0 : i32
    %c0_i32_0 = arith.constant 0 : i32
    return %arg0, %c0_i32 : i32, i32
  }
  func.func @transform_2(%arg0: i32, %arg1: i32) -> (i32, i32) {
    %c0_i32 = arith.constant 0 : i32
    %c0_i32_0 = arith.constant 0 : i32
    return %arg0, %c0_i32 : i32, i32
  }
  func.func @transform_3(%arg0: i32, %arg1: i32) -> (i32, i32) {
    %c0_i32 = arith.constant 0 : i32
    %c0_i32_0 = arith.constant 0 : i32
    return %arg0, %c0_i32 : i32, i32
  }
  func.func @transform_4(%arg0: i32, %arg1: i32) -> (i32, i32) {
    %c0_i32 = arith.constant 0 : i32
    return %arg0, %arg1 : i32, i32
  }
}

module attributes {stable_mosaic.version = 11 : i64} {
  func.func @_maxpool3x3s2_kernel(%arg0: i32, %arg1: memref<2x2x4x9x9xf32, #tpu.memory_space<vmem>>, %arg2: memref<4x8x8xf32, #tpu.memory_space<vmem>>) attributes {dimension_semantics = [#tpu.dimension_semantics<parallel>], iteration_bounds = array<i64: 2>, scalar_prefetch = 0 : i64, scratch_operands = 0 : i64, tpu.core_type = #tpu.core_type<tc>, window_params = [{transform_indices = @transform_0, window_bounds = array<i64: 2, 2, 4, 9, 9>}, {transform_indices = @transform_1, window_bounds = array<i64: 4, 8, 8>}]} {
    %c0 = arith.constant 0 : index
    %c0_0 = arith.constant 0 : index
    %c0_1 = arith.constant 0 : index
    %c0_2 = arith.constant 0 : index
    %c0_3 = arith.constant 0 : index
    %0 = vector.load %arg1[%c0, %c0_0, %c0_1, %c0_2, %c0_3] : memref<2x2x4x9x9xf32, #tpu.memory_space<vmem>>, vector<1x1x4x9x9xf32>
    %1 = vector.shape_cast %0 : vector<1x1x4x9x9xf32> to vector<4x9x9xf32>
    %c0_4 = arith.constant 0 : index
    %c1 = arith.constant 1 : index
    %c0_5 = arith.constant 0 : index
    %c0_6 = arith.constant 0 : index
    %c0_7 = arith.constant 0 : index
    %2 = vector.load %arg1[%c0_4, %c1, %c0_5, %c0_6, %c0_7] : memref<2x2x4x9x9xf32, #tpu.memory_space<vmem>>, vector<1x1x4x9x9xf32>
    %3 = vector.shape_cast %2 : vector<1x1x4x9x9xf32> to vector<4x9x9xf32>
    %c1_8 = arith.constant 1 : index
    %c0_9 = arith.constant 0 : index
    %c0_10 = arith.constant 0 : index
    %c0_11 = arith.constant 0 : index
    %c0_12 = arith.constant 0 : index
    %4 = vector.load %arg1[%c1_8, %c0_9, %c0_10, %c0_11, %c0_12] : memref<2x2x4x9x9xf32, #tpu.memory_space<vmem>>, vector<1x1x4x9x9xf32>
    %5 = vector.shape_cast %4 : vector<1x1x4x9x9xf32> to vector<4x9x9xf32>
    %c1_13 = arith.constant 1 : index
    %c1_14 = arith.constant 1 : index
    %c0_15 = arith.constant 0 : index
    %c0_16 = arith.constant 0 : index
    %c0_17 = arith.constant 0 : index
    %6 = vector.load %arg1[%c1_13, %c1_14, %c0_15, %c0_16, %c0_17] : memref<2x2x4x9x9xf32, #tpu.memory_space<vmem>>, vector<1x1x4x9x9xf32>
    %7 = vector.shape_cast %6 : vector<1x1x4x9x9xf32> to vector<4x9x9xf32>
    %8 = vector.extract_strided_slice %1 {offsets = [0, 0, 0], sizes = [4, 8, 8], strides = [1, 1, 1]} : vector<4x9x9xf32> to vector<4x8x8xf32>
    %9 = vector.extract_strided_slice %3 {offsets = [0, 0, 0], sizes = [4, 8, 8], strides = [1, 1, 1]} : vector<4x9x9xf32> to vector<4x8x8xf32>
    %10 = arith.maximumf %8, %9 : vector<4x8x8xf32>
    %11 = vector.extract_strided_slice %1 {offsets = [0, 0, 1], sizes = [4, 8, 8], strides = [1, 1, 1]} : vector<4x9x9xf32> to vector<4x8x8xf32>
    %12 = arith.maximumf %10, %11 : vector<4x8x8xf32>
    %13 = vector.extract_strided_slice %5 {offsets = [0, 0, 0], sizes = [4, 8, 8], strides = [1, 1, 1]} : vector<4x9x9xf32> to vector<4x8x8xf32>
    %14 = arith.maximumf %12, %13 : vector<4x8x8xf32>
    %15 = vector.extract_strided_slice %7 {offsets = [0, 0, 0], sizes = [4, 8, 8], strides = [1, 1, 1]} : vector<4x9x9xf32> to vector<4x8x8xf32>
    %16 = arith.maximumf %14, %15 : vector<4x8x8xf32>
    %17 = vector.extract_strided_slice %5 {offsets = [0, 0, 1], sizes = [4, 8, 8], strides = [1, 1, 1]} : vector<4x9x9xf32> to vector<4x8x8xf32>
    %18 = arith.maximumf %16, %17 : vector<4x8x8xf32>
    %19 = vector.extract_strided_slice %1 {offsets = [0, 1, 0], sizes = [4, 8, 8], strides = [1, 1, 1]} : vector<4x9x9xf32> to vector<4x8x8xf32>
    %20 = arith.maximumf %18, %19 : vector<4x8x8xf32>
    %21 = vector.extract_strided_slice %3 {offsets = [0, 1, 0], sizes = [4, 8, 8], strides = [1, 1, 1]} : vector<4x9x9xf32> to vector<4x8x8xf32>
    %22 = arith.maximumf %20, %21 : vector<4x8x8xf32>
    %23 = vector.extract_strided_slice %1 {offsets = [0, 1, 1], sizes = [4, 8, 8], strides = [1, 1, 1]} : vector<4x9x9xf32> to vector<4x8x8xf32>
    %24 = arith.maximumf %22, %23 : vector<4x8x8xf32>
    %c0_18 = arith.constant 0 : index
    %c0_19 = arith.constant 0 : index
    %c0_20 = arith.constant 0 : index
    %25 = vector.load %arg2[%c0_18, %c0_19, %c0_20] : memref<4x8x8xf32, #tpu.memory_space<vmem>>, vector<4x8x8xf32>
    tpu.vector_store %arg2[%c0_18, %c0_19, %c0_20], %24 {strides = array<i32>} : memref<4x8x8xf32, #tpu.memory_space<vmem>>, vector<4x8x8xf32>,
    return
  }
  func.func @transform_0(%arg0: i32) -> (i32, i32, i32, i32, i32) {
    %c0_i32 = arith.constant 0 : i32
    %c0_i32_0 = arith.constant 0 : i32
    %c0_i32_1 = arith.constant 0 : i32
    %c0_i32_2 = arith.constant 0 : i32
    %c0_i32_3 = arith.constant 0 : i32
    return %c0_i32, %c0_i32_0, %arg0, %c0_i32_1, %c0_i32_2 : i32, i32, i32, i32, i32
  }
  func.func @transform_1(%arg0: i32) -> (i32, i32, i32) {
    %c0_i32 = arith.constant 0 : i32
    %c0_i32_0 = arith.constant 0 : i32
    %c0_i32_1 = arith.constant 0 : i32
    return %arg0, %c0_i32, %c0_i32_0 : i32, i32, i32
  }
}

</mosaic_0001>

<bundles_post_ra>
// kernel: inception_b_forward.6
= control target key start
LH: loop header
LB: loop body
LE: loop exit
PB: predicated region body
PF: predicated region fallthrough
CT: control target
= control target key end

     0   :  { %s898_s15 = smov 0   ;;  %s900_s16 = smov 0   ;;  %s1093_s0 = inlined_call_operand.vmem [shape: f32[4,512], index: 0, kind: input, shape index: {}]   ;;  %s1094_s1 = inlined_call_operand.vmem [shape: f32[64,4], index: 1, kind: input, shape index: {}]   ;;  %s1095_s2 = inlined_call_operand.vmem [shape: f32[64,1], index: 2, kind: input, shape index: {}]   ;;  %s1096_s3 = inlined_call_operand.vmem [shape: f32[64,1], index: 3, kind: input, shape index: {}]   ;;  %s1097_s4 = inlined_call_operand.vmem [shape: f32[64,512], index: 4, kind: output, shape index: {}]  }
   0x1   :  { %s902_s17 = smov 0   ;;  %s904_s18 = smov 0  }
   0x2   :  { %s906_s19 = smov 0  }
   0x3 LB: > { %s757_s20 = sadd.s32 4294967295, %s869_s19   ;;  %s23_s21 = sadd.s32 1, %s865_s18  ;;  %s869_s19 = sphi %s906_s19, %s14_s19   ;;  %s865_s18 = sphi %s904_s18, %s1102_s18   ;;  %s861_s17 = sphi %s902_s17, %s1101_s17   ;;  %s857_s16 = sphi %s900_s16, %s1100_s16   ;;  %s853_s15 = sphi %s898_s15, %s1099_s15  }
   0x4   : > { %p24_p0 = scmp.ge.s32.totalorder %s23_s21, 2  ;;  %s139_s22 = sadd.s32 1, %s857_s16 }
   0x5   : > { %p149_p1 = scmp.ne.s32.totalorder %s857_s16, %s853_s15  ;;  %p150_p2 = scmp.eq.s32.totalorder %s757_s20, 1 }
   0x6   : > { %s1104_s21 = smov (%p24_p0, %s23_s21), 0  ;;  %p764_p4 = scmp.ge.s32.totalorder %s869_s19, 1 }
   0x7   : > { %p930_p3 = por %p150_p2, %p149_p1  ;;  %s135_s24 = ssub.s32 %s865_s18, %s1104_s21 }
   0x8   : > { %p210_p5 = scmp.lt.s32.totalorder %s869_s19, 3  ;;  %p137_p6 = scmp.eq.s32.totalorder %s135_s24, 0 }
   0xa   : > { %p211_p7 = pnand %p764_p4, %p210_p5 }
   0xb   : > { %s939_s25 = scalar_select %p137_p6, %s857_s16, %s139_s22  }
   0xc   : > { %214 = sbr.rel (%p211_p7) target bundleno = 268 (0x10c), region = 36  ;;  %s766_s26 = sshll.u32 (!%p211_p7), %s861_s17, 1  ;;  %v871_v0 = vmov (!%p211_p7), 0.0   ;;  %v872_v1 = vmov (!%p211_p7), 0   ;;  %v432_v2 = vld [vmem:[%s1095_s2 + $0x10] sm:$0xff] (!%p211_p7)  ;;  %v430_v3 = vld [vmem:[%s1095_s2] sm:$0xff] (!%p211_p7) }
   0xd   : > { %p251_p8 = scmp.lt.s32.totalorder (!%p211_p7), %s766_s26, 3  ;;  %381 = vmatprep.mubr.f32.mxu0 (!%p211_p7), %v871_v0  ;;  %405 = vmatprep.mubr.f32.mxu1 (!%p211_p7), %v871_v0  ;;  %v433_v4 = vld [vmem:[%s1095_s2 + $0x18] sm:$0xff] (!%p211_p7)  ;;  %v431_v5 = vld [vmem:[%s1095_s2 + $0x8] sm:$0xff] (!%p211_p7)  ;;  %vm312_vm0 = vcmask (!%p211_p7), 1043456   ;;  %v276_v8 = vld [vmem:[%s1094_s1] sm:$0xff] (!%p211_p7)  ;;  %vm287_vm1 = vcmask (!%p211_p7), 31744  }
   0xe   : > { %829 = vset.pattern.permute.xlu1 (!%p211_p7), %v872_v1  ;;  %828 = vset.pattern.permute.xlu0 (!%p211_p7), %v872_v1  ;;  %v280_v9 = vld [vmem:[%s1094_s1 + $0x20] sm:$0xff] (!%p211_p7)  ;;  %v435_v10 = vld [vmem:[%s1095_s2 + $0x28] sm:$0xff] (!%p211_p7)  ;;  %v437_v14 = vld [vmem:[%s1095_s2 + $0x38] sm:$0xff] (!%p211_p7)  ;;  %s247_s24 = sand.u32 (!%p211_p7), 1, %s853_s15  }
   0xf   : > { %450 = vperm.xlu1 (!%p211_p7), %829, %v432_v2   ;;  %440 = vperm.xlu0 (!%p211_p7), %828, %v430_v3   ;;  %v434_v11 = vld [vmem:[%s1095_s2 + $0x20] sm:$0xff] (!%p211_p7)  ;;  %v277_v12 = vld [vmem:[%s1094_s1 + $0x8] sm:$0xff] (!%p211_p7)  ;;  %v436_v15 = vld [vmem:[%s1095_s2 + $0x30] sm:$0xff] (!%p211_p7) }
  0x10   : > { %v281_v13 = vld [vmem:[%s1094_s1 + $0x28] sm:$0xff] (!%p211_p7)  ;;  %v278_v16 = vld [vmem:[%s1094_s1 + $0x10] sm:$0xff] (!%p211_p7)  ;;  %v494_v19 = vld [vmem:[%s1096_s3] sm:$0xff] (!%p211_p7) }
  0x11   : > { %v282_v17 = vld [vmem:[%s1094_s1 + $0x30] sm:$0xff] (!%p211_p7)  ;;  %v495_v18 = vld [vmem:[%s1096_s3 + $0x8] sm:$0xff] (!%p211_p7)  ;;  %v279_v20 = vld [vmem:[%s1094_s1 + $0x18] sm:$0xff] (!%p211_p7) }
  0x12   : > { %v283_v21 = vld [vmem:[%s1094_s1 + $0x38] sm:$0xff] (!%p211_p7)  ;;  %v496_v23 = vld [vmem:[%s1096_s3 + $0x10] sm:$0xff] (!%p211_p7)  ;;  %v499_v24 = vld [vmem:[%s1096_s3 + $0x28] sm:$0xff] (!%p211_p7) }
  0x13   : > { %s1106_s26 = smov (!%p251_p8, %s766_s26), 3  ;;  %455 = vperm.xlu1 %829, %v433_v4   ;;  %445 = vperm.xlu0 %828, %v431_v5   ;;  %v497_v22 = vld [vmem:[%s1096_s3 + $0x18] sm:$0xff]  ;;  %v498_v25 = vld [vmem:[%s1096_s3 + $0x20] sm:$0xff]  ;;  %v500_v27 = vld [vmem:[%s1096_s3 + $0x30] sm:$0xff]  ;;  %s783_s27 = sshll.u32 (%p930_p3), %s861_s17, 4 }
  0x14   : > { %s767_s5 = sshll.u32 %s1106_s26, 2  ;;  %v501_v26 = vld [vmem:[%s1096_s3 + $0x38] sm:$0xff]  ;;  %s765_s26 = sshll.u32 %s247_s24, 7 }
  0x15   : > { %s254_s12 = scalar_lea.vmem %s1093_s0, %s767_s5  ;;  %s1032_s15 = scalar_lea.vmem [#allocation2], %s765_s26 }
  0x16   : > { %v284_v6 = vld [vmem:[%s254_s12] sm:$0xff]  ;;  %s602_s30 = scalar_lea.vmem (%p930_p3), %s1097_s4, %s783_s27 }
  0x17   : > { %v286_v7 = vcombine.high %v284_v6, %v284_v6  ;;  %465 = vperm.xlu1 %829, %v435_v10   ;;  %460 = vperm.xlu0 %828, %v434_v11  }
  0x19   : > { %768 = vmatprep.subr.msk.mxu0 %vm312_vm0, %v286_v7  ;;  %784 = vmatprep.subr.msk.mxu1 %vm312_vm0, %v286_v7 }
  0x1a   : > { %769 = vmatpush1.msk.msra.mxu0 %vm312_vm0, %v284_v6  ;;  %785 = vmatpush1.msk.msra.mxu1 %vm312_vm0, %v284_v6 }
  0x1b   : > { %770 = vmatmul.mubr.msk.f32.vlgmr.msra.gmra.mrb[0].mxu0 %vm287_vm1, %v276_v8  ;;  %774 = vmatmul.mubr.msk.f32.vlgmr.msra.gmra.mrb[0].mxu1 %vm287_vm1, %v280_v9 }
  0x1c   : > { %387 = vmatprep.mubr.f32.mxu0 %v871_v0  ;;  %411 = vmatprep.mubr.f32.mxu1 %v871_v0 }
  0x1d   : > { %475 = vperm.xlu1 %829, %v437_v14   ;;  %470 = vperm.xlu0 %828, %v436_v15  }
  0x1f   : > { %771 = vmatmul.mubr.msk.f32.gmra.mrb[2].mxu0 %vm287_vm1, %v277_v12  ;;  %775 = vmatmul.mubr.msk.f32.gmra.mrb[2].mxu1 %vm287_vm1, %v281_v13 }
  0x20   : > { %393 = vmatprep.mubr.f32.mxu0 %v871_v0  ;;  %417 = vmatprep.mubr.f32.mxu1 %v871_v0 }
  0x21   : > { %509 = vperm.xlu1 %829, %v495_v18   ;;  %504 = vperm.xlu0 %828, %v494_v19  }
  0x23   : > { %772 = vmatmul.mubr.msk.f32.gmra.mrb[4].mxu0 %vm287_vm1, %v278_v16  ;;  %776 = vmatmul.mubr.msk.f32.gmra.mrb[4].mxu1 %vm287_vm1, %v282_v17 }
  0x24   : > { %399 = vmatprep.mubr.f32.mxu0 %v871_v0  ;;  %423 = vmatprep.mubr.f32.mxu1 %v871_v0 }
  0x25   : > { %519 = vperm.xlu1 %829, %v497_v22   ;;  %514 = vperm.xlu0 %828, %v496_v23  }
  0x27   : > { %773 = vmatmul.mubr.msk.f32.gmra.mrb[6].mxu0 %vm287_vm1, %v279_v20  ;;  %777 = vmatmul.mubr.msk.f32.gmra.mrb[6].mxu1 %vm287_vm1, %v283_v21 }
  0x29   : > { %529 = vperm.xlu1 %829, %v499_v24   ;;  %524 = vperm.xlu0 %828, %v498_v25  }
  0x2d   : > { %539 = vperm.xlu1 %829, %v501_v26   ;;  %534 = vperm.xlu0 %828, %v500_v27  }
  0x8e   : > { %v441_v28 = vpop.permute.xlu0 %440  ;;  %v451_v29 = vpop.permute.xlu1 %450 }
  0x92   : > { %v446_v30 = vpop.permute.xlu0 %445  ;;  %v1025_v31 = vpop.permute.xlu1 %455 }
  0x96   : > { %v461_v32 = vpop.permute.xlu0 %460  ;;  %v466_v33 = vpop.permute.xlu1 %465 }
  0x9c   : > { %v471_v34 = vpop.permute.xlu0 %470  ;;  %v1027_v35 = vpop.permute.xlu1 %475 }
  0xa0   : > { %v505_v36 = vpop.permute.xlu0 %504  ;;  %v510_v37 = vpop.permute.xlu1 %509 }
  0xa4   : > { %v515_v38 = vpop.permute.xlu0 %514  ;;  %v1030_v39 = vpop.permute.xlu1 %519 }
  0xa8   : > { %v525_v46 = vpop.permute.xlu0 %524  ;;  %v530_v61 = vpop.permute.xlu1 %529 }
  0xac   : > { %v535_v14 = vpop.permute.xlu0 %534 }
  0xee   : > { %v383_v40 = vpop.f32.mrb[0].mxu0  ;;  %v407_v41 = vpop.f32.mrb[0].mxu1 }
  0xef   : > { %v478_v42 = vmul.f32 %v441_v28, %v383_v40  ;;  %v486_v43 = vmul.f32 %v461_v32, %v407_v41  ;;  %v385_v44 = vpop.f32.mrb[1].mxu0  ;;  %v409_v45 = vpop.f32.mrb[1].mxu1 }
  0xf0   : > { %v479_v47 = vmul.f32 %v441_v28, %v385_v44  ;;  %v487_v48 = vmul.f32 %v461_v32, %v409_v45  ;;  %v540_v32 = vpop.permute.xlu1 %539 }
  0xf1   : > { %v542_v49 = vadd.f32 %v505_v36, %v478_v42  ;;  %v550_v50 = vadd.f32 %v525_v46, %v486_v43 }
  0xf2   : > { %v543_v51 = vadd.f32 %v505_v36, %v479_v47  ;;  %v551_v52 = vadd.f32 %v525_v46, %v487_v48  ;;  %v389_v53 = vpop.f32.mrb[2].mxu0  ;;  %v413_v54 = vpop.f32.mrb[2].mxu1 }
  0xf3   : > { %v558_v55 = vmax.f32 %v542_v49, 0.0  ;;  %v566_v56 = vmax.f32 %v550_v50, 0.0  ;;  %v480_v57 = vmul.f32 %v446_v30, %v389_v53  ;;  %v488_v58 = vmul.f32 %v466_v33, %v413_v54  ;;  %v391_v59 = vpop.f32.mrb[3].mxu0  ;;  %v415_v60 = vpop.f32.mrb[3].mxu1 }
  0xf4   : > { %v559_v62 = vmax.f32 %v543_v51, 0.0  ;;  %v567_v63 = vmax.f32 %v551_v52, 0.0  ;;  %v481_v0 = vmul.f32 %v446_v30, %v391_v59  ;;  %v489_v1 = vmul.f32 %v466_v33, %v415_v60 }
  0xf5   : > { %574 = vst [vmem:[%s1032_s15] sm:$0xff] %v558_v55  ;;  %582 = vst [vmem:[%s1032_s15 + $0x40] sm:$0xff] %v566_v56  ;;  %v544_v2 = vadd.f32 %v510_v37, %v480_v57  ;;  %v552_v3 = vadd.f32 %v530_v61, %v488_v58 }
  0xf6   : > { %575 = vst [vmem:[%s1032_s15 + $0x8] sm:$0xff] %v559_v62  ;;  %583 = vst [vmem:[%s1032_s15 + $0x48] sm:$0xff] %v567_v63  ;;  %v545_v4 = vadd.f32 %v510_v37, %v481_v0  ;;  %v553_v5 = vadd.f32 %v530_v61, %v489_v1  ;;  %v395_v6 = vpop.f32.mrb[4].mxu0  ;;  %v419_v7 = vpop.f32.mrb[4].mxu1 }
  0xf7   : > { %v560_v8 = vmax.f32 %v544_v2, 0.0  ;;  %v568_v9 = vmax.f32 %v552_v3, 0.0  ;;  %v482_v10 = vmul.f32 %v451_v29, %v395_v6  ;;  %v490_v11 = vmul.f32 %v471_v34, %v419_v7  ;;  %v397_v12 = vpop.f32.mrb[5].mxu0  ;;  %v421_v13 = vpop.f32.mrb[5].mxu1 }
  0xf8   : > { %v561_v15 = vmax.f32 %v545_v4, 0.0  ;;  %v569_v16 = vmax.f32 %v553_v5, 0.0  ;;  %v483_v17 = vmul.f32 %v451_v29, %v397_v12  ;;  %v491_v18 = vmul.f32 %v471_v34, %v421_v13 }
  0xf9   : > { %576 = vst [vmem:[%s1032_s15 + $0x10] sm:$0xff] %v560_v8  ;;  %584 = vst [vmem:[%s1032_s15 + $0x50] sm:$0xff] %v568_v9  ;;  %v546_v19 = vadd.f32 %v515_v38, %v482_v10  ;;  %v554_v20 = vadd.f32 %v535_v14, %v490_v11 }
  0xfa   : > { %577 = vst [vmem:[%s1032_s15 + $0x18] sm:$0xff] %v561_v15  ;;  %585 = vst [vmem:[%s1032_s15 + $0x58] sm:$0xff] %v569_v16  ;;  %v547_v21 = vadd.f32 %v515_v38, %v483_v17  ;;  %v555_v22 = vadd.f32 %v535_v14, %v491_v18  ;;  %v401_v23 = vpop.f32.mrb[6].mxu0  ;;  %v425_v24 = vpop.f32.mrb[6].mxu1 }
  0xfb   : > { %v562_v25 = vmax.f32 %v546_v19, 0.0  ;;  %v570_v26 = vmax.f32 %v554_v20, 0.0  ;;  %v484_v27 = vmul.f32 %v1025_v31, %v401_v23  ;;  %v492_v28 = vmul.f32 %v1027_v35, %v425_v24  ;;  %v403_v29 = vpop.f32.mrb[7].mxu0  ;;  %v427_v30 = vpop.f32.mrb[7].mxu1 }
  0xfc   : > { %v563_v33 = vmax.f32 %v547_v21, 0.0  ;;  %v571_v34 = vmax.f32 %v555_v22, 0.0  ;;  %v485_v36 = vmul.f32 %v1025_v31, %v403_v29  ;;  %v493_v37 = vmul.f32 %v1027_v35, %v427_v30  ;;  %596 = sbr.rel (!%p930_p3) target bundleno = 268 (0x10c), region = 40  ;;  %v615_v31 = vld [vmem:[%s1032_s15] sm:$0xff] (%p930_p3) }
  0xfd   : > { %578 = vst [vmem:[%s1032_s15 + $0x20] sm:$0xff] %v562_v25  ;;  %586 = vst [vmem:[%s1032_s15 + $0x60] sm:$0xff] %v570_v26  ;;  %v548_v38 = vadd.f32 %v1030_v39, %v484_v27  ;;  %v556_v40 = vadd.f32 %v540_v32, %v492_v28  ;;  %v617_v35 = vld [vmem:[%s1032_s15 + $0x8] sm:$0xff] (%p930_p3)  ;;  %v631_v52 = vld [vmem:[%s1032_s15 + $0x40] sm:$0xff] (%p930_p3) }
  0xfe   : > { %579 = vst [vmem:[%s1032_s15 + $0x28] sm:$0xff] %v563_v33  ;;  %587 = vst [vmem:[%s1032_s15 + $0x68] sm:$0xff] %v571_v34  ;;  %v549_v41 = vadd.f32 %v1030_v39, %v485_v36  ;;  %v557_v42 = vadd.f32 %v540_v32, %v493_v37  ;;  %v633_v53 = vld [vmem:[%s1032_s15 + $0x48] sm:$0xff] (%p930_p3) }
  0xff   : > { %v564_v43 = vmax.f32 %v548_v38, 0.0  ;;  %v572_v44 = vmax.f32 %v556_v40, 0.0  ;;  %616 = vst [vmem:[%s602_s30] sm:$0xff] (%p930_p3), %v615_v31  ;;  %618 = vst [vmem:[%s602_s30 + $0x8] sm:$0xff] (%p930_p3), %v617_v35 }
 0x100   : > { %v565_v45 = vmax.f32 %v549_v41, 0.0  ;;  %v573_v46 = vmax.f32 %v557_v42, 0.0  ;;  %v619_v39 = vld [vmem:[%s1032_s15 + $0x10] sm:$0xff] (%p930_p3)  ;;  %632 = vst [vmem:[%s602_s30 + $0x80] sm:$0xff] (%p930_p3), %v631_v52  ;;  %634 = vst [vmem:[%s602_s30 + $0x88] sm:$0xff] (%p930_p3), %v633_v53 }
 0x101   : > { %580 = vst [vmem:[%s1032_s15 + $0x30] sm:$0xff] %v564_v43  ;;  %588 = vst [vmem:[%s1032_s15 + $0x70] sm:$0xff] %v572_v44  ;;  %v621_v47 = vld [vmem:[%s1032_s15 + $0x18] sm:$0xff] (%p930_p3)  ;;  %v635_v54 = vld [vmem:[%s1032_s15 + $0x50] sm:$0xff] (%p930_p3) }
 0x102   : > { %581 = vst [vmem:[%s1032_s15 + $0x38] sm:$0xff] %v565_v45  ;;  %589 = vst [vmem:[%s1032_s15 + $0x78] sm:$0xff] %v573_v46  ;;  %v637_v55 = vld [vmem:[%s1032_s15 + $0x58] sm:$0xff] (%p930_p3) }
 0x103   : > { %620 = vst [vmem:[%s602_s30 + $0x20] sm:$0xff] %v619_v39  ;;  %622 = vst [vmem:[%s602_s30 + $0x28] sm:$0xff] %v621_v47 }
 0x104   : > { %v623_v48 = vld [vmem:[%s1032_s15 + $0x20] sm:$0xff]  ;;  %636 = vst [vmem:[%s602_s30 + $0xa0] sm:$0xff] %v635_v54  ;;  %638 = vst [vmem:[%s602_s30 + $0xa8] sm:$0xff] %v637_v55 }
 0x105   : > { %v625_v49 = vld [vmem:[%s1032_s15 + $0x28] sm:$0xff]  ;;  %624 = vst [vmem:[%s602_s30 + $0x40] sm:$0xff] %v623_v48  ;;  %v639_v56 = vld [vmem:[%s1032_s15 + $0x60] sm:$0xff] }
 0x106   : > { %626 = vst [vmem:[%s602_s30 + $0x48] sm:$0xff] %v625_v49  ;;  %v641_v57 = vld [vmem:[%s1032_s15 + $0x68] sm:$0xff]  ;;  %640 = vst [vmem:[%s602_s30 + $0xc0] sm:$0xff] %v639_v56 }
 0x107   : > { %642 = vst [vmem:[%s602_s30 + $0xc8] sm:$0xff] %v641_v57 }
 0x108   : > { %v627_v50 = vld [vmem:[%s1032_s15 + $0x30] sm:$0xff] }
 0x109   : > { %v629_v51 = vld [vmem:[%s1032_s15 + $0x38] sm:$0xff]  ;;  %628 = vst [vmem:[%s602_s30 + $0x60] sm:$0xff] %v627_v50  ;;  %v643_v58 = vld [vmem:[%s1032_s15 + $0x70] sm:$0xff] }
 0x10a   : > { %630 = vst [vmem:[%s602_s30 + $0x68] sm:$0xff] %v629_v51  ;;  %644 = vst [vmem:[%s602_s30 + $0xe0] sm:$0xff] %v643_v58  ;;  %v645_v59 = vld [vmem:[%s1032_s15 + $0x78] sm:$0xff] }
 0x10b   : > { %646 = vst [vmem:[%s602_s30 + $0xe8] sm:$0xff] %v645_v59 }
 0x10c PF: > { %s14_s19 = sadd.s32 1, %s869_s19   ;;  %s1099_s15 = smov %s857_s16 }
 0x10d   : > { %p11_p9 = scmp.ge.s32.totalorder %s14_s19, 4   ;;  %s1100_s16 = smov %s939_s25 }
 0x10e   : > { %s1101_s17 = smov %s865_s18  ;;  %s1102_s18 = smov %s1104_s21 }
 0x10f   :  { %13 = sbr.rel (!%p11_p9) target bundleno = 3 (0x3), region = 98 }

// kernel: inception_b_forward.7
= control target key start
LH: loop header
LB: loop body
LE: loop exit
PB: predicated region body
PF: predicated region fallthrough
CT: control target
= control target key end

     0   :  { %s2007_s15 = smov 0   ;;  %s2009_s16 = smov 0   ;;  %s2989_s0 = inlined_call_operand.vmem [shape: f32[576,512], index: 0, kind: input, shape index: {}]   ;;  %s2990_s1 = inlined_call_operand.vmem [shape: f32[96,576], index: 1, kind: input, shape index: {}]   ;;  %s2991_s2 = inlined_call_operand.vmem [shape: f32[96,1], index: 2, kind: input, shape index: {}]   ;;  %s2992_s3 = inlined_call_operand.vmem [shape: f32[96,1], index: 3, kind: input, shape index: {}]   ;;  %s2993_s4 = inlined_call_operand.vmem [shape: f32[96,512], index: 4, kind: output, shape index: {}]  }
   0x1   :  { %s2011_s17 = smov 0   ;;  %s2013_s18 = smov 0  }
   0x2   :  { %s2015_s19 = smov 0  }
   0x3 LB: > { %s23_s20 = sadd.s32 1, %s1974_s18  ;;  %s1665_s21 = sadd.s32 4294967295, %s1978_s19   ;;  %s1978_s19 = sphi %s2015_s19, %s14_s19   ;;  %s1974_s18 = sphi %s2013_s18, %s2998_s18   ;;  %s1970_s17 = sphi %s2011_s17, %s2997_s17   ;;  %s1966_s16 = sphi %s2009_s16, %s2996_s16   ;;  %s1962_s15 = sphi %s2007_s15, %s2995_s15  }
   0x4   : > { %p24_p0 = scmp.ge.s32.totalorder %s23_s20, 2  ;;  %p40_p1 = scmp.ne.s32.totalorder %s1966_s16, %s1962_s15 }
   0x5   : > { %p41_p2 = scmp.eq.s32.totalorder %s1978_s19, 0  ;;  %p150_p4 = scmp.eq.s32.totalorder %s1665_s21, 1 }
   0x6   : > { %s3000_s20 = smov (%p24_p0, %s23_s20), 0  ;;  %s33_s23 = sadd.s32 1, %s1966_s16 }
   0x7   : > { %p42_p3 = por %p41_p2, %p40_p1  ;;  %s30_s22 = ssub.s32 %s1974_s18, %s3000_s20 }
   0x8   : > { %p31_p5 = scmp.eq.s32.totalorder %s30_s22, 0  ;;  %p2042_p6 = por %p150_p4, %p40_p1 }
   0x9   : > { %p1671_p7 = scmp.ge.s32.totalorder %s1978_s19, 2 }
   0xa   : > { %s2047_s25 = scalar_select %p31_p5, %s1966_s16, %s33_s23  }
   0xb   : > { %200 = sbr.rel (%p1671_p7) target bundleno = 94 (0x5e), region = 28 }
  0x12   : > { %203 = sbr.rel (!%p42_p3) target bundleno = 94 (0x5e), region = 32  ;;  %s205_s26 = sand.u32 (%p42_p3), 1, %s1966_s16  }
  0x13   : > { %s1691_s27 = sshll.u32 (%p42_p3), %s1974_s18, 4  ;;  %s1893_s28 = smul.u32 (%p42_p3), 1152, %s205_s26 }
  0x14   : > { %s2055_s5 = scalar_lea.vmem (%p42_p3), %s2989_s0, %s1691_s27 }
  0x15   : > { %v223_v0 = vld [vmem:[%s2055_s5] sm:$0xff] (%p42_p3)  ;;  %v225_v1 = vld [vmem:[%s2055_s5 + $0x8] sm:$0xff] (%p42_p3)  ;;  %s2063_s6 = scalar_lea.vmem (%p42_p3), [#allocation2], %s1893_s28 }
  0x16   : > { %v227_v2 = vld [vmem:[%s2055_s5 + $0x20] sm:$0xff] (%p42_p3)  ;;  %v229_v3 = vld [vmem:[%s2055_s5 + $0x28] sm:$0xff] (%p42_p3)  ;;  %224 = vst [vmem:[%s2063_s6] sm:$0xff] (%p42_p3), %v223_v0  ;;  %226 = vst [vmem:[%s2063_s6 + $0x8] sm:$0xff] (%p42_p3), %v225_v1 }
  0x17   : > { %v231_v4 = vld [vmem:[%s2055_s5 + $0x40] sm:$0xff] (%p42_p3)  ;;  %v233_v5 = vld [vmem:[%s2055_s5 + $0x48] sm:$0xff] (%p42_p3)  ;;  %228 = vst [vmem:[%s2063_s6 + $0x10] sm:$0xff] (%p42_p3), %v227_v2  ;;  %230 = vst [vmem:[%s2063_s6 + $0x18] sm:$0xff] (%p42_p3), %v229_v3 }
  0x18   : > { %232 = vst [vmem:[%s2063_s6 + $0x20] sm:$0xff] (%p42_p3), %v231_v4  ;;  %234 = vst [vmem:[%s2063_s6 + $0x28] sm:$0xff] (%p42_p3), %v233_v5  ;;  %v235_v6 = vld [vmem:[%s2055_s5 + $0x60] sm:$0xff] (%p42_p3)  ;;  %v237_v7 = vld [vmem:[%s2055_s5 + $0x68] sm:$0xff] (%p42_p3) }
  0x19   : > { %v239_v8 = vld [vmem:[%s2055_s5 + $0x80] sm:$0xff]  ;;  %236 = vst [vmem:[%s2063_s6 + $0x30] sm:$0xff] %v235_v6  ;;  %238 = vst [vmem:[%s2063_s6 + $0x38] sm:$0xff] %v237_v7  ;;  %v241_v9 = vld [vmem:[%s2055_s5 + $0x88] sm:$0xff] }
  0x1a   : > { %240 = vst [vmem:[%s2063_s6 + $0x40] sm:$0xff] %v239_v8  ;;  %v243_v10 = vld [vmem:[%s2055_s5 + $0xa0] sm:$0xff]  ;;  %v245_v11 = vld [vmem:[%s2055_s5 + $0xa8] sm:$0xff]  ;;  %242 = vst [vmem:[%s2063_s6 + $0x48] sm:$0xff] %v241_v9 }
  0x1b   : > { %244 = vst [vmem:[%s2063_s6 + $0x50] sm:$0xff] %v243_v10  ;;  %246 = vst [vmem:[%s2063_s6 + $0x58] sm:$0xff] %v245_v11  ;;  %v247_v12 = vld [vmem:[%s2055_s5 + $0xc0] sm:$0xff]  ;;  %v249_v13 = vld [vmem:[%s2055_s5 + $0xc8] sm:$0xff] }
  0x1c   : > { %v251_v14 = vld [vmem:[%s2055_s5 + $0xe0] sm:$0xff]  ;;  %248 = vst [vmem:[%s2063_s6 + $0x60] sm:$0xff] %v247_v12  ;;  %250 = vst [vmem:[%s2063_s6 + $0x68] sm:$0xff] %v249_v13  ;;  %v253_v15 = vld [vmem:[%s2055_s5 + $0xe8] sm:$0xff] }
  0x1d   : > { %252 = vst [vmem:[%s2063_s6 + $0x70] sm:$0xff] %v251_v14  ;;  %v255_v16 = vld [vmem:[%s2055_s5 + $0x100] sm:$0xff]  ;;  %v257_v17 = vld [vmem:[%s2055_s5 + $0x108] sm:$0xff]  ;;  %254 = vst [vmem:[%s2063_s6 + $0x78] sm:$0xff] %v253_v15 }
  0x1e   : > { %256 = vst [vmem:[%s2063_s6 + $0x80] sm:$0xff] %v255_v16  ;;  %258 = vst [vmem:[%s2063_s6 + $0x88] sm:$0xff] %v257_v17  ;;  %v259_v18 = vld [vmem:[%s2055_s5 + $0x120] sm:$0xff]  ;;  %v261_v19 = vld [vmem:[%s2055_s5 + $0x128] sm:$0xff] }
  0x1f   : > { %v263_v20 = vld [vmem:[%s2055_s5 + $0x140] sm:$0xff]  ;;  %260 = vst [vmem:[%s2063_s6 + $0x90] sm:$0xff] %v259_v18  ;;  %262 = vst [vmem:[%s2063_s6 + $0x98] sm:$0xff] %v261_v19  ;;  %v265_v21 = vld [vmem:[%s2055_s5 + $0x148] sm:$0xff] }
  0x20   : > { %264 = vst [vmem:[%s2063_s6 + $0xa0] sm:$0xff] %v263_v20  ;;  %v267_v22 = vld [vmem:[%s2055_s5 + $0x160] sm:$0xff]  ;;  %v269_v23 = vld [vmem:[%s2055_s5 + $0x168] sm:$0xff]  ;;  %266 = vst [vmem:[%s2063_s6 + $0xa8] sm:$0xff] %v265_v21 }
  0x21   : > { %268 = vst [vmem:[%s2063_s6 + $0xb0] sm:$0xff] %v267_v22  ;;  %270 = vst [vmem:[%s2063_s6 + $0xb8] sm:$0xff] %v269_v23  ;;  %v271_v24 = vld [vmem:[%s2055_s5 + $0x180] sm:$0xff]  ;;  %v273_v25 = vld [vmem:[%s2055_s5 + $0x188] sm:$0xff] }
  0x22   : > { %v275_v26 = vld [vmem:[%s2055_s5 + $0x1a0] sm:$0xff]  ;;  %272 = vst [vmem:[%s2063_s6 + $0xc0] sm:$0xff] %v271_v24  ;;  %274 = vst [vmem:[%s2063_s6 + $0xc8] sm:$0xff] %v273_v25  ;;  %v277_v27 = vld [vmem:[%s2055_s5 + $0x1a8] sm:$0xff] }
  0x23   : > { %276 = vst [vmem:[%s2063_s6 + $0xd0] sm:$0xff] %v275_v26  ;;  %v279_v28 = vld [vmem:[%s2055_s5 + $0x1c0] sm:$0xff]  ;;  %v281_v29 = vld [vmem:[%s2055_s5 + $0x1c8] sm:$0xff]  ;;  %278 = vst [vmem:[%s2063_s6 + $0xd8] sm:$0xff] %v277_v27 }
  0x24   : > { %280 = vst [vmem:[%s2063_s6 + $0xe0] sm:$0xff] %v279_v28  ;;  %282 = vst [vmem:[%s2063_s6 + $0xe8] sm:$0xff] %v281_v29  ;;  %v283_v30 = vld [vmem:[%s2055_s5 + $0x1e0] sm:$0xff]  ;;  %v285_v31 = vld [vmem:[%s2055_s5 + $0x1e8] sm:$0xff] }
  0x25   : > { %v287_v32 = vld [vmem:[%s2055_s5 + $0x200] sm:$0xff]  ;;  %284 = vst [vmem:[%s2063_s6 + $0xf0] sm:$0xff] %v283_v30  ;;  %286 = vst [vmem:[%s2063_s6 + $0xf8] sm:$0xff] %v285_v31  ;;  %v289_v33 = vld [vmem:[%s2055_s5 + $0x208] sm:$0xff] }
  0x26   : > { %288 = vst [vmem:[%s2063_s6 + $0x100] sm:$0xff] %v287_v32  ;;  %v291_v34 = vld [vmem:[%s2055_s5 + $0x220] sm:$0xff]  ;;  %v293_v35 = vld [vmem:[%s2055_s5 + $0x228] sm:$0xff]  ;;  %290 = vst [vmem:[%s2063_s6 + $0x108] sm:$0xff] %v289_v33 }
  0x27   : > { %292 = vst [vmem:[%s2063_s6 + $0x110] sm:$0xff] %v291_v34  ;;  %294 = vst [vmem:[%s2063_s6 + $0x118] sm:$0xff] %v293_v35  ;;  %v295_v36 = vld [vmem:[%s2055_s5 + $0x240] sm:$0xff]  ;;  %v297_v37 = vld [vmem:[%s2055_s5 + $0x248] sm:$0xff] }
  0x28   : > { %v299_v38 = vld [vmem:[%s2055_s5 + $0x260] sm:$0xff]  ;;  %296 = vst [vmem:[%s2063_s6 + $0x120] sm:$0xff] %v295_v36  ;;  %298 = vst [vmem:[%s2063_s6 + $0x128] sm:$0xff] %v297_v37  ;;  %v301_v39 = vld [vmem:[%s2055_s5 + $0x268] sm:$0xff] }
  0x29   : > { %300 = vst [vmem:[%s2063_s6 + $0x130] sm:$0xff] %v299_v38  ;;  %v303_v40 = vld [vmem:[%s2055_s5 + $0x280] sm:$0xff]  ;;  %v305_v41 = vld [vmem:[%s2055_s5 + $0x288] sm:$0xff]  ;;  %302 = vst [vmem:[%s2063_s6 + $0x138] sm:$0xff] %v301_v39 }
  0x2a   : > { %304 = vst [vmem:[%s2063_s6 + $0x140] sm:$0xff] %v303_v40  ;;  %306 = vst [vmem:[%s2063_s6 + $0x148] sm:$0xff] %v305_v41  ;;  %v307_v42 = vld [vmem:[%s2055_s5 + $0x2a0] sm:$0xff]  ;;  %v309_v43 = vld [vmem:[%s2055_s5 + $0x2a8] sm:$0xff] }
  0x2b   : > { %v311_v44 = vld [vmem:[%s2055_s5 + $0x2c0] sm:$0xff]  ;;  %308 = vst [vmem:[%s2063_s6 + $0x150] sm:$0xff] %v307_v42  ;;  %310 = vst [vmem:[%s2063_s6 + $0x158] sm:$0xff] %v309_v43  ;;  %v313_v45 = vld [vmem:[%s2055_s5 + $0x2c8] sm:$0xff] }
  0x2c   : > { %312 = vst [vmem:[%s2063_s6 + $0x160] sm:$0xff] %v311_v44  ;;  %v315_v46 = vld [vmem:[%s2055_s5 + $0x2e0] sm:$0xff]  ;;  %v317_v47 = vld [vmem:[%s2055_s5 + $0x2e8] sm:$0xff]  ;;  %314 = vst [vmem:[%s2063_s6 + $0x168] sm:$0xff] %v313_v45 }
  0x2d   : > { %316 = vst [vmem:[%s2063_s6 + $0x170] sm:$0xff] %v315_v46  ;;  %318 = vst [vmem:[%s2063_s6 + $0x178] sm:$0xff] %v317_v47  ;;  %v319_v48 = vld [vmem:[%s2055_s5 + $0x300] sm:$0xff]  ;;  %v321_v49 = vld [vmem:[%s2055_s5 + $0x308] sm:$0xff] }
  0x2e   : > { %v323_v50 = vld [vmem:[%s2055_s5 + $0x320] sm:$0xff]  ;;  %320 = vst [vmem:[%s2063_s6 + $0x180] sm:$0xff] %v319_v48  ;;  %322 = vst [vmem:[%s2063_s6 + $0x188] sm:$0xff] %v321_v49  ;;  %v325_v51 = vld [vmem:[%s2055_s5 + $0x328] sm:$0xff] }
  0x2f   : > { %324 = vst [vmem:[%s2063_s6 + $0x190] sm:$0xff] %v323_v50  ;;  %v327_v52 = vld [vmem:[%s2055_s5 + $0x340] sm:$0xff]  ;;  %v329_v53 = vld [vmem:[%s2055_s5 + $0x348] sm:$0xff]  ;;  %326 = vst [vmem:[%s2063_s6 + $0x198] sm:$0xff] %v325_v51 }
  0x30   : > { %328 = vst [vmem:[%s2063_s6 + $0x1a0] sm:$0xff] %v327_v52  ;;  %330 = vst [vmem:[%s2063_s6 + $0x1a8] sm:$0xff] %v329_v53  ;;  %v331_v54 = vld [vmem:[%s2055_s5 + $0x360] sm:$0xff]  ;;  %v333_v55 = vld [vmem:[%s2055_s5 + $0x368] sm:$0xff] }
  0x31   : > { %v335_v56 = vld [vmem:[%s2055_s5 + $0x380] sm:$0xff]  ;;  %332 = vst [vmem:[%s2063_s6 + $0x1b0] sm:$0xff] %v331_v54  ;;  %334 = vst [vmem:[%s2063_s6 + $0x1b8] sm:$0xff] %v333_v55  ;;  %v337_v57 = vld [vmem:[%s2055_s5 + $0x388] sm:$0xff] }
  0x32   : > { %336 = vst [vmem:[%s2063_s6 + $0x1c0] sm:$0xff] %v335_v56  ;;  %v339_v58 = vld [vmem:[%s2055_s5 + $0x3a0] sm:$0xff]  ;;  %v341_v59 = vld [vmem:[%s2055_s5 + $0x3a8] sm:$0xff]  ;;  %338 = vst [vmem:[%s2063_s6 + $0x1c8] sm:$0xff] %v337_v57 }
  0x33   : > { %340 = vst [vmem:[%s2063_s6 + $0x1d0] sm:$0xff] %v339_v58  ;;  %342 = vst [vmem:[%s2063_s6 + $0x1d8] sm:$0xff] %v341_v59  ;;  %v343_v60 = vld [vmem:[%s2055_s5 + $0x3c0] sm:$0xff]  ;;  %v345_v61 = vld [vmem:[%s2055_s5 + $0x3c8] sm:$0xff] }
  0x34   : > { %v347_v62 = vld [vmem:[%s2055_s5 + $0x3e0] sm:$0xff]  ;;  %344 = vst [vmem:[%s2063_s6 + $0x1e0] sm:$0xff] %v343_v60  ;;  %346 = vst [vmem:[%s2063_s6 + $0x1e8] sm:$0xff] %v345_v61  ;;  %v349_v63 = vld [vmem:[%s2055_s5 + $0x3e8] sm:$0xff] }
  0x35   : > { %348 = vst [vmem:[%s2063_s6 + $0x1f0] sm:$0xff] %v347_v62  ;;  %v351_v0 = vld [vmem:[%s2055_s5 + $0x400] sm:$0xff]  ;;  %v353_v1 = vld [vmem:[%s2055_s5 + $0x408] sm:$0xff]  ;;  %350 = vst [vmem:[%s2063_s6 + $0x1f8] sm:$0xff] %v349_v63 }
  0x36   : > { %352 = vst [vmem:[%s2063_s6 + $0x200] sm:$0xff] %v351_v0  ;;  %354 = vst [vmem:[%s2063_s6 + $0x208] sm:$0xff] %v353_v1  ;;  %v355_v2 = vld [vmem:[%s2055_s5 + $0x420] sm:$0xff]  ;;  %v357_v3 = vld [vmem:[%s2055_s5 + $0x428] sm:$0xff] }
  0x37   : > { %v359_v4 = vld [vmem:[%s2055_s5 + $0x440] sm:$0xff]  ;;  %356 = vst [vmem:[%s2063_s6 + $0x210] sm:$0xff] %v355_v2  ;;  %358 = vst [vmem:[%s2063_s6 + $0x218] sm:$0xff] %v357_v3  ;;  %v361_v5 = vld [vmem:[%s2055_s5 + $0x448] sm:$0xff] }
  0x38   : > { %360 = vst [vmem:[%s2063_s6 + $0x220] sm:$0xff] %v359_v4  ;;  %v363_v6 = vld [vmem:[%s2055_s5 + $0x460] sm:$0xff]  ;;  %v365_v7 = vld [vmem:[%s2055_s5 + $0x468] sm:$0xff]  ;;  %362 = vst [vmem:[%s2063_s6 + $0x228] sm:$0xff] %v361_v5 }
  0x39   : > { %364 = vst [vmem:[%s2063_s6 + $0x230] sm:$0xff] %v363_v6  ;;  %366 = vst [vmem:[%s2063_s6 + $0x238] sm:$0xff] %v365_v7  ;;  %v367_v8 = vld [vmem:[%s2055_s5 + $0x480] sm:$0xff]  ;;  %v369_v9 = vld [vmem:[%s2055_s5 + $0x488] sm:$0xff] }
  0x3a   : > { %v371_v10 = vld [vmem:[%s2055_s5 + $0x4a0] sm:$0xff]  ;;  %368 = vst [vmem:[%s2063_s6 + $0x240] sm:$0xff] %v367_v8  ;;  %370 = vst [vmem:[%s2063_s6 + $0x248] sm:$0xff] %v369_v9  ;;  %v373_v11 = vld [vmem:[%s2055_s5 + $0x4a8] sm:$0xff] }
  0x3b   : > { %372 = vst [vmem:[%s2063_s6 + $0x250] sm:$0xff] %v371_v10  ;;  %v375_v12 = vld [vmem:[%s2055_s5 + $0x4c0] sm:$0xff]  ;;  %v377_v13 = vld [vmem:[%s2055_s5 + $0x4c8] sm:$0xff]  ;;  %374 = vst [vmem:[%s2063_s6 + $0x258] sm:$0xff] %v373_v11 }
  0x3c   : > { %376 = vst [vmem:[%s2063_s6 + $0x260] sm:$0xff] %v375_v12  ;;  %378 = vst [vmem:[%s2063_s6 + $0x268] sm:$0xff] %v377_v13  ;;  %v379_v14 = vld [vmem:[%s2055_s5 + $0x4e0] sm:$0xff]  ;;  %v381_v15 = vld [vmem:[%s2055_s5 + $0x4e8] sm:$0xff] }
  0x3d   : > { %v383_v16 = vld [vmem:[%s2055_s5 + $0x500] sm:$0xff]  ;;  %380 = vst [vmem:[%s2063_s6 + $0x270] sm:$0xff] %v379_v14  ;;  %382 = vst [vmem:[%s2063_s6 + $0x278] sm:$0xff] %v381_v15  ;;  %v385_v17 = vld [vmem:[%s2055_s5 + $0x508] sm:$0xff] }
  0x3e   : > { %384 = vst [vmem:[%s2063_s6 + $0x280] sm:$0xff] %v383_v16  ;;  %v387_v18 = vld [vmem:[%s2055_s5 + $0x520] sm:$0xff]  ;;  %v389_v19 = vld [vmem:[%s2055_s5 + $0x528] sm:$0xff]  ;;  %386 = vst [vmem:[%s2063_s6 + $0x288] sm:$0xff] %v385_v17 }
  0x3f   : > { %388 = vst [vmem:[%s2063_s6 + $0x290] sm:$0xff] %v387_v18  ;;  %390 = vst [vmem:[%s2063_s6 + $0x298] sm:$0xff] %v389_v19  ;;  %v391_v20 = vld [vmem:[%s2055_s5 + $0x540] sm:$0xff]  ;;  %v393_v21 = vld [vmem:[%s2055_s5 + $0x548] sm:$0xff] }
  0x40   : > { %v395_v22 = vld [vmem:[%s2055_s5 + $0x560] sm:$0xff]  ;;  %392 = vst [vmem:[%s2063_s6 + $0x2a0] sm:$0xff] %v391_v20  ;;  %394 = vst [vmem:[%s2063_s6 + $0x2a8] sm:$0xff] %v393_v21  ;;  %v397_v23 = vld [vmem:[%s2055_s5 + $0x568] sm:$0xff] }
  0x41   : > { %396 = vst [vmem:[%s2063_s6 + $0x2b0] sm:$0xff] %v395_v22  ;;  %v399_v24 = vld [vmem:[%s2055_s5 + $0x580] sm:$0xff]  ;;  %v401_v25 = vld [vmem:[%s2055_s5 + $0x588] sm:$0xff]  ;;  %398 = vst [vmem:[%s2063_s6 + $0x2b8] sm:$0xff] %v397_v23 }
  0x42   : > { %400 = vst [vmem:[%s2063_s6 + $0x2c0] sm:$0xff] %v399_v24  ;;  %402 = vst [vmem:[%s2063_s6 + $0x2c8] sm:$0xff] %v401_v25  ;;  %v403_v26 = vld [vmem:[%s2055_s5 + $0x5a0] sm:$0xff]  ;;  %v405_v27 = vld [vmem:[%s2055_s5 + $0x5a8] sm:$0xff] }
  0x43   : > { %v407_v28 = vld [vmem:[%s2055_s5 + $0x5c0] sm:$0xff]  ;;  %404 = vst [vmem:[%s2063_s6 + $0x2d0] sm:$0xff] %v403_v26  ;;  %406 = vst [vmem:[%s2063_s6 + $0x2d8] sm:$0xff] %v405_v27  ;;  %v409_v29 = vld [vmem:[%s2055_s5 + $0x5c8] sm:$0xff] }
  0x44   : > { %408 = vst [vmem:[%s2063_s6 + $0x2e0] sm:$0xff] %v407_v28  ;;  %v411_v30 = vld [vmem:[%s2055_s5 + $0x5e0] sm:$0xff]  ;;  %v413_v31 = vld [vmem:[%s2055_s5 + $0x5e8] sm:$0xff]  ;;  %410 = vst [vmem:[%s2063_s6 + $0x2e8] sm:$0xff] %v409_v29 }
  0x45   : > { %412 = vst [vmem:[%s2063_s6 + $0x2f0] sm:$0xff] %v411_v30  ;;  %414 = vst [vmem:[%s2063_s6 + $0x2f8] sm:$0xff] %v413_v31  ;;  %v415_v32 = vld [vmem:[%s2055_s5 + $0x600] sm:$0xff]  ;;  %v417_v33 = vld [vmem:[%s2055_s5 + $0x608] sm:$0xff] }
  0x46   : > { %v419_v34 = vld [vmem:[%s2055_s5 + $0x620] sm:$0xff]  ;;  %416 = vst [vmem:[%s2063_s6 + $0x300] sm:$0xff] %v415_v32  ;;  %418 = vst [vmem:[%s2063_s6 + $0x308] sm:$0xff] %v417_v33  ;;  %v421_v35 = vld [vmem:[%s2055_s5 + $0x628] sm:$0xff] }
  0x47   : > { %420 = vst [vmem:[%s2063_s6 + $0x310] sm:$0xff] %v419_v34  ;;  %v423_v36 = vld [vmem:[%s2055_s5 + $0x640] sm:$0xff]  ;;  %v425_v37 = vld [vmem:[%s2055_s5 + $0x648] sm:$0xff]  ;;  %422 = vst [vmem:[%s2063_s6 + $0x318] sm:$0xff] %v421_v35 }
  0x48   : > { %424 = vst [vmem:[%s2063_s6 + $0x320] sm:$0xff] %v423_v36  ;;  %426 = vst [vmem:[%s2063_s6 + $0x328] sm:$0xff] %v425_v37  ;;  %v427_v38 = vld [vmem:[%s2055_s5 + $0x660] sm:$0xff]  ;;  %v429_v39 = vld [vmem:[%s2055_s5 + $0x668] sm:$0xff] }
  0x49   : > { %v431_v40 = vld [vmem:[%s2055_s5 + $0x680] sm:$0xff]  ;;  %428 = vst [vmem:[%s2063_s6 + $0x330] sm:$0xff] %v427_v38  ;;  %430 = vst [vmem:[%s2063_s6 + $0x338] sm:$0xff] %v429_v39  ;;  %v433_v41 = vld [vmem:[%s2055_s5 + $0x688] sm:$0xff] }
  0x4a   : > { %432 = vst [vmem:[%s2063_s6 + $0x340] sm:$0xff] %v431_v40  ;;  %v435_v42 = vld [vmem:[%s2055_s5 + $0x6a0] sm:$0xff]  ;;  %v437_v43 = vld [vmem:[%s2055_s5 + $0x6a8] sm:$0xff]  ;;  %434 = vst [vmem:[%s2063_s6 + $0x348] sm:$0xff] %v433_v41 }
  0x4b   : > { %436 = vst [vmem:[%s2063_s6 + $0x350] sm:$0xff] %v435_v42  ;;  %438 = vst [vmem:[%s2063_s6 + $0x358] sm:$0xff] %v437_v43  ;;  %v439_v44 = vld [vmem:[%s2055_s5 + $0x6c0] sm:$0xff]  ;;  %v441_v45 = vld [vmem:[%s2055_s5 + $0x6c8] sm:$0xff] }
  0x4c   : > { %v443_v46 = vld [vmem:[%s2055_s5 + $0x6e0] sm:$0xff]  ;;  %440 = vst [vmem:[%s2063_s6 + $0x360] sm:$0xff] %v439_v44  ;;  %442 = vst [vmem:[%s2063_s6 + $0x368] sm:$0xff] %v441_v45  ;;  %v445_v47 = vld [vmem:[%s2055_s5 + $0x6e8] sm:$0xff] }
  0x4d   : > { %444 = vst [vmem:[%s2063_s6 + $0x370] sm:$0xff] %v443_v46  ;;  %v447_v48 = vld [vmem:[%s2055_s5 + $0x700] sm:$0xff]  ;;  %v449_v49 = vld [vmem:[%s2055_s5 + $0x708] sm:$0xff]  ;;  %446 = vst [vmem:[%s2063_s6 + $0x378] sm:$0xff] %v445_v47 }
  0x4e   : > { %448 = vst [vmem:[%s2063_s6 + $0x380] sm:$0xff] %v447_v48  ;;  %450 = vst [vmem:[%s2063_s6 + $0x388] sm:$0xff] %v449_v49  ;;  %v451_v50 = vld [vmem:[%s2055_s5 + $0x720] sm:$0xff]  ;;  %v453_v51 = vld [vmem:[%s2055_s5 + $0x728] sm:$0xff] }
  0x4f   : > { %v455_v52 = vld [vmem:[%s2055_s5 + $0x740] sm:$0xff]  ;;  %452 = vst [vmem:[%s2063_s6 + $0x390] sm:$0xff] %v451_v50  ;;  %454 = vst [vmem:[%s2063_s6 + $0x398] sm:$0xff] %v453_v51  ;;  %v457_v53 = vld [vmem:[%s2055_s5 + $0x748] sm:$0xff] }
  0x50   : > { %456 = vst [vmem:[%s2063_s6 + $0x3a0] sm:$0xff] %v455_v52  ;;  %v459_v54 = vld [vmem:[%s2055_s5 + $0x760] sm:$0xff]  ;;  %v461_v55 = vld [vmem:[%s2055_s5 + $0x768] sm:$0xff]  ;;  %458 = vst [vmem:[%s2063_s6 + $0x3a8] sm:$0xff] %v457_v53 }
  0x51   : > { %460 = vst [vmem:[%s2063_s6 + $0x3b0] sm:$0xff] %v459_v54  ;;  %462 = vst [vmem:[%s2063_s6 + $0x3b8] sm:$0xff] %v461_v55  ;;  %v463_v56 = vld [vmem:[%s2055_s5 + $0x780] sm:$0xff]  ;;  %v465_v57 = vld [vmem:[%s2055_s5 + $0x788] sm:$0xff] }
  0x52   : > { %v467_v58 = vld [vmem:[%s2055_s5 + $0x7a0] sm:$0xff]  ;;  %464 = vst [vmem:[%s2063_s6 + $0x3c0] sm:$0xff] %v463_v56  ;;  %466 = vst [vmem:[%s2063_s6 + $0x3c8] sm:$0xff] %v465_v57  ;;  %v469_v59 = vld [vmem:[%s2055_s5 + $0x7a8] sm:$0xff] }
  0x53   : > { %468 = vst [vmem:[%s2063_s6 + $0x3d0] sm:$0xff] %v467_v58  ;;  %v471_v60 = vld [vmem:[%s2055_s5 + $0x7c0] sm:$0xff]  ;;  %v473_v61 = vld [vmem:[%s2055_s5 + $0x7c8] sm:$0xff]  ;;  %470 = vst [vmem:[%s2063_s6 + $0x3d8] sm:$0xff] %v469_v59 }
  0x54   : > { %472 = vst [vmem:[%s2063_s6 + $0x3e0] sm:$0xff] %v471_v60  ;;  %474 = vst [vmem:[%s2063_s6 + $0x3e8] sm:$0xff] %v473_v61  ;;  %v475_v62 = vld [vmem:[%s2055_s5 + $0x7e0] sm:$0xff]  ;;  %v477_v63 = vld [vmem:[%s2055_s5 + $0x7e8] sm:$0xff] }
  0x55   : > { %v479_v0 = vld [vmem:[%s2055_s5 + $0x800] sm:$0xff]  ;;  %476 = vst [vmem:[%s2063_s6 + $0x3f0] sm:$0xff] %v475_v62  ;;  %478 = vst [vmem:[%s2063_s6 + $0x3f8] sm:$0xff] %v477_v63  ;;  %v481_v1 = vld [vmem:[%s2055_s5 + $0x808] sm:$0xff] }
  0x56   : > { %480 = vst [vmem:[%s2063_s6 + $0x400] sm:$0xff] %v479_v0  ;;  %v483_v2 = vld [vmem:[%s2055_s5 + $0x820] sm:$0xff]  ;;  %v485_v3 = vld [vmem:[%s2055_s5 + $0x828] sm:$0xff]  ;;  %482 = vst [vmem:[%s2063_s6 + $0x408] sm:$0xff] %v481_v1 }
  0x57   : > { %484 = vst [vmem:[%s2063_s6 + $0x410] sm:$0xff] %v483_v2  ;;  %486 = vst [vmem:[%s2063_s6 + $0x418] sm:$0xff] %v485_v3  ;;  %v487_v4 = vld [vmem:[%s2055_s5 + $0x840] sm:$0xff]  ;;  %v489_v5 = vld [vmem:[%s2055_s5 + $0x848] sm:$0xff] }
  0x58   : > { %v491_v6 = vld [vmem:[%s2055_s5 + $0x860] sm:$0xff]  ;;  %488 = vst [vmem:[%s2063_s6 + $0x420] sm:$0xff] %v487_v4  ;;  %490 = vst [vmem:[%s2063_s6 + $0x428] sm:$0xff] %v489_v5  ;;  %v493_v7 = vld [vmem:[%s2055_s5 + $0x868] sm:$0xff] }
  0x59   : > { %492 = vst [vmem:[%s2063_s6 + $0x430] sm:$0xff] %v491_v6  ;;  %v495_v8 = vld [vmem:[%s2055_s5 + $0x880] sm:$0xff]  ;;  %v497_v9 = vld [vmem:[%s2055_s5 + $0x888] sm:$0xff]  ;;  %494 = vst [vmem:[%s2063_s6 + $0x438] sm:$0xff] %v493_v7 }
  0x5a   : > { %496 = vst [vmem:[%s2063_s6 + $0x440] sm:$0xff] %v495_v8  ;;  %498 = vst [vmem:[%s2063_s6 + $0x448] sm:$0xff] %v497_v9  ;;  %v499_v10 = vld [vmem:[%s2055_s5 + $0x8a0] sm:$0xff]  ;;  %v501_v11 = vld [vmem:[%s2055_s5 + $0x8a8] sm:$0xff] }
  0x5b   : > { %v503_v12 = vld [vmem:[%s2055_s5 + $0x8c0] sm:$0xff]  ;;  %500 = vst [vmem:[%s2063_s6 + $0x450] sm:$0xff] %v499_v10  ;;  %502 = vst [vmem:[%s2063_s6 + $0x458] sm:$0xff] %v501_v11  ;;  %v505_v13 = vld [vmem:[%s2055_s5 + $0x8c8] sm:$0xff] }
  0x5c   : > { %504 = vst [vmem:[%s2063_s6 + $0x460] sm:$0xff] %v503_v12  ;;  %v507_v14 = vld [vmem:[%s2055_s5 + $0x8e0] sm:$0xff]  ;;  %v509_v15 = vld [vmem:[%s2055_s5 + $0x8e8] sm:$0xff]  ;;  %506 = vst [vmem:[%s2063_s6 + $0x468] sm:$0xff] %v505_v13 }
  0x5d   : > { %508 = vst [vmem:[%s2063_s6 + $0x470] sm:$0xff] %v507_v14  ;;  %510 = vst [vmem:[%s2063_s6 + $0x478] sm:$0xff] %v509_v15 }
  0x5e PF: > { %p1674_p8 = scmp.ge.s32.totalorder %s1978_s19, 1  ;;  %p515_p9 = scmp.lt.s32.totalorder %s1978_s19, 3 }
  0x60   : > { %p516_p10 = pnand %p1674_p8, %p515_p9 }
  0x61   : > { %s522_s7 = sand.u32 (!%p516_p10), 1, %s1962_s15   ;;  %v585_v16 = vld [vmem:[%s2990_s1 + $0x8] sm:$0xff] (!%p516_p10)  ;;  %v587_v17 = vld [vmem:[%s2990_s1 + $0x18] sm:$0xff] (!%p516_p10)  ;;  %v1980_v56 = vmov (!%p516_p10), 0   ;;  %vm788_vm0 = vcmask (!%p516_p10), 523264  }
  0x62   : > { %519 = sbr.rel (%p516_p10) target bundleno = 469 (0x1d5), region = 55  ;;  %889 = vmatprep.mubr.f32.mxu1 (!%p516_p10), %v585_v16  ;;  %1026 = vmatprep.mubr.f32.mxu0 (!%p516_p10), %v587_v17 }
  0x63   : > { %s1894_s12 = smul.u32 (!%p516_p10), 1152, %s522_s7  ;;  %1939 = vset.pattern.permute.xlu1 (!%p516_p10), %v1980_v56  ;;  %1938 = vset.pattern.permute.xlu0 (!%p516_p10), %v1980_v56 }
  0x64   : > { %s1895_s9 = smul.u32 (!%p516_p10), 192, %s522_s7 }
  0x65   : > { %s2358_s13 = scalar_lea.vmem (!%p516_p10), [#allocation2], %s1894_s12 }
  0x66   : > { %v645_v18 = vld [vmem:[%s2358_s13 + $0x8] sm:$0xff] (!%p516_p10)  ;;  %v647_v19 = vld [vmem:[%s2358_s13 + $0x18] sm:$0xff] (!%p516_p10)  ;;  %v644_v23 = vld [vmem:[%s2358_s13] sm:$0xff] (!%p516_p10)  ;;  %s2849_s15 = scalar_lea.vmem (!%p516_p10), [#allocation3], %s1895_s9 }
  0x67   : > { %v709_v20 = vld [vmem:[%s2358_s13 + $0x208] sm:$0xff] (!%p516_p10)  ;;  %v1693_v21 = vpack.c.bf16 (!%p516_p10), %v647_v19, %v645_v18  ;;  %v711_v22 = vld [vmem:[%s2358_s13 + $0x218] sm:$0xff] (!%p516_p10)  ;;  %v646_v24 = vld [vmem:[%s2358_s13 + $0x10] sm:$0xff] (!%p516_p10) }
  0x68   : > { %v1757_v25 = vpack.c.bf16 (!%p516_p10), %v711_v22, %v709_v20  ;;  %v1695_v26 = vpack.c.bf16 (!%p516_p10), %v646_v24, %v644_v23  ;;  %v708_v27 = vld [vmem:[%s2358_s13 + $0x200] sm:$0xff] (!%p516_p10)  ;;  %v710_v28 = vld [vmem:[%s2358_s13 + $0x210] sm:$0xff] (!%p516_p10)  ;;  %v649_v29 = vld [vmem:[%s2358_s13 + $0x28] sm:$0xff] (!%p516_p10) }
  0x69   : > { %1694 = vmatprep.subr.bf16.mxu1 %v1693_v21  ;;  %v1759_v30 = vpack.c.bf16 %v710_v28, %v708_v27  ;;  %v651_v31 = vld [vmem:[%s2358_s13 + $0x38] sm:$0xff]  ;;  %v713_v32 = vld [vmem:[%s2358_s13 + $0x228] sm:$0xff]  ;;  %v648_v36 = vld [vmem:[%s2358_s13 + $0x20] sm:$0xff]  ;;  %s1692_s7 = sshll.u32 (%p2042_p6), %s1970_s17, 4 }
  0x6a   : > { %v715_v33 = vld [vmem:[%s2358_s13 + $0x238] sm:$0xff]  ;;  %1758 = vmatprep.subr.bf16.mxu0 %v1757_v25  ;;  %1696 = vmatpush1.bf16.msra.mxu1 %v1695_v26  ;;  %v1697_v34 = vpack.c.bf16 %v651_v31, %v649_v29  ;;  %v650_v37 = vld [vmem:[%s2358_s13 + $0x30] sm:$0xff]  ;;  %v712_v38 = vld [vmem:[%s2358_s13 + $0x220] sm:$0xff]  ;;  %s2927_s12 = scalar_lea.vmem (%p2042_p6), %s2993_s4, %s1692_s7 }
  0x6b   : > { %v1761_v35 = vpack.c.bf16 %v715_v33, %v713_v32  ;;  %1760 = vmatpush1.bf16.msra.mxu0 %v1759_v30  ;;  %v1699_v39 = vpack.c.bf16 %v650_v37, %v648_v36  ;;  %v714_v40 = vld [vmem:[%s2358_s13 + $0x230] sm:$0xff]  ;;  %v653_v41 = vld [vmem:[%s2358_s13 + $0x48] sm:$0xff]  ;;  %v655_v42 = vld [vmem:[%s2358_s13 + $0x58] sm:$0xff] }
  0x6c   : > { %1698 = vmatprep.subr.bf16.mxu1 %v1697_v34  ;;  %v1763_v43 = vpack.c.bf16 %v714_v40, %v712_v38  ;;  %v1701_v44 = vpack.c.bf16 %v655_v42, %v653_v41  ;;  %v717_v45 = vld [vmem:[%s2358_s13 + $0x248] sm:$0xff]  ;;  %v719_v46 = vld [vmem:[%s2358_s13 + $0x258] sm:$0xff]  ;;  %v652_v47 = vld [vmem:[%s2358_s13 + $0x40] sm:$0xff] }
  0x6d   : > { %1762 = vmatprep.subr.bf16.mxu0 %v1761_v35  ;;  %v1765_v48 = vpack.c.bf16 %v719_v46, %v717_v45  ;;  %v654_v49 = vld [vmem:[%s2358_s13 + $0x50] sm:$0xff]  ;;  %v716_v50 = vld [vmem:[%s2358_s13 + $0x240] sm:$0xff]  ;;  %v657_v53 = vld [vmem:[%s2358_s13 + $0x68] sm:$0xff] }
  0x6e   : > { %v718_v51 = vld [vmem:[%s2358_s13 + $0x250] sm:$0xff]  ;;  %1700 = vmatpush1.bf16.msra.mxu1 %v1699_v39  ;;  %v1703_v52 = vpack.c.bf16 %v654_v49, %v652_v47  ;;  %v659_v54 = vld [vmem:[%s2358_s13 + $0x78] sm:$0xff]  ;;  %v721_v55 = vld [vmem:[%s2358_s13 + $0x268] sm:$0xff] }
  0x6f   : > { %1764 = vmatpush1.bf16.msra.mxu0 %v1763_v43  ;;  %1702 = vmatprep.subr.bf16.mxu1 %v1701_v44  ;;  %v1767_v57 = vpack.c.bf16 %v718_v51, %v716_v50  ;;  %v1705_v58 = vpack.c.bf16 %v659_v54, %v657_v53  ;;  %v723_v59 = vld [vmem:[%s2358_s13 + $0x278] sm:$0xff]  ;;  %v656_v60 = vld [vmem:[%s2358_s13 + $0x60] sm:$0xff]  ;;  %v658_v61 = vld [vmem:[%s2358_s13 + $0x70] sm:$0xff] }
  0x70   : > { %1766 = vmatprep.subr.bf16.mxu0 %v1765_v48  ;;  %v1769_v62 = vpack.c.bf16 %v723_v59, %v721_v55  ;;  %v720_v63 = vld [vmem:[%s2358_s13 + $0x260] sm:$0xff]  ;;  %v722_v0 = vld [vmem:[%s2358_s13 + $0x270] sm:$0xff]  ;;  %v661_v1 = vld [vmem:[%s2358_s13 + $0x88] sm:$0xff]  ;;  %v1707_v5 = vpack.c.bf16 %v658_v61, %v656_v60 }
  0x71   : > { %v663_v2 = vld [vmem:[%s2358_s13 + $0x98] sm:$0xff]  ;;  %v725_v3 = vld [vmem:[%s2358_s13 + $0x288] sm:$0xff]  ;;  %v1771_v6 = vpack.c.bf16 %v722_v0, %v720_v63  ;;  %v660_v8 = vld [vmem:[%s2358_s13 + $0x80] sm:$0xff] }
  0x72   : > { %v727_v4 = vld [vmem:[%s2358_s13 + $0x298] sm:$0xff]  ;;  %1704 = vmatpush1.bf16.msra.mxu1 %v1703_v52  ;;  %v1709_v7 = vpack.c.bf16 %v663_v2, %v661_v1  ;;  %v662_v9 = vld [vmem:[%s2358_s13 + $0x90] sm:$0xff]  ;;  %v724_v10 = vld [vmem:[%s2358_s13 + $0x280] sm:$0xff] }
  0x73   : > { %1768 = vmatpush1.bf16.msra.mxu0 %v1767_v57  ;;  %1706 = vmatprep.subr.bf16.mxu1 %v1705_v58  ;;  %v1773_v11 = vpack.c.bf16 %v727_v4, %v725_v3  ;;  %v726_v12 = vld [vmem:[%s2358_s13 + $0x290] sm:$0xff]  ;;  %v665_v13 = vld [vmem:[%s2358_s13 + $0xa8] sm:$0xff]  ;;  %v667_v14 = vld [vmem:[%s2358_s13 + $0xb8] sm:$0xff]  ;;  %v1711_v17 = vpack.c.bf16 %v662_v9, %v660_v8 }
  0x74   : > { %1770 = vmatprep.subr.bf16.mxu0 %v1769_v62  ;;  %v729_v15 = vld [vmem:[%s2358_s13 + $0x2a8] sm:$0xff]  ;;  %v731_v16 = vld [vmem:[%s2358_s13 + $0x2b8] sm:$0xff]  ;;  %v1775_v18 = vpack.c.bf16 %v726_v12, %v724_v10  ;;  %v1713_v19 = vpack.c.bf16 %v667_v14, %v665_v13  ;;  %v664_v20 = vld [vmem:[%s2358_s13 + $0xa0] sm:$0xff] }
  0x75   : > { %v666_v21 = vld [vmem:[%s2358_s13 + $0xb0] sm:$0xff]  ;;  %v728_v22 = vld [vmem:[%s2358_s13 + $0x2a0] sm:$0xff]  ;;  %v1777_v23 = vpack.c.bf16 %v731_v16, %v729_v15  ;;  %v669_v25 = vld [vmem:[%s2358_s13 + $0xc8] sm:$0xff] }
  0x76   : > { %1708 = vmatpush1.bf16.msra.mxu1 %v1707_v5  ;;  %v730_v24 = vld [vmem:[%s2358_s13 + $0x2b0] sm:$0xff]  ;;  %v671_v26 = vld [vmem:[%s2358_s13 + $0xd8] sm:$0xff]  ;;  %v733_v27 = vld [vmem:[%s2358_s13 + $0x2c8] sm:$0xff]  ;;  %v1715_v29 = vpack.c.bf16 %v666_v21, %v664_v20 }
  0x77   : > { %1772 = vmatpush1.bf16.msra.mxu0 %v1771_v6  ;;  %1710 = vmatprep.subr.bf16.mxu1 %v1709_v7  ;;  %v735_v28 = vld [vmem:[%s2358_s13 + $0x2d8] sm:$0xff]  ;;  %v1779_v30 = vpack.c.bf16 %v730_v24, %v728_v22  ;;  %v1717_v31 = vpack.c.bf16 %v671_v26, %v669_v25  ;;  %v668_v32 = vld [vmem:[%s2358_s13 + $0xc0] sm:$0xff]  ;;  %v670_v33 = vld [vmem:[%s2358_s13 + $0xd0] sm:$0xff] }
  0x78   : > { %1774 = vmatprep.subr.bf16.mxu0 %v1773_v11  ;;  %v732_v34 = vld [vmem:[%s2358_s13 + $0x2c0] sm:$0xff]  ;;  %v1781_v35 = vpack.c.bf16 %v735_v28, %v733_v27  ;;  %v734_v36 = vld [vmem:[%s2358_s13 + $0x2d0] sm:$0xff]  ;;  %v673_v37 = vld [vmem:[%s2358_s13 + $0xe8] sm:$0xff]  ;;  %v1719_v41 = vpack.c.bf16 %v670_v33, %v668_v32 }
  0x79   : > { %v675_v38 = vld [vmem:[%s2358_s13 + $0xf8] sm:$0xff]  ;;  %v737_v39 = vld [vmem:[%s2358_s13 + $0x2e8] sm:$0xff]  ;;  %v1783_v42 = vpack.c.bf16 %v734_v36, %v732_v34  ;;  %v672_v44 = vld [vmem:[%s2358_s13 + $0xe0] sm:$0xff] }
  0x7a   : > { %1712 = vmatpush1.bf16.msra.mxu1 %v1711_v17  ;;  %v739_v40 = vld [vmem:[%s2358_s13 + $0x2f8] sm:$0xff]  ;;  %v1721_v43 = vpack.c.bf16 %v675_v38, %v673_v37  ;;  %v674_v45 = vld [vmem:[%s2358_s13 + $0xf0] sm:$0xff]  ;;  %v736_v46 = vld [vmem:[%s2358_s13 + $0x2e0] sm:$0xff] }
  0x7b   : > { %1776 = vmatpush1.bf16.msra.mxu0 %v1775_v18  ;;  %1714 = vmatprep.subr.bf16.mxu1 %v1713_v19  ;;  %v1785_v47 = vpack.c.bf16 %v739_v40, %v737_v39  ;;  %v738_v48 = vld [vmem:[%s2358_s13 + $0x2f0] sm:$0xff]  ;;  %v677_v49 = vld [vmem:[%s2358_s13 + $0x108] sm:$0xff]  ;;  %v679_v50 = vld [vmem:[%s2358_s13 + $0x118] sm:$0xff]  ;;  %v1723_v53 = vpack.c.bf16 %v674_v45, %v672_v44 }
  0x7c   : > { %1778 = vmatprep.subr.bf16.mxu0 %v1777_v23  ;;  %v741_v51 = vld [vmem:[%s2358_s13 + $0x308] sm:$0xff]  ;;  %v743_v52 = vld [vmem:[%s2358_s13 + $0x318] sm:$0xff]  ;;  %v1787_v54 = vpack.c.bf16 %v738_v48, %v736_v46  ;;  %v1725_v55 = vpack.c.bf16 %v679_v50, %v677_v49  ;;  %v676_v56 = vld [vmem:[%s2358_s13 + $0x100] sm:$0xff] }
  0x7d   : > { %v678_v57 = vld [vmem:[%s2358_s13 + $0x110] sm:$0xff]  ;;  %v740_v58 = vld [vmem:[%s2358_s13 + $0x300] sm:$0xff]  ;;  %v1789_v59 = vpack.c.bf16 %v743_v52, %v741_v51  ;;  %v681_v61 = vld [vmem:[%s2358_s13 + $0x128] sm:$0xff] }
  0x7e   : > { %1716 = vmatpush1.bf16.msra.mxu1 %v1715_v29  ;;  %v742_v60 = vld [vmem:[%s2358_s13 + $0x310] sm:$0xff]  ;;  %v683_v62 = vld [vmem:[%s2358_s13 + $0x138] sm:$0xff]  ;;  %v745_v63 = vld [vmem:[%s2358_s13 + $0x328] sm:$0xff]  ;;  %v1727_v1 = vpack.c.bf16 %v678_v57, %v676_v56 }
  0x7f   : > { %1780 = vmatpush1.bf16.msra.mxu0 %v1779_v30  ;;  %1718 = vmatprep.subr.bf16.mxu1 %v1717_v31  ;;  %v747_v0 = vld [vmem:[%s2358_s13 + $0x338] sm:$0xff]  ;;  %v1791_v2 = vpack.c.bf16 %v742_v60, %v740_v58  ;;  %v1729_v3 = vpack.c.bf16 %v683_v62, %v681_v61  ;;  %v680_v4 = vld [vmem:[%s2358_s13 + $0x120] sm:$0xff]  ;;  %v682_v5 = vld [vmem:[%s2358_s13 + $0x130] sm:$0xff] }
  0x80   : > { %1782 = vmatprep.subr.bf16.mxu0 %v1781_v35  ;;  %v744_v6 = vld [vmem:[%s2358_s13 + $0x320] sm:$0xff]  ;;  %v1793_v7 = vpack.c.bf16 %v747_v0, %v745_v63  ;;  %v746_v8 = vld [vmem:[%s2358_s13 + $0x330] sm:$0xff]  ;;  %v685_v9 = vld [vmem:[%s2358_s13 + $0x148] sm:$0xff]  ;;  %v1731_v13 = vpack.c.bf16 %v682_v5, %v680_v4 }
  0x81   : > { %v687_v10 = vld [vmem:[%s2358_s13 + $0x158] sm:$0xff]  ;;  %v749_v11 = vld [vmem:[%s2358_s13 + $0x348] sm:$0xff]  ;;  %v1795_v14 = vpack.c.bf16 %v746_v8, %v744_v6  ;;  %v684_v16 = vld [vmem:[%s2358_s13 + $0x140] sm:$0xff] }
  0x82   : > { %1720 = vmatpush1.bf16.msra.mxu1 %v1719_v41  ;;  %v751_v12 = vld [vmem:[%s2358_s13 + $0x358] sm:$0xff]  ;;  %v1733_v15 = vpack.c.bf16 %v687_v10, %v685_v9  ;;  %v686_v17 = vld [vmem:[%s2358_s13 + $0x150] sm:$0xff]  ;;  %v748_v18 = vld [vmem:[%s2358_s13 + $0x340] sm:$0xff] }
  0x83   : > { %1784 = vmatpush1.bf16.msra.mxu0 %v1783_v42  ;;  %1722 = vmatprep.subr.bf16.mxu1 %v1721_v43  ;;  %v1797_v19 = vpack.c.bf16 %v751_v12, %v749_v11  ;;  %v750_v20 = vld [vmem:[%s2358_s13 + $0x350] sm:$0xff]  ;;  %v689_v21 = vld [vmem:[%s2358_s13 + $0x168] sm:$0xff]  ;;  %v691_v22 = vld [vmem:[%s2358_s13 + $0x178] sm:$0xff]  ;;  %v1735_v25 = vpack.c.bf16 %v686_v17, %v684_v16 }
  0x84   : > { %1786 = vmatprep.subr.bf16.mxu0 %v1785_v47  ;;  %v753_v23 = vld [vmem:[%s2358_s13 + $0x368] sm:$0xff]  ;;  %v755_v24 = vld [vmem:[%s2358_s13 + $0x378] sm:$0xff]  ;;  %v1799_v26 = vpack.c.bf16 %v750_v20, %v748_v18  ;;  %v1737_v27 = vpack.c.bf16 %v691_v22, %v689_v21  ;;  %v688_v28 = vld [vmem:[%s2358_s13 + $0x160] sm:$0xff] }
  0x85   : > { %v690_v29 = vld [vmem:[%s2358_s13 + $0x170] sm:$0xff]  ;;  %v752_v30 = vld [vmem:[%s2358_s13 + $0x360] sm:$0xff]  ;;  %v1801_v31 = vpack.c.bf16 %v755_v24, %v753_v23  ;;  %v693_v33 = vld [vmem:[%s2358_s13 + $0x188] sm:$0xff] }
  0x86   : > { %1724 = vmatpush1.bf16.msra.mxu1 %v1723_v53  ;;  %v754_v32 = vld [vmem:[%s2358_s13 + $0x370] sm:$0xff]  ;;  %v695_v34 = vld [vmem:[%s2358_s13 + $0x198] sm:$0xff]  ;;  %v757_v35 = vld [vmem:[%s2358_s13 + $0x388] sm:$0xff]  ;;  %v1739_v37 = vpack.c.bf16 %v690_v29, %v688_v28 }
  0x87   : > { %1788 = vmatpush1.bf16.msra.mxu0 %v1787_v54  ;;  %1726 = vmatprep.subr.bf16.mxu1 %v1725_v55  ;;  %v759_v36 = vld [vmem:[%s2358_s13 + $0x398] sm:$0xff]  ;;  %v1803_v38 = vpack.c.bf16 %v754_v32, %v752_v30  ;;  %v1741_v39 = vpack.c.bf16 %v695_v34, %v693_v33  ;;  %v692_v40 = vld [vmem:[%s2358_s13 + $0x180] sm:$0xff]  ;;  %v694_v41 = vld [vmem:[%s2358_s13 + $0x190] sm:$0xff] }
  0x88   : > { %1790 = vmatprep.subr.bf16.mxu0 %v1789_v59  ;;  %v756_v42 = vld [vmem:[%s2358_s13 + $0x380] sm:$0xff]  ;;  %v1805_v43 = vpack.c.bf16 %v759_v36, %v757_v35  ;;  %v758_v44 = vld [vmem:[%s2358_s13 + $0x390] sm:$0xff]  ;;  %v697_v45 = vld [vmem:[%s2358_s13 + $0x1a8] sm:$0xff]  ;;  %v1743_v49 = vpack.c.bf16 %v694_v41, %v692_v40 }
  0x89   : > { %v699_v46 = vld [vmem:[%s2358_s13 + $0x1b8] sm:$0xff]  ;;  %v761_v47 = vld [vmem:[%s2358_s13 + $0x3a8] sm:$0xff]  ;;  %v1807_v50 = vpack.c.bf16 %v758_v44, %v756_v42  ;;  %v696_v52 = vld [vmem:[%s2358_s13 + $0x1a0] sm:$0xff] }
  0x8a   : > { %1728 = vmatpush1.bf16.msra.mxu1 %v1727_v1  ;;  %v763_v48 = vld [vmem:[%s2358_s13 + $0x3b8] sm:$0xff]  ;;  %v1745_v51 = vpack.c.bf16 %v699_v46, %v697_v45  ;;  %v698_v53 = vld [vmem:[%s2358_s13 + $0x1b0] sm:$0xff]  ;;  %v760_v54 = vld [vmem:[%s2358_s13 + $0x3a0] sm:$0xff] }
  0x8b   : > { %1792 = vmatpush1.bf16.msra.mxu0 %v1791_v2  ;;  %1730 = vmatprep.subr.bf16.mxu1 %v1729_v3  ;;  %v1809_v55 = vpack.c.bf16 %v763_v48, %v761_v47  ;;  %v762_v56 = vld [vmem:[%s2358_s13 + $0x3b0] sm:$0xff]  ;;  %v701_v57 = vld [vmem:[%s2358_s13 + $0x1c8] sm:$0xff]  ;;  %v703_v58 = vld [vmem:[%s2358_s13 + $0x1d8] sm:$0xff]  ;;  %v1747_v61 = vpack.c.bf16 %v698_v53, %v696_v52 }
  0x8c   : > { %1794 = vmatprep.subr.bf16.mxu0 %v1793_v7  ;;  %v765_v59 = vld [vmem:[%s2358_s13 + $0x3c8] sm:$0xff]  ;;  %v767_v60 = vld [vmem:[%s2358_s13 + $0x3d8] sm:$0xff]  ;;  %v1811_v62 = vpack.c.bf16 %v762_v56, %v760_v54  ;;  %v1749_v63 = vpack.c.bf16 %v703_v58, %v701_v57  ;;  %v700_v0 = vld [vmem:[%s2358_s13 + $0x1c0] sm:$0xff] }
  0x8d   : > { %v702_v1 = vld [vmem:[%s2358_s13 + $0x1d0] sm:$0xff]  ;;  %v764_v2 = vld [vmem:[%s2358_s13 + $0x3c0] sm:$0xff]  ;;  %v1813_v3 = vpack.c.bf16 %v767_v60, %v765_v59  ;;  %v705_v5 = vld [vmem:[%s2358_s13 + $0x1e8] sm:$0xff] }
  0x8e   : > { %1732 = vmatpush1.bf16.msra.mxu1 %v1731_v13  ;;  %v766_v4 = vld [vmem:[%s2358_s13 + $0x3d0] sm:$0xff]  ;;  %v707_v6 = vld [vmem:[%s2358_s13 + $0x1f8] sm:$0xff]  ;;  %v769_v7 = vld [vmem:[%s2358_s13 + $0x3e8] sm:$0xff]  ;;  %v1751_v9 = vpack.c.bf16 %v702_v1, %v700_v0 }
  0x8f   : > { %1796 = vmatpush1.bf16.msra.mxu0 %v1795_v14  ;;  %1734 = vmatprep.subr.bf16.mxu1 %v1733_v15  ;;  %v771_v8 = vld [vmem:[%s2358_s13 + $0x3f8] sm:$0xff]  ;;  %v1815_v10 = vpack.c.bf16 %v766_v4, %v764_v2  ;;  %v1753_v11 = vpack.c.bf16 %v707_v6, %v705_v5  ;;  %v704_v12 = vld [vmem:[%s2358_s13 + $0x1e0] sm:$0xff]  ;;  %v706_v13 = vld [vmem:[%s2358_s13 + $0x1f0] sm:$0xff] }
  0x90   : > { %1798 = vmatprep.subr.bf16.mxu0 %v1797_v19  ;;  %v768_v14 = vld [vmem:[%s2358_s13 + $0x3e0] sm:$0xff]  ;;  %v1817_v15 = vpack.c.bf16 %v771_v8, %v769_v7  ;;  %v770_v16 = vld [vmem:[%s2358_s13 + $0x3f0] sm:$0xff]  ;;  %v773_v17 = vld [vmem:[%s2358_s13 + $0x408] sm:$0xff]  ;;  %v1755_v19 = vpack.c.bf16 %v706_v13, %v704_v12 }
  0x91   : > { %v775_v18 = vld [vmem:[%s2358_s13 + $0x418] sm:$0xff]  ;;  %v1819_v20 = vpack.c.bf16 %v770_v16, %v768_v14  ;;  %v772_v22 = vld [vmem:[%s2358_s13 + $0x400] sm:$0xff]  ;;  %v774_v23 = vld [vmem:[%s2358_s13 + $0x410] sm:$0xff] }
  0x92   : > { %1736 = vmatpush1.bf16.msra.mxu1 %v1735_v25  ;;  %v1821_v21 = vpack.c.bf16 %v775_v18, %v773_v17  ;;  %v777_v24 = vld [vmem:[%s2358_s13 + $0x428] sm:$0xff]  ;;  %v779_v25 = vld [vmem:[%s2358_s13 + $0x438] sm:$0xff]  ;;  %v1238_v28 = vld [vmem:[%s2991_s2 + $0x10] sm:$0xff] }
  0x93   : > { %1800 = vmatpush1.bf16.msra.mxu0 %v1799_v26  ;;  %1738 = vmatprep.subr.bf16.mxu1 %v1737_v27  ;;  %v584_v26 = vld [vmem:[%s2990_s1] sm:$0xff]  ;;  %v1823_v27 = vpack.c.bf16 %v774_v23, %v772_v22  ;;  %v586_v30 = vld [vmem:[%s2990_s1 + $0x10] sm:$0xff]  ;;  %v1825_v32 = vpack.c.bf16 %v779_v25, %v777_v24  ;;  %v781_v36 = vld [vmem:[%s2358_s13 + $0x448] sm:$0xff] }
  0x94   : > { %1802 = vmatprep.subr.bf16.mxu0 %v1801_v31  ;;  %v1236_v29 = vld [vmem:[%s2991_s2] sm:$0xff]  ;;  %v590_v31 = vld [vmem:[%s2990_s1 + $0x30] sm:$0xff]  ;;  %1260 = vperm.xlu1 %1939, %v1238_v28   ;;  %v595_v40 = vld [vmem:[%s2990_s1 + $0x58] sm:$0xff] }
  0x95   : > { %v776_v33 = vld [vmem:[%s2358_s13 + $0x420] sm:$0xff]  ;;  %v778_v34 = vld [vmem:[%s2358_s13 + $0x430] sm:$0xff]  ;;  %1250 = vperm.xlu0 %1938, %v1236_v29   ;;  %v597_v42 = vld [vmem:[%s2990_s1 + $0x68] sm:$0xff] }
  0x96   : > { %1740 = vmatpush1.bf16.msra.mxu1 %v1739_v37  ;;  %v592_v35 = vld [vmem:[%s2990_s1 + $0x40] sm:$0xff]  ;;  %v783_v37 = vld [vmem:[%s2358_s13 + $0x458] sm:$0xff]  ;;  %v1827_v41 = vpack.c.bf16 %v778_v34, %v776_v33  ;;  %v782_v45 = vld [vmem:[%s2358_s13 + $0x450] sm:$0xff] }
  0x97   : > { %1804 = vmatpush1.bf16.msra.mxu0 %v1803_v38  ;;  %1742 = vmatprep.subr.bf16.mxu1 %v1741_v39  ;;  %v589_v38 = vld [vmem:[%s2990_s1 + $0x28] sm:$0xff]  ;;  %v591_v39 = vld [vmem:[%s2990_s1 + $0x38] sm:$0xff]  ;;  %v780_v44 = vld [vmem:[%s2358_s13 + $0x440] sm:$0xff] }
  0x98   : > { %1806 = vmatprep.subr.bf16.mxu0 %v1805_v43  ;;  %v1829_v43 = vpack.c.bf16 %v783_v37, %v781_v36  ;;  %v785_v46 = vld [vmem:[%s2358_s13 + $0x468] sm:$0xff]  ;;  %v787_v47 = vld [vmem:[%s2358_s13 + $0x478] sm:$0xff]  ;;  %v594_v48 = vld [vmem:[%s2990_s1 + $0x50] sm:$0xff] }
  0x99   : > { %v602_v52 = vld [vmem:[%s2990_s1 + $0x90] sm:$0xff]  ;;  %v1833_v53 = vpack.c.bf16 %v787_v47, %v785_v46  ;;  %v784_v54 = vld [vmem:[%s2358_s13 + $0x460] sm:$0xff]  ;;  %v599_v56 = vld [vmem:[%s2990_s1 + $0x78] sm:$0xff] }
  0x9a   : > { %1744 = vmatpush1.bf16.msra.mxu1 %v1743_v49  ;;  %v596_v49 = vld [vmem:[%s2990_s1 + $0x60] sm:$0xff]  ;;  %v601_v57 = vld [vmem:[%s2990_s1 + $0x88] sm:$0xff]  ;;  %v607_v60 = vld [vmem:[%s2990_s1 + $0xb8] sm:$0xff] }
  0x9b   : > { %1808 = vmatpush1.bf16.msra.mxu0 %v1807_v50  ;;  %1746 = vmatprep.subr.bf16.mxu1 %v1745_v51  ;;  %v600_v50 = vld [vmem:[%s2990_s1 + $0x80] sm:$0xff]  ;;  %v1831_v51 = vpack.c.bf16 %v782_v45, %v780_v44  ;;  %v605_v58 = vld [vmem:[%s2990_s1 + $0xa8] sm:$0xff]  ;;  %v606_v0 = vld [vmem:[%s2990_s1 + $0xb0] sm:$0xff]  ;;  %v1981_v44 = vmov 0.0  }
  0x9c   : > { %1810 = vmatprep.subr.bf16.mxu0 %v1809_v55  ;;  %v786_v55 = vld [vmem:[%s2358_s13 + $0x470] sm:$0xff]  ;;  %v612_v2 = vld [vmem:[%s2990_s1 + $0xe0] sm:$0xff]  ;;  %v609_v4 = vld [vmem:[%s2990_s1 + $0xc8] sm:$0xff] }
  0x9d   : > { %v1835_v59 = vpack.c.bf16 %v786_v55, %v784_v54  ;;  %v610_v1 = vld [vmem:[%s2990_s1 + $0xd0] sm:$0xff]  ;;  %v1240_v5 = vld [vmem:[%s2991_s2 + $0x20] sm:$0xff]  ;;  %v611_v6 = vld [vmem:[%s2990_s1 + $0xd8] sm:$0xff] }
  0x9e   : > { %1748 = vmatpush1.bf16.msra.mxu1 %v1747_v61  ;;  %v1239_v61 = vld [vmem:[%s2991_s2 + $0x18] sm:$0xff]  ;;  %v617_v8 = vld [vmem:[%s2990_s1 + $0x108] sm:$0xff]  ;;  %v616_v12 = vld [vmem:[%s2990_s1 + $0x100] sm:$0xff] }
  0x9f   : > { %1812 = vmatpush1.bf16.msra.mxu0 %v1811_v62  ;;  %1750 = vmatprep.subr.bf16.mxu1 %v1749_v63  ;;  %v604_v62 = vld [vmem:[%s2990_s1 + $0xa0] sm:$0xff]  ;;  %v1237_v63 = vld [vmem:[%s2991_s2 + $0x8] sm:$0xff]  ;;  %v615_v7 = vld [vmem:[%s2990_s1 + $0xf8] sm:$0xff] }
  0xa0   : > { %1814 = vmatprep.subr.bf16.mxu0 %v1813_v3  ;;  %1265 = vperm.xlu1 %1939, %v1239_v61   ;;  %v1241_v3 = vld [vmem:[%s2991_s2 + $0x28] sm:$0xff]  ;;  %v620_v13 = vld [vmem:[%s2990_s1 + $0x120] sm:$0xff]  ;;  %v622_v14 = vld [vmem:[%s2990_s1 + $0x130] sm:$0xff] }
  0xa1   : > { %1255 = vperm.xlu0 %1938, %v1237_v63   ;;  %v619_v16 = vld [vmem:[%s2990_s1 + $0x118] sm:$0xff]  ;;  %v1244_v17 = vld [vmem:[%s2991_s2 + $0x40] sm:$0xff]  ;;  %v621_v18 = vld [vmem:[%s2990_s1 + $0x128] sm:$0xff] }
  0xa2   : > { %1752 = vmatpush1.bf16.msra.mxu1 %v1751_v9  ;;  %v1243_v9 = vld [vmem:[%s2991_s2 + $0x38] sm:$0xff]  ;;  %v624_v22 = vld [vmem:[%s2990_s1 + $0x140] sm:$0xff]  ;;  %v1246_v23 = vld [vmem:[%s2991_s2 + $0x50] sm:$0xff] }
  0xa3   : > { %1816 = vmatpush1.bf16.msra.mxu0 %v1815_v10  ;;  %1754 = vmatprep.subr.bf16.mxu1 %v1753_v11  ;;  %v614_v10 = vld [vmem:[%s2990_s1 + $0xf0] sm:$0xff]  ;;  %v629_v28 = vld [vmem:[%s2990_s1 + $0x168] sm:$0xff]  ;;  %v1332_v29 = vld [vmem:[%s2992_s3] sm:$0xff] }
  0xa4   : > { %1818 = vmatprep.subr.bf16.mxu0 %v1817_v15  ;;  %1275 = vperm.xlu1 %1939, %v1241_v3   ;;  %v1242_v11 = vld [vmem:[%s2991_s2 + $0x30] sm:$0xff]  ;;  %v1245_v15 = vld [vmem:[%s2991_s2 + $0x48] sm:$0xff]  ;;  %v1335_v33 = vld [vmem:[%s2992_s3 + $0x18] sm:$0xff] }
  0xa5   : > { %1270 = vperm.xlu0 %1938, %v1240_v5   ;;  %v626_v24 = vld [vmem:[%s2990_s1 + $0x150] sm:$0xff]  ;;  %v636_v36 = vld [vmem:[%s2990_s1 + $0x1a0] sm:$0xff]  ;;  %v613_v61 = vld [vmem:[%s2990_s1 + $0xe8] sm:$0xff] }
  0xa6   : > { %1756 = vmatpush1.bf16.msra.mxu1 %v1755_v19  ;;  %v625_v19 = vld [vmem:[%s2990_s1 + $0x148] sm:$0xff]  ;;  %v630_v25 = vld [vmem:[%s2990_s1 + $0x170] sm:$0xff]  ;;  %v640_v37 = vld [vmem:[%s2990_s1 + $0x1c0] sm:$0xff] }
  0xa7   : > { %1820 = vmatpush1.bf16.msra.mxu0 %v1819_v20  ;;  %1837 = vmatprep.subr.bf16.mxu1 %v1821_v21  ;;  %v627_v20 = vld [vmem:[%s2990_s1 + $0x158] sm:$0xff]  ;;  %v634_v34 = vld [vmem:[%s2990_s1 + $0x190] sm:$0xff]  ;;  %v588_v47 = vld [vmem:[%s2990_s1 + $0x20] sm:$0xff] }
  0xa8   : > { %1822 = vmatprep.subr.bf16.mxu0 %v1821_v21  ;;  %1285 = vperm.xlu1 %1939, %v1243_v9   ;;  %v1247_v21 = vld [vmem:[%s2991_s2 + $0x58] sm:$0xff]  ;;  %v618_v45 = vld [vmem:[%s2990_s1 + $0x110] sm:$0xff] }
  0xa9   : > { %890 = vmatmul.mubr.f32.vlgmr.msra.gmra.mrb[0].mxu1 %v584_v26  ;;  %1280 = vperm.xlu0 %1938, %v1242_v11   ;;  %v632_v26 = vld [vmem:[%s2990_s1 + $0x180] sm:$0xff]  ;;  %v1338_v46 = vld [vmem:[%s2992_s3 + $0x30] sm:$0xff] }
  0xaa   : > { %1027 = vmatmul.mubr.f32.vlgmr.msra.gmra.mrb[0].mxu0 %v586_v30  ;;  %1841 = vmatpush1.bf16.msra.mxu1 %v1823_v27  ;;  %v631_v30 = vld [vmem:[%s2990_s1 + $0x178] sm:$0xff]  ;;  %v1342_v54 = vld [vmem:[%s2992_s3 + $0x50] sm:$0xff] }
  0xab   : > { %1824 = vmatpush1.bf16.msra.mxu0 %v1823_v27  ;;  %895 = vmatprep.mubr.f32.mxu1 %v590_v31  ;;  %v1333_v27 = vld [vmem:[%s2992_s3 + $0x8] sm:$0xff]  ;;  %v635_v31 = vld [vmem:[%s2990_s1 + $0x198] sm:$0xff]  ;;  %v598_v55 = vld [vmem:[%s2990_s1 + $0x70] sm:$0xff] }
  0xac   : > { %1032 = vmatprep.mubr.f32.mxu0 %v592_v35  ;;  %1826 = vmatprep.subr.bf16.mxu0 %v1825_v32  ;;  %v1334_v35 = vld [vmem:[%s2992_s3 + $0x10] sm:$0xff] }
  0xad   : > { %896 = vmatmul.mubr.f32.gmra.mrb[2].mxu1 %v589_v38  ;;  %1838 = vmatprep.subr.bf16.mxu1 %v1825_v32  ;;  %v637_v32 = vld [vmem:[%s2990_s1 + $0x1a8] sm:$0xff]  ;;  %v642_v38 = vld [vmem:[%s2990_s1 + $0x1d0] sm:$0xff] }
  0xae   : > { %1033 = vmatmul.mubr.f32.gmra.mrb[2].mxu0 %v591_v39  ;;  %901 = vmatprep.mubr.f32.mxu1 %v595_v40  ;;  %v1337_v39 = vld [vmem:[%s2992_s3 + $0x28] sm:$0xff]  ;;  %v639_v40 = vld [vmem:[%s2990_s1 + $0x1b8] sm:$0xff] }
  0xaf   : > { %1038 = vmatprep.mubr.f32.mxu0 %v597_v42  ;;  %1828 = vmatpush1.bf16.msra.mxu0 %v1827_v41  ;;  %v641_v42 = vld [vmem:[%s2990_s1 + $0x1c8] sm:$0xff] }
  0xb0   : > { %1842 = vmatpush1.bf16.msra.mxu1 %v1827_v41  ;;  %1830 = vmatprep.subr.bf16.mxu0 %v1829_v43  ;;  %v1336_v41 = vld [vmem:[%s2992_s3 + $0x20] sm:$0xff] }
  0xb1   : > { %902 = vmatmul.mubr.f32.gmra.mrb[4].mxu1 %v594_v48  ;;  %1839 = vmatprep.subr.bf16.mxu1 %v1829_v43  ;;  %v1339_v43 = vld [vmem:[%s2992_s3 + $0x38] sm:$0xff]  ;;  %v1341_v48 = vld [vmem:[%s2992_s3 + $0x48] sm:$0xff] }
  0xb2   : > { %1039 = vmatmul.mubr.f32.gmra.mrb[4].mxu0 %v596_v49  ;;  %907 = vmatprep.mubr.f32.mxu1 %v600_v50  ;;  %v623_v49 = vld [vmem:[%s2990_s1 + $0x138] sm:$0xff]  ;;  %v1340_v50 = vld [vmem:[%s2992_s3 + $0x40] sm:$0xff] }
  0xb3   : > { %1044 = vmatprep.mubr.f32.mxu0 %v602_v52  ;;  %1832 = vmatpush1.bf16.msra.mxu0 %v1831_v51  ;;  %v1343_v52 = vld [vmem:[%s2992_s3 + $0x58] sm:$0xff] }
  0xb4   : > { %1843 = vmatpush1.bf16.msra.mxu1 %v1831_v51  ;;  %1834 = vmatprep.subr.bf16.mxu0 %v1833_v53  ;;  %v593_v51 = vld [vmem:[%s2990_s1 + $0x48] sm:$0xff] }
  0xb5   : > { %908 = vmatmul.mubr.f32.gmra.mrb[6].mxu1 %v599_v56  ;;  %1840 = vmatprep.subr.bf16.mxu1 %v1833_v53  ;;  %v628_v53 = vld [vmem:[%s2990_s1 + $0x160] sm:$0xff]  ;;  %v633_v56 = vld [vmem:[%s2990_s1 + $0x188] sm:$0xff] }
  0xb6   : > { %1045 = vmatmul.mubr.f32.gmra.mrb[6].mxu0 %v601_v57  ;;  %913 = vmatprep.mubr.f32.mxu1 %v605_v58  ;;  %v603_v57 = vld [vmem:[%s2990_s1 + $0x98] sm:$0xff]  ;;  %v638_v58 = vld [vmem:[%s2990_s1 + $0x1b0] sm:$0xff] }
  0xb7   : > { %1050 = vmatprep.mubr.f32.mxu0 %v607_v60  ;;  %1836 = vmatpush1.bf16.msra.mxu0 %v1835_v59  ;;  %v643_v60 = vld [vmem:[%s2990_s1 + $0x1d8] sm:$0xff] }
  0xb8   : > { %1844 = vmatpush1.bf16.msra.mxu1 %v1835_v59  ;;  %1295 = vperm.xlu1 %1939, %v1245_v15   ;;  %v608_v59 = vld [vmem:[%s2990_s1 + $0xc0] sm:$0xff] }
  0xb9   : > { %914 = vmatmul.mubr.f32.gmra.mrb[8].mxu1 %v604_v62  ;;  %1290 = vperm.xlu0 %1938, %v1244_v17  }
  0xba   : > { %1051 = vmatmul.mubr.f32.gmra.mrb[8].mxu0 %v606_v0  ;;  %919 = vmatprep.mubr.f32.mxu1 %v610_v1 }
  0xbb   : > { %1056 = vmatprep.mubr.f32.mxu0 %v612_v2 }
  0xbc   : > { %1305 = vperm.xlu1 %1939, %v1247_v21  }
  0xbd   : > { %920 = vmatmul.mubr.f32.gmra.mrb[10].mxu1 %v609_v4  ;;  %1300 = vperm.xlu0 %1938, %v1246_v23  }
  0xbe   : > { %1057 = vmatmul.mubr.f32.gmra.mrb[10].mxu0 %v611_v6  ;;  %925 = vmatprep.mubr.f32.mxu1 %v615_v7 }
  0xbf   : > { %1062 = vmatprep.mubr.f32.mxu0 %v617_v8 }
  0xc0   : > { %1351 = vperm.xlu1 %1939, %v1333_v27  }
  0xc1   : > { %926 = vmatmul.mubr.f32.gmra.mrb[12].mxu1 %v614_v10  ;;  %1346 = vperm.xlu0 %1938, %v1332_v29  }
  0xc2   : > { %1063 = vmatmul.mubr.f32.gmra.mrb[12].mxu0 %v616_v12  ;;  %931 = vmatprep.mubr.f32.mxu1 %v620_v13 }
  0xc3   : > { %1068 = vmatprep.mubr.f32.mxu0 %v622_v14 }
  0xc4   : > { %1361 = vperm.xlu1 %1939, %v1335_v33  }
  0xc5   : > { %932 = vmatmul.mubr.f32.gmra.mrb[14].mxu1 %v619_v16  ;;  %1356 = vperm.xlu0 %1938, %v1334_v35  }
  0xc6   : > { %1069 = vmatmul.mubr.f32.gmra.mrb[14].mxu0 %v621_v18  ;;  %937 = vmatprep.mubr.f32.mxu1 %v625_v19 }
  0xc7   : > { %1074 = vmatprep.mubr.f32.mxu0 %v627_v20 }
  0xc8   : > { %1371 = vperm.xlu1 %1939, %v1337_v39  }
  0xc9   : > { %938 = vmatmul.mubr.f32.gmra.mrb[16].mxu1 %v624_v22  ;;  %1366 = vperm.xlu0 %1938, %v1336_v41  }
  0xca   : > { %1075 = vmatmul.mubr.f32.gmra.mrb[16].mxu0 %v626_v24  ;;  %943 = vmatprep.mubr.f32.mxu1 %v630_v25 }
  0xcb   : > { %1080 = vmatprep.mubr.f32.mxu0 %v632_v26 }
  0xcc   : > { %1381 = vperm.xlu1 %1939, %v1339_v43  }
  0xcd   : > { %944 = vmatmul.mubr.f32.gmra.mrb[18].mxu1 %v629_v28  ;;  %1376 = vperm.xlu0 %1938, %v1338_v46  }
  0xce   : > { %1081 = vmatmul.mubr.f32.gmra.mrb[18].mxu0 %v631_v30  ;;  %949 = vmatprep.mubr.f32.mxu1 %v635_v31 }
  0xcf   : > { %1086 = vmatprep.mubr.f32.mxu0 %v637_v32 }
  0xd0   : > { %1391 = vperm.xlu1 %1939, %v1341_v48  }
  0xd1   : > { %950 = vmatmul.mubr.f32.gmra.mrb[20].mxu1 %v634_v34  ;;  %1386 = vperm.xlu0 %1938, %v1340_v50  }
  0xd2   : > { %1087 = vmatmul.mubr.f32.gmra.mrb[20].mxu0 %v636_v36  ;;  %955 = vmatprep.mubr.f32.mxu1 %v640_v37 }
  0xd3   : > { %1092 = vmatprep.mubr.f32.mxu0 %v642_v38 }
  0xd4   : > { %1401 = vperm.xlu1 %1939, %v1343_v52  }
  0xd5   : > { %956 = vmatmul.mubr.f32.gmra.mrb[22].mxu1 %v639_v40  ;;  %1396 = vperm.xlu0 %1938, %v1342_v54  }
  0xd6   : > { %1093 = vmatmul.mubr.f32.gmra.mrb[22].mxu0 %v641_v42  ;;  %1199 = vmatprep.mubr.f32.mxu1 %v1981_v44 }
  0xd7   : > { %1163 = vmatprep.mubr.f32.mxu0 %v1981_v44 }
  0xd9   : > { %1681 = vmatmul.mubr.msk.f32.vlgmr.msra.gmra.mrb[24].mxu1 %vm788_vm0, %v618_v45 }
  0xda   : > { %1675 = vmatmul.mubr.msk.f32.vlgmr.msra.gmra.mrb[0].mxu0 %vm788_vm0, %v588_v47  ;;  %1205 = vmatprep.mubr.f32.mxu1 %v1981_v44 }
  0xdb   : > { %1169 = vmatprep.mubr.f32.mxu0 %v1981_v44 }
  0xdd   : > { %1682 = vmatmul.mubr.msk.f32.gmra.mrb[26].mxu1 %vm788_vm0, %v623_v49 }
  0xde   : > { %1676 = vmatmul.mubr.msk.f32.gmra.mrb[2].mxu0 %vm788_vm0, %v593_v51  ;;  %1211 = vmatprep.mubr.f32.mxu1 %v1981_v44 }
  0xdf   : > { %1175 = vmatprep.mubr.f32.mxu0 %v1981_v44 }
  0xe1   : > { %1683 = vmatmul.mubr.msk.f32.gmra.mrb[28].mxu1 %vm788_vm0, %v628_v53 }
  0xe2   : > { %1677 = vmatmul.mubr.msk.f32.gmra.mrb[4].mxu0 %vm788_vm0, %v598_v55  ;;  %1217 = vmatprep.mubr.f32.mxu1 %v1981_v44 }
  0xe3   : > { %1181 = vmatprep.mubr.f32.mxu0 %v1981_v44 }
  0xe5   : > { %1684 = vmatmul.mubr.msk.f32.gmra.mrb[30].mxu1 %vm788_vm0, %v633_v56 }
  0xe6   : > { %1678 = vmatmul.mubr.msk.f32.gmra.mrb[6].mxu0 %vm788_vm0, %v603_v57  ;;  %1223 = vmatprep.mubr.f32.mxu1 %v1981_v44 }
  0xe7   : > { %1187 = vmatprep.mubr.f32.mxu0 %v1981_v44 }
  0xe9   : > { %1685 = vmatmul.mubr.msk.f32.gmra.mrb[32].mxu1 %vm788_vm0, %v638_v58 }
  0xea   : > { %1679 = vmatmul.mubr.msk.f32.gmra.mrb[8].mxu0 %vm788_vm0, %v608_v59  ;;  %1229 = vmatprep.mubr.f32.mxu1 %v1981_v44 }
  0xeb   : > { %1193 = vmatprep.mubr.f32.mxu0 %v1981_v44 }
  0xed   : > { %1686 = vmatmul.mubr.msk.f32.gmra.mrb[34].mxu1 %vm788_vm0, %v643_v60 }
  0xee   : > { %1680 = vmatmul.mubr.msk.f32.gmra.mrb[10].mxu0 %vm788_vm0, %v613_v61 }
 0x113   : > { %v2768_v1 = vpop.permute.xlu1 %1260 }
 0x114   : > { %v2762_v62 = vpop.permute.xlu0 %1250 }
 0x11f   : > { %v2776_v5 = vpop.permute.xlu1 %1265 }
 0x120   : > { %v2770_v2 = vpop.permute.xlu0 %1255 }
 0x123   : > { %v2788_v11 = vpop.permute.xlu1 %1275 }
 0x124   : > { %v2782_v8 = vpop.permute.xlu0 %1270 }
 0x127   : > { %v2796_v15 = vpop.permute.xlu1 %1285 }
 0x128   : > { %v2790_v12 = vpop.permute.xlu0 %1280 }
 0x137   : > { %v2804_v22 = vpop.permute.xlu1 %1295 }
 0x138   : > { %v2802_v18 = vpop.permute.xlu0 %1290 }
 0x13b   : > { %v2808_v33 = vpop.permute.xlu1 %1305 }
 0x13c   : > { %v2806_v26 = vpop.permute.xlu0 %1300 }
 0x13f   : > { %v2814_v44 = vpop.permute.xlu1 %1351 }
 0x140   : > { %v1347_v37 = vpop.permute.xlu0 %1346 }
 0x143   : > { %v2826_v55 = vpop.permute.xlu1 %1361 }
 0x144   : > { %v2820_v48 = vpop.permute.xlu0 %1356 }
 0x148   : > { %v2828_v59 = vpop.permute.xlu0 %1366 }
 0x17c   : > { %v2764_v63 = vpop.f32.mrb[0].mxu1 }
 0x17d   : > { %v2766_v0 = vpop.f32.mrb[1].mxu1 }
 0x180   : > { %v2772_v3 = vpop.f32.mrb[2].mxu1 }
 0x181   : > { %v2774_v4 = vpop.f32.mrb[3].mxu1 }
 0x184   : > { %v2778_v6 = vpop.f32.mrb[4].mxu1 }
 0x185   : > { %v2780_v7 = vpop.f32.mrb[5].mxu1 }
 0x188   : > { %v2784_v9 = vpop.f32.mrb[6].mxu1 }
 0x189   : > { %v2786_v10 = vpop.f32.mrb[7].mxu1 }
 0x18c   : > { %v2792_v13 = vpop.f32.mrb[8].mxu1 }
 0x18d   : > { %v2794_v14 = vpop.f32.mrb[9].mxu1 }
 0x190   : > { %v2798_v16 = vpop.f32.mrb[10].mxu1 }
 0x191   : > { %v2800_v17 = vpop.f32.mrb[11].mxu1 }
 0x194   : > { %v927_v19 = vpop.f32.mrb[12].mxu1 }
 0x195   : > { %v1064_v20 = vpop.f32.mrb[12].mxu0  ;;  %v929_v21 = vpop.f32.mrb[13].mxu1 }
 0x196   : > { %v1065_v23 = vadd.f32 %v1064_v20, %v927_v19  ;;  %v1066_v24 = vpop.f32.mrb[13].mxu0 }
 0x197   : > { %v1067_v25 = vadd.f32 %v1066_v24, %v929_v21 }
 0x198   : > { %v933_v27 = vpop.f32.mrb[14].mxu1 }
 0x199   : > { %v1070_v28 = vpop.f32.mrb[14].mxu0  ;;  %v935_v29 = vpop.f32.mrb[15].mxu1 }
 0x19a   : > { %v1071_v30 = vadd.f32 %v1070_v28, %v933_v27  ;;  %v1072_v31 = vpop.f32.mrb[15].mxu0  ;;  %v2834_v28 = vpop.permute.xlu1 %1371 }
 0x19b   : > { %v1073_v32 = vadd.f32 %v1072_v31, %v935_v29 }
 0x19c   : > { %v939_v34 = vpop.f32.mrb[16].mxu1 }
 0x19d   : > { %v1076_v35 = vpop.f32.mrb[16].mxu0  ;;  %v941_v36 = vpop.f32.mrb[17].mxu1 }
 0x19e   : > { %v2810_v38 = vadd.f32 %v1076_v35, %v939_v34  ;;  %v1078_v39 = vpop.f32.mrb[17].mxu0 }
 0x19f   : > { %v2812_v40 = vadd.f32 %v1078_v39, %v941_v36  ;;  %v1377_v39 = vpop.permute.xlu0 %1376 }
 0x1a0   : > { %v945_v41 = vpop.f32.mrb[18].mxu1 }
 0x1a1   : > { %v1082_v42 = vpop.f32.mrb[18].mxu0  ;;  %v947_v43 = vpop.f32.mrb[19].mxu1 }
 0x1a2   : > { %v2816_v45 = vadd.f32 %v1082_v42, %v945_v41  ;;  %v1084_v46 = vpop.f32.mrb[19].mxu0 }
 0x1a3   : > { %v2818_v47 = vadd.f32 %v1084_v46, %v947_v43 }
 0x1a4   : > { %v951_v49 = vpop.f32.mrb[20].mxu1 }
 0x1a5   : > { %v1088_v50 = vpop.f32.mrb[20].mxu0  ;;  %v953_v51 = vpop.f32.mrb[21].mxu1 }
 0x1a6   : > { %v2822_v52 = vadd.f32 %v1088_v50, %v951_v49  ;;  %v1090_v53 = vpop.f32.mrb[21].mxu0 }
 0x1a7   : > { %v2824_v54 = vadd.f32 %v1090_v53, %v953_v51 }
 0x1a8   : > { %v957_v56 = vpop.f32.mrb[22].mxu1 }
 0x1a9   : > { %v1094_v57 = vpop.f32.mrb[22].mxu0  ;;  %v959_v58 = vpop.f32.mrb[23].mxu1 }
 0x1aa   : > { %v2830_v60 = vadd.f32 %v1094_v57, %v957_v56  ;;  %v1096_v61 = vpop.f32.mrb[23].mxu0 }
 0x1ab   : > { %v2832_v19 = vadd.f32 %v1096_v61, %v959_v58 }
 0x1ac   : > { %v1201_v20 = vpop.f32.mrb[24].mxu1 }
 0x1ad   : > { %v1165_v21 = vpop.f32.mrb[0].mxu0  ;;  %v1202_v24 = vadd.f32 %v1201_v20, %v1065_v23  ;;  %v1203_v27 = vpop.f32.mrb[25].mxu1 }
 0x1ae   : > { %v1845_v29 = vadd.f32 %v1165_v21, %v2764_v63  ;;  %v1167_v31 = vpop.f32.mrb[1].mxu0  ;;  %v1204_v34 = vadd.f32 %v1203_v27, %v1067_v25 }
 0x1af   : > { %v1320_v35 = vmul.f32 %v2790_v12, %v1202_v24  ;;  %v1846_v36 = vadd.f32 %v1167_v31, %v2766_v0 }
 0x1b0   : > { %v1308_v41 = vmul.f32 %v1845_v29, %v2762_v62  ;;  %v1321_v42 = vmul.f32 %v2790_v12, %v1204_v34  ;;  %v1207_v43 = vpop.f32.mrb[26].mxu1  ;;  %v1382_v12 = vpop.permute.xlu1 %1381 }
 0x1b1   : > { %v1416_v23 = vadd.f32 %v1377_v39, %v1320_v35  ;;  %v1309_v46 = vmul.f32 %v1846_v36, %v2762_v62  ;;  %v1171_v49 = vpop.f32.mrb[2].mxu0  ;;  %v1208_v50 = vadd.f32 %v1207_v43, %v1071_v30  ;;  %v1209_v51 = vpop.f32.mrb[27].mxu1 }
 0x1b2   : > { %v1404_v53 = vadd.f32 %v1347_v37, %v1308_v41  ;;  %v1417_v63 = vadd.f32 %v1377_v39, %v1321_v42  ;;  %v1847_v25 = vadd.f32 %v1171_v49, %v2772_v3  ;;  %v1173_v56 = vpop.f32.mrb[3].mxu0  ;;  %v1210_v57 = vadd.f32 %v1209_v51, %v1073_v32  ;;  %v1387_v43 = vpop.permute.xlu0 %1386 }
 0x1b3   : > { %v1440_v58 = vmax.f32 %v1416_v23, 0.0  ;;  %v1405_v0 = vadd.f32 %v1347_v37, %v1309_v46  ;;  %v1322_v61 = vmul.f32 %v2796_v15, %v1208_v50  ;;  %v1848_v20 = vadd.f32 %v1173_v56, %v2774_v4 }
 0x1b4   : > { %v1428_v21 = vmax.f32 %v1404_v53, 0.0  ;;  %v1441_v24 = vmax.f32 %v1417_v63, 0.0  ;;  %v1310_v62 = vmul.f32 %v1847_v25, %v2770_v2  ;;  %v1323_v30 = vmul.f32 %v2796_v15, %v1210_v57  ;;  %v1213_v27 = vpop.f32.mrb[28].mxu1 }
 0x1b5   : > { %1464 = vst [vmem:[%s2849_s15 + $0x60] sm:$0xff] %v1440_v58  ;;  %v1429_v3 = vmax.f32 %v1405_v0, 0.0  ;;  %v1418_v32 = vadd.f32 %v1382_v12, %v1322_v61  ;;  %v1311_v37 = vmul.f32 %v1848_v20, %v2770_v2  ;;  %v1177_v4 = vpop.f32.mrb[4].mxu0  ;;  %v1214_v29 = vadd.f32 %v1213_v27, %v2810_v38  ;;  %v1215_v31 = vpop.f32.mrb[29].mxu1 }
 0x1b6   : > { %1452 = vst [vmem:[%s2849_s15] sm:$0xff] %v1428_v21  ;;  %1465 = vst [vmem:[%s2849_s15 + $0x68] sm:$0xff] %v1441_v24  ;;  %v1406_v15 = vadd.f32 %v2814_v44, %v1310_v62  ;;  %v1419_v34 = vadd.f32 %v1382_v12, %v1323_v30  ;;  %v1849_v35 = vadd.f32 %v1177_v4, %v2778_v6  ;;  %v1179_v36 = vpop.f32.mrb[5].mxu0  ;;  %v1392_v20 = vpop.permute.xlu1 %1391 }
 0x1b7   : > { %v1216_v39 = vadd.f32 %v1215_v31, %v2812_v40  ;;  %1453 = vst [vmem:[%s2849_s15 + $0x8] sm:$0xff] %v1429_v3  ;;  %v1442_v41 = vmax.f32 %v1418_v32, 0.0  ;;  %v1407_v42 = vadd.f32 %v2814_v44, %v1311_v37  ;;  %v1324_v2 = vmul.f32 %v2802_v18, %v1214_v29 }
 0x1b8   : > { %v1850_v38 = vadd.f32 %v1179_v36, %v2780_v7  ;;  %v1430_v23 = vmax.f32 %v1406_v15, 0.0  ;;  %v1443_v46 = vmax.f32 %v1419_v34, 0.0  ;;  %v1312_v49 = vmul.f32 %v1849_v35, %v2768_v1  ;;  %v1219_v50 = vpop.f32.mrb[30].mxu1  ;;  %v1397_v34 = vpop.permute.xlu0 %1396 }
 0x1b9   : > { %v1325_v6 = vmul.f32 %v2802_v18, %v1216_v39  ;;  %1466 = vst [vmem:[%s2849_s15 + $0x70] sm:$0xff] %v1442_v41  ;;  %v1431_v40 = vmax.f32 %v1407_v42, 0.0  ;;  %v1420_v51 = vadd.f32 %v1387_v43, %v1324_v2  ;;  %v1183_v53 = vpop.f32.mrb[6].mxu0  ;;  %v1220_v63 = vadd.f32 %v1219_v50, %v2816_v45  ;;  %v1221_v25 = vpop.f32.mrb[31].mxu1 }
 0x1ba   : > { %v1313_v44 = vmul.f32 %v1850_v38, %v2768_v1  ;;  %1454 = vst [vmem:[%s2849_s15 + $0x10] sm:$0xff] %v1430_v23  ;;  %1467 = vst [vmem:[%s2849_s15 + $0x78] sm:$0xff] %v1443_v46  ;;  %v1408_v7 = vadd.f32 %v2820_v48, %v1312_v49  ;;  %v1851_v57 = vadd.f32 %v1183_v53, %v2784_v9  ;;  %v1185_v18 = vpop.f32.mrb[7].mxu0 }
 0x1bb   : > { %v1421_v56 = vadd.f32 %v1387_v43, %v1325_v6  ;;  %v1222_v58 = vadd.f32 %v1221_v25, %v2818_v47  ;;  %1455 = vst [vmem:[%s2849_s15 + $0x18] sm:$0xff] %v1431_v40  ;;  %v1444_v0 = vmax.f32 %v1420_v51, 0.0  ;;  %v1326_v1 = vmul.f32 %v2804_v22, %v1220_v63  ;;  %v1402_v40 = vpop.permute.xlu1 %1401 }
 0x1bc   : > { %v1409_v61 = vadd.f32 %v2820_v48, %v1313_v44  ;;  %v1852_v45 = vadd.f32 %v1185_v18, %v2786_v10  ;;  %v1432_v12 = vmax.f32 %v1408_v7, 0.0  ;;  %v1314_v24 = vmul.f32 %v1851_v57, %v2776_v5  ;;  %v1225_v62 = vpop.f32.mrb[32].mxu1 }
 0x1bd   : > { %v1445_v21 = vmax.f32 %v1421_v56, 0.0  ;;  %v1327_v9 = vmul.f32 %v2804_v22, %v1222_v58  ;;  %1468 = vst [vmem:[%s2849_s15 + $0x80] sm:$0xff] %v1444_v0  ;;  %v1422_v30 = vadd.f32 %v1392_v20, %v1326_v1  ;;  %v1189_v27 = vpop.f32.mrb[8].mxu0  ;;  %v1226_v3 = vadd.f32 %v1225_v62, %v2822_v52  ;;  %v1227_v32 = vpop.f32.mrb[33].mxu1  ;;  %v1525_v62 = vld [vmem:[%s2849_s15 + $0x60] sm:$0xff] (%p2042_p6) }
 0x1be   : > { %v1433_v47 = vmax.f32 %v1409_v61, 0.0  ;;  %v1315_v48 = vmul.f32 %v1852_v45, %v2776_v5  ;;  %1456 = vst [vmem:[%s2849_s15 + $0x20] sm:$0xff] %v1432_v12  ;;  %v1410_v10 = vadd.f32 %v2826_v55, %v1314_v24  ;;  %v1853_v4 = vadd.f32 %v1189_v27, %v2792_v13  ;;  %v1191_v22 = vpop.f32.mrb[9].mxu0  ;;  %1526 = vst [vmem:[%s2927_s12 + $0xc0] sm:$0xff] (%p2042_p6), %v1525_v62 }
 0x1bf   : > { %1469 = vst [vmem:[%s2849_s15 + $0x88] sm:$0xff] %v1445_v21  ;;  %v1423_v37 = vadd.f32 %v1392_v20, %v1327_v9  ;;  %v1228_v29 = vadd.f32 %v1227_v32, %v2824_v54  ;;  %v1446_v31 = vmax.f32 %v1422_v30, 0.0  ;;  %v1328_v5 = vmul.f32 %v2806_v26, %v1226_v3 }
 0x1c0   : > { %1457 = vst [vmem:[%s2849_s15 + $0x28] sm:$0xff] %v1433_v47  ;;  %v1411_v15 = vadd.f32 %v2826_v55, %v1315_v48  ;;  %v1854_v52 = vadd.f32 %v1191_v22, %v2794_v14  ;;  %v1434_v35 = vmax.f32 %v1410_v10, 0.0  ;;  %v1316_v39 = vmul.f32 %v1853_v4, %v2782_v8  ;;  %v1231_v41 = vpop.f32.mrb[34].mxu1  ;;  %v1527_v47 = vld [vmem:[%s2849_s15 + $0x68] sm:$0xff] (%p2042_p6)  ;;  %v1529_v30 = vld [vmem:[%s2849_s15 + $0x70] sm:$0xff] (%p2042_p6) }
 0x1c1   : > { %v1447_v36 = vmax.f32 %v1423_v37, 0.0  ;;  %v1329_v13 = vmul.f32 %v2806_v26, %v1228_v29  ;;  %1470 = vst [vmem:[%s2849_s15 + $0x90] sm:$0xff] %v1446_v31  ;;  %v1424_v42 = vadd.f32 %v1397_v34, %v1328_v5  ;;  %v1195_v2 = vpop.f32.mrb[10].mxu0  ;;  %v1232_v38 = vadd.f32 %v1231_v41, %v2830_v60  ;;  %v1233_v43 = vpop.f32.mrb[35].mxu1  ;;  %v1505_v58 = vld [vmem:[%s2849_s15 + $0x10] sm:$0xff] (%p2042_p6)  ;;  %1528 = vst [vmem:[%s2927_s12 + $0xc8] sm:$0xff] (%p2042_p6), %v1527_v47 }
 0x1c2   : > { %v1435_v54 = vmax.f32 %v1411_v15, 0.0  ;;  %v1317_v55 = vmul.f32 %v1854_v52, %v2782_v8  ;;  %1458 = vst [vmem:[%s2849_s15 + $0x30] sm:$0xff] %v1434_v35  ;;  %v1412_v14 = vadd.f32 %v2828_v59, %v1316_v39  ;;  %v1855_v46 = vadd.f32 %v1195_v2, %v2798_v16  ;;  %v1197_v26 = vpop.f32.mrb[11].mxu0  ;;  %v1507_v0 = vld [vmem:[%s2849_s15 + $0x18] sm:$0xff] (%p2042_p6)  ;;  %1506 = vst [vmem:[%s2927_s12 + $0x20] sm:$0xff] (%p2042_p6), %v1505_v58 }
 0x1c3   : > { %1471 = vst [vmem:[%s2849_s15 + $0x98] sm:$0xff] %v1447_v36  ;;  %v1425_v23 = vadd.f32 %v1397_v34, %v1329_v13  ;;  %v1234_v49 = vadd.f32 %v1233_v43, %v2832_v19  ;;  %v1448_v6 = vmax.f32 %v1424_v42, 0.0  ;;  %v1330_v60 = vmul.f32 %v2808_v33, %v1232_v38  ;;  %1508 = vst [vmem:[%s2927_s12 + $0x28] sm:$0xff] (%p2042_p6), %v1507_v0  ;;  %v1531_v48 = vld [vmem:[%s2849_s15 + $0x78] sm:$0xff] (%p2042_p6) }
 0x1c4   : > { %1459 = vst [vmem:[%s2849_s15 + $0x38] sm:$0xff] %v1435_v54  ;;  %v1413_v8 = vadd.f32 %v2828_v59, %v1317_v55  ;;  %v1856_v50 = vadd.f32 %v1197_v26, %v2800_v17  ;;  %v1436_v51 = vmax.f32 %v1412_v14, 0.0  ;;  %v1318_v16 = vmul.f32 %v1855_v46, %v2788_v11  ;;  %1530 = vst [vmem:[%s2927_s12 + $0xe0] sm:$0xff] (%p2042_p6), %v1529_v30  ;;  %v1533_v27 = vld [vmem:[%s2849_s15 + $0x80] sm:$0xff] (%p2042_p6) }
 0x1c5   : > { %v1449_v44 = vmax.f32 %v1425_v23, 0.0  ;;  %v1331_v53 = vmul.f32 %v2808_v33, %v1234_v49  ;;  %1472 = vst [vmem:[%s2849_s15 + $0xa0] sm:$0xff] %v1448_v6  ;;  %v1426_v63 = vadd.f32 %v1402_v40, %v1330_v60  ;;  %v1509_v61 = vld [vmem:[%s2849_s15 + $0x20] sm:$0xff] (%p2042_p6)  ;;  %1532 = vst [vmem:[%s2927_s12 + $0xe8] sm:$0xff] (%p2042_p6), %v1531_v48 }
 0x1c6   : > { %v1437_v19 = vmax.f32 %v1413_v8, 0.0  ;;  %v1319_v59 = vmul.f32 %v1856_v50, %v2788_v11  ;;  %1460 = vst [vmem:[%s2849_s15 + $0x40] sm:$0xff] %v1436_v51  ;;  %v1414_v17 = vadd.f32 %v2834_v28, %v1318_v16  ;;  %1482 = sbr.rel (!%p2042_p6) target bundleno = 469 (0x1d5), region = 63  ;;  %v1501_v11 = vld [vmem:[%s2849_s15] sm:$0xff] (%p2042_p6)  ;;  %1510 = vst [vmem:[%s2927_s12 + $0x40] sm:$0xff] (%p2042_p6), %v1509_v61  ;;  %v1535_v3 = vld [vmem:[%s2849_s15 + $0x88] sm:$0xff] (%p2042_p6) }
 0x1c7   : > { %1473 = vst [vmem:[%s2849_s15 + $0xa8] sm:$0xff] %v1449_v44  ;;  %v1427_v25 = vadd.f32 %v1402_v40, %v1331_v53  ;;  %v1450_v7 = vmax.f32 %v1426_v63, 0.0  ;;  %v1511_v1 = vld [vmem:[%s2849_s15 + $0x28] sm:$0xff] (%p2042_p6)  ;;  %1502 = vst [vmem:[%s2927_s12] sm:$0xff] (%p2042_p6), %v1501_v11 }
 0x1c8   : > { %1461 = vst [vmem:[%s2849_s15 + $0x48] sm:$0xff] %v1437_v19  ;;  %v1415_v56 = vadd.f32 %v2834_v28, %v1319_v59  ;;  %v1438_v57 = vmax.f32 %v1414_v17, 0.0  ;;  %v1503_v28 = vld [vmem:[%s2849_s15 + $0x8] sm:$0xff] (%p2042_p6)  ;;  %1512 = vst [vmem:[%s2927_s12 + $0x48] sm:$0xff] (%p2042_p6), %v1511_v1  ;;  %v1537_v32 = vld [vmem:[%s2849_s15 + $0x90] sm:$0xff] (%p2042_p6) }
 0x1c9   : > { %v1451_v18 = vmax.f32 %v1427_v25, 0.0  ;;  %1474 = vst [vmem:[%s2849_s15 + $0xb0] sm:$0xff] %v1450_v7  ;;  %1504 = vst [vmem:[%s2927_s12 + $0x8] sm:$0xff] (%p2042_p6), %v1503_v28  ;;  %v1513_v45 = vld [vmem:[%s2849_s15 + $0x30] sm:$0xff] (%p2042_p6) }
 0x1ca   : > { %v1439_v33 = vmax.f32 %v1415_v56, 0.0  ;;  %1462 = vst [vmem:[%s2849_s15 + $0x50] sm:$0xff] %v1438_v57  ;;  %1514 = vst [vmem:[%s2927_s12 + $0x60] sm:$0xff] (%p2042_p6), %v1513_v45  ;;  %v1539_v10 = vld [vmem:[%s2849_s15 + $0x98] sm:$0xff] (%p2042_p6) }
 0x1cb   : > { %1475 = vst [vmem:[%s2849_s15 + $0xb8] sm:$0xff] %v1451_v18  ;;  %v1515_v20 = vld [vmem:[%s2849_s15 + $0x38] sm:$0xff] (%p2042_p6)  ;;  %1534 = vst [vmem:[%s2927_s12 + $0x100] sm:$0xff] (%p2042_p6), %v1533_v27 }
 0x1cc   : > { %1463 = vst [vmem:[%s2849_s15 + $0x58] sm:$0xff] %v1439_v33  ;;  %1516 = vst [vmem:[%s2927_s12 + $0x68] sm:$0xff] (%p2042_p6), %v1515_v20  ;;  %v1541_v37 = vld [vmem:[%s2849_s15 + $0xa0] sm:$0xff] (%p2042_p6) }
 0x1cd   : > { %v1517_v12 = vld [vmem:[%s2849_s15 + $0x40] sm:$0xff]  ;;  %1536 = vst [vmem:[%s2927_s12 + $0x108] sm:$0xff] %v1535_v3  ;;  %1538 = vst [vmem:[%s2927_s12 + $0x120] sm:$0xff] %v1537_v32 }
 0x1ce   : > { %1518 = vst [vmem:[%s2927_s12 + $0x80] sm:$0xff] %v1517_v12  ;;  %1540 = vst [vmem:[%s2927_s12 + $0x128] sm:$0xff] %v1539_v10  ;;  %v1543_v4 = vld [vmem:[%s2849_s15 + $0xa8] sm:$0xff] }
 0x1cf   : > { %v1519_v21 = vld [vmem:[%s2849_s15 + $0x48] sm:$0xff]  ;;  %1542 = vst [vmem:[%s2927_s12 + $0x140] sm:$0xff] %v1541_v37  ;;  %1544 = vst [vmem:[%s2927_s12 + $0x148] sm:$0xff] %v1543_v4 }
 0x1d0   : > { %1520 = vst [vmem:[%s2927_s12 + $0x88] sm:$0xff] %v1519_v21  ;;  %v1545_v22 = vld [vmem:[%s2849_s15 + $0xb0] sm:$0xff] }
 0x1d1   : > { %v1521_v24 = vld [vmem:[%s2849_s15 + $0x50] sm:$0xff]  ;;  %1546 = vst [vmem:[%s2927_s12 + $0x160] sm:$0xff] %v1545_v22 }
 0x1d2   : > { %1522 = vst [vmem:[%s2927_s12 + $0xa0] sm:$0xff] %v1521_v24  ;;  %v1547_v29 = vld [vmem:[%s2849_s15 + $0xb8] sm:$0xff] }
 0x1d3   : > { %v1523_v9 = vld [vmem:[%s2849_s15 + $0x58] sm:$0xff]  ;;  %1548 = vst [vmem:[%s2927_s12 + $0x168] sm:$0xff] %v1547_v29 }
 0x1d4   : > { %1524 = vst [vmem:[%s2927_s12 + $0xa8] sm:$0xff] %v1523_v9 }
 0x1d5 PF: > { %s14_s19 = sadd.s32 1, %s1978_s19   ;;  %s2995_s15 = smov %s1966_s16 }
 0x1d6   : > { %p11_p11 = scmp.ge.s32.totalorder %s14_s19, 4   ;;  %s2996_s16 = smov %s2047_s25 }
 0x1d7   : > { %s2997_s17 = smov %s1974_s18  ;;  %s2998_s18 = smov %s3000_s20 }
 0x1d8   :  { %13 = sbr.rel (!%p11_p11) target bundleno = 3 (0x3), region = 126 }

// kernel: inception_b_forward.8
= control target key start
LH: loop header
LB: loop body
LE: loop exit
PB: predicated region body
PF: predicated region fallthrough
CT: control target
= control target key end

     0   :  { %s1461_s15 = smov 0   ;;  %s1463_s16 = smov 0   ;;  %s1912_s0 = inlined_call_operand.vmem [shape: f32[864,128], index: 0, kind: input, shape index: {}]   ;;  %s1913_s1 = inlined_call_operand.vmem [shape: f32[96,864], index: 1, kind: input, shape index: {}]   ;;  %s1914_s2 = inlined_call_operand.vmem [shape: f32[96,1], index: 2, kind: input, shape index: {}]   ;;  %s1915_s3 = inlined_call_operand.vmem [shape: f32[96,1], index: 3, kind: input, shape index: {}]   ;;  %s1916_s4 = inlined_call_operand.vmem [shape: f32[96,128], index: 4, kind: output, shape index: {}]  }
   0x1   :  { %s1465_s17 = smov 0  }
   0x2 LB: > { %s26_s18 = sadd.s32 1, %s1429_s16  ;;  %p1049_p0 = scmp.ge.s32.totalorder %s1433_s17, 1  ;;  %s1433_s17 = sphi %s1465_s17, %s14_s17   ;;  %s1429_s16 = sphi %s1463_s16, %s1919_s16   ;;  %s1425_s15 = sphi %s1461_s15, %s1918_s15  }
   0x3   : > { %p28_p1 = scmp.ge.s32.totalorder %s26_s18, 2  ;;  %p209_p2 = scmp.lt.s32.totalorder %s1433_s17, 3 }
   0x5   : > { %s1921_s18 = smov (%p28_p1, %s26_s18), 0  ;;  %p210_p3 = pnand %p1049_p0, %p209_p2 }
   0x6   : > { %v343_v0 = vld [vmem:[%s1912_s0 + $0x80] sm:$0xff] (!%p210_p3)  ;;  %v344_v1 = vld [vmem:[%s1912_s0 + $0x88] sm:$0xff] (!%p210_p3)  ;;  %v1435_v7 = vmov (!%p210_p3), 0   ;;  %v345_v12 = vld [vmem:[%s1912_s0 + $0x90] sm:$0xff] (!%p210_p3)  ;;  %s257_s11 = smul.u32 (!%p210_p3), 6, %s1425_s15  ;;  %vm435_vm0 = vcmask (!%p210_p3), 785408  }
   0x7   : > { %213 = sbr.rel (%p210_p3) target bundleno = 320 (0x140), region = 36  ;;  %v375_v2 = vld [vmem:[%s1912_s0 + $0x180] sm:$0xff] (!%p210_p3)  ;;  %v1263_v3 = vpack.c.bf16 (!%p210_p3), %v344_v1, %v343_v0  ;;  %v376_v4 = vld [vmem:[%s1912_s0 + $0x188] sm:$0xff] (!%p210_p3)  ;;  %1410 = vset.pattern.permute.xlu1 (!%p210_p3), %v1435_v7  ;;  %1409 = vset.pattern.permute.xlu0 (!%p210_p3), %v1435_v7  ;;  %v346_v14 = vld [vmem:[%s1912_s0 + $0x98] sm:$0xff] (!%p210_p3) }
   0x8   : > { %v327_v5 = vld [vmem:[%s1912_s0] sm:$0xff] (!%p210_p3)  ;;  %v328_v6 = vld [vmem:[%s1912_s0 + $0x8] sm:$0xff] (!%p210_p3)  ;;  %v1295_v8 = vpack.c.bf16 (!%p210_p3), %v376_v4, %v375_v2  ;;  %v377_v15 = vld [vmem:[%s1912_s0 + $0x190] sm:$0xff] (!%p210_p3)  ;;  %v1267_v17 = vpack.c.bf16 (!%p210_p3), %v346_v14, %v345_v12  ;;  %p1547_p4 = scmp.lt.s32.totalorder (!%p210_p3), %s257_s11, 11 }
   0x9   : > { %v1265_v9 = vpack.c.bf16 (!%p210_p3), %v328_v6, %v327_v5  ;;  %v359_v10 = vld [vmem:[%s1912_s0 + $0x100] sm:$0xff] (!%p210_p3)  ;;  %v360_v11 = vld [vmem:[%s1912_s0 + $0x108] sm:$0xff] (!%p210_p3)  ;;  %1264 = vmatprep.subr.bf16.mxu0 (!%p210_p3), %v1263_v3  ;;  %v378_v16 = vld [vmem:[%s1912_s0 + $0x198] sm:$0xff] (!%p210_p3) }
   0xa   : > { %v1297_v13 = vpack.c.bf16 (!%p210_p3), %v360_v11, %v359_v10  ;;  %1296 = vmatprep.subr.bf16.mxu1 (!%p210_p3), %v1295_v8  ;;  %v1299_v18 = vpack.c.bf16 (!%p210_p3), %v378_v16, %v377_v15  ;;  %v329_v19 = vld [vmem:[%s1912_s0 + $0x10] sm:$0xff] (!%p210_p3)  ;;  %v330_v20 = vld [vmem:[%s1912_s0 + $0x18] sm:$0xff] (!%p210_p3)  ;;  %v347_v24 = vld [vmem:[%s1912_s0 + $0xa0] sm:$0xff] (!%p210_p3) }
   0xb   : > { %1266 = vmatpush3.bf16.msra.mxu0 (!%p210_p3), %v1265_v9  ;;  %v361_v21 = vld [vmem:[%s1912_s0 + $0x110] sm:$0xff] (!%p210_p3)  ;;  %v1269_v22 = vpack.c.bf16 (!%p210_p3), %v330_v20, %v329_v19  ;;  %v362_v23 = vld [vmem:[%s1912_s0 + $0x118] sm:$0xff] (!%p210_p3)  ;;  %v348_v25 = vld [vmem:[%s1912_s0 + $0xa8] sm:$0xff] (!%p210_p3) }
   0xc   : > { %1298 = vmatpush3.bf16.msra.mxu1 (!%p210_p3), %v1297_v13  ;;  %1268 = vmatprep.subr.bf16.mxu0 (!%p210_p3), %v1267_v17  ;;  %v1301_v26 = vpack.c.bf16 (!%p210_p3), %v362_v23, %v361_v21  ;;  %v1271_v27 = vpack.c.bf16 (!%p210_p3), %v348_v25, %v347_v24  ;;  %v379_v28 = vld [vmem:[%s1912_s0 + $0x1a0] sm:$0xff] (!%p210_p3)  ;;  %v380_v29 = vld [vmem:[%s1912_s0 + $0x1a8] sm:$0xff] (!%p210_p3)  ;;  %v349_v36 = vld [vmem:[%s1912_s0 + $0xb0] sm:$0xff] (!%p210_p3) }
   0xd   : > { %1300 = vmatprep.subr.bf16.mxu1 (!%p210_p3), %v1299_v18  ;;  %v331_v30 = vld [vmem:[%s1912_s0 + $0x20] sm:$0xff] (!%p210_p3)  ;;  %v1303_v31 = vpack.c.bf16 (!%p210_p3), %v380_v29, %v379_v28  ;;  %v332_v32 = vld [vmem:[%s1912_s0 + $0x28] sm:$0xff] (!%p210_p3)  ;;  %v350_v37 = vld [vmem:[%s1912_s0 + $0xb8] sm:$0xff] (!%p210_p3) }
   0xe   : > { %v363_v33 = vld [vmem:[%s1912_s0 + $0x120] sm:$0xff]  ;;  %v364_v34 = vld [vmem:[%s1912_s0 + $0x128] sm:$0xff]  ;;  %v1273_v35 = vpack.c.bf16 %v332_v32, %v331_v30  ;;  %v381_v38 = vld [vmem:[%s1912_s0 + $0x1b0] sm:$0xff]  ;;  %v1275_v40 = vpack.c.bf16 %v350_v37, %v349_v36  ;;  %s1923_s11 = smov (!%p1547_p4, %s257_s11), 11 }
   0xf   : > { %1270 = vmatpush3.bf16.msra.mxu0 %v1269_v22  ;;  %v1305_v39 = vpack.c.bf16 %v364_v34, %v363_v33  ;;  %v382_v41 = vld [vmem:[%s1912_s0 + $0x1b8] sm:$0xff]  ;;  %v333_v42 = vld [vmem:[%s1912_s0 + $0x30] sm:$0xff]  ;;  %v351_v47 = vld [vmem:[%s1912_s0 + $0xc0] sm:$0xff]  ;;  %s1383_s20 = smul.u32 56, %s1923_s11  ;;  %s1828_s10 = sshll.u32 %s1923_s11, 3 }
  0x10   : > { %1302 = vmatpush3.bf16.msra.mxu1 %v1301_v26  ;;  %1272 = vmatprep.subr.bf16.mxu0 %v1271_v27  ;;  %v334_v43 = vld [vmem:[%s1912_s0 + $0x38] sm:$0xff]  ;;  %v1307_v44 = vpack.c.bf16 %v382_v41, %v381_v38  ;;  %v365_v45 = vld [vmem:[%s1912_s0 + $0x130] sm:$0xff]  ;;  %v352_v48 = vld [vmem:[%s1912_s0 + $0xc8] sm:$0xff]  ;;  %s1843_s24 = scalar_lea.vmem %s1914_s2, %s1828_s10  ;;  %s274_s6 = scalar_lea.vmem %s1915_s3, %s1828_s10 }
  0x11   : > { %1304 = vmatprep.subr.bf16.mxu1 %v1303_v31  ;;  %v366_v46 = vld [vmem:[%s1912_s0 + $0x138] sm:$0xff]  ;;  %v383_v49 = vld [vmem:[%s1912_s0 + $0x1c0] sm:$0xff]  ;;  %v384_v50 = vld [vmem:[%s1912_s0 + $0x1c8] sm:$0xff]  ;;  %v1277_v51 = vpack.c.bf16 %v334_v43, %v333_v42  ;;  %v1279_v53 = vpack.c.bf16 %v352_v48, %v351_v47  ;;  %s1648_s12 = scalar_lea.vmem %s1913_s1, %s1383_s20  ;;  %s1895_s8 = scalar_lea.vmem %s1916_s4, %s1828_s10 }
  0x12   : > { %v1309_v52 = vpack.c.bf16 %v366_v46, %v365_v45  ;;  %v335_v54 = vld [vmem:[%s1912_s0 + $0x40] sm:$0xff]  ;;  %v336_v55 = vld [vmem:[%s1912_s0 + $0x48] sm:$0xff]  ;;  %v1311_v57 = vpack.c.bf16 %v384_v50, %v383_v49  ;;  %v353_v59 = vld [vmem:[%s1912_s0 + $0xd0] sm:$0xff] }
  0x13   : > { %1274 = vmatpush3.bf16.msra.mxu0 %v1273_v35  ;;  %v367_v56 = vld [vmem:[%s1912_s0 + $0x140] sm:$0xff]  ;;  %v368_v58 = vld [vmem:[%s1912_s0 + $0x148] sm:$0xff]  ;;  %v354_v60 = vld [vmem:[%s1912_s0 + $0xd8] sm:$0xff]  ;;  %v1281_v63 = vpack.c.bf16 %v336_v55, %v335_v54 }
  0x14   : > { %1306 = vmatpush3.bf16.msra.mxu1 %v1305_v39  ;;  %1276 = vmatprep.subr.bf16.mxu0 %v1275_v40  ;;  %v385_v61 = vld [vmem:[%s1912_s0 + $0x1d0] sm:$0xff]  ;;  %v386_v62 = vld [vmem:[%s1912_s0 + $0x1d8] sm:$0xff]  ;;  %v1313_v0 = vpack.c.bf16 %v368_v58, %v367_v56  ;;  %v1283_v1 = vpack.c.bf16 %v354_v60, %v353_v59  ;;  %v355_v7 = vld [vmem:[%s1912_s0 + $0xe0] sm:$0xff] }
  0x15   : > { %1308 = vmatprep.subr.bf16.mxu1 %v1307_v44  ;;  %v337_v2 = vld [vmem:[%s1912_s0 + $0x50] sm:$0xff]  ;;  %v338_v3 = vld [vmem:[%s1912_s0 + $0x58] sm:$0xff]  ;;  %v1315_v5 = vpack.c.bf16 %v386_v62, %v385_v61  ;;  %v356_v8 = vld [vmem:[%s1912_s0 + $0xe8] sm:$0xff] }
  0x16   : > { %v369_v4 = vld [vmem:[%s1912_s0 + $0x150] sm:$0xff]  ;;  %v370_v6 = vld [vmem:[%s1912_s0 + $0x158] sm:$0xff]  ;;  %v387_v9 = vld [vmem:[%s1912_s0 + $0x1e0] sm:$0xff]  ;;  %v1285_v11 = vpack.c.bf16 %v338_v3, %v337_v2  ;;  %v1287_v15 = vpack.c.bf16 %v356_v8, %v355_v7 }
  0x17   : > { %1278 = vmatpush3.bf16.msra.mxu0 %v1277_v51  ;;  %v388_v10 = vld [vmem:[%s1912_s0 + $0x1e8] sm:$0xff]  ;;  %v339_v12 = vld [vmem:[%s1912_s0 + $0x60] sm:$0xff]  ;;  %v1317_v14 = vpack.c.bf16 %v370_v6, %v369_v4  ;;  %v288_v18 = vld [vmem:[%s1648_s12 + $0x18] sm:$0xff] }
  0x18   : > { %1310 = vmatpush3.bf16.msra.mxu1 %v1309_v52  ;;  %1280 = vmatprep.subr.bf16.mxu0 %v1279_v53  ;;  %v340_v13 = vld [vmem:[%s1912_s0 + $0x68] sm:$0xff]  ;;  %v371_v16 = vld [vmem:[%s1912_s0 + $0x160] sm:$0xff]  ;;  %v1319_v19 = vpack.c.bf16 %v388_v10, %v387_v9  ;;  %v357_v21 = vld [vmem:[%s1912_s0 + $0xf0] sm:$0xff] }
  0x19   : > { %1312 = vmatprep.subr.bf16.mxu1 %v1311_v57  ;;  %v286_v17 = vld [vmem:[%s1648_s12 + $0x8] sm:$0xff]  ;;  %v358_v22 = vld [vmem:[%s1912_s0 + $0xf8] sm:$0xff]  ;;  %v389_v23 = vld [vmem:[%s1912_s0 + $0x1f0] sm:$0xff]  ;;  %613 = vmatprep.mubr.f32.mxu1 %v288_v18  ;;  %v1289_v25 = vpack.c.bf16 %v340_v13, %v339_v12 }
  0x1a   : > { %v372_v20 = vld [vmem:[%s1912_s0 + $0x168] sm:$0xff]  ;;  %518 = vmatprep.mubr.f32.mxu0 %v286_v17  ;;  %v390_v24 = vld [vmem:[%s1912_s0 + $0x1f8] sm:$0xff]  ;;  %v1291_v27 = vpack.c.bf16 %v358_v22, %v357_v21  ;;  %v341_v28 = vld [vmem:[%s1912_s0 + $0x70] sm:$0xff] }
  0x1b   : > { %1282 = vmatpush3.bf16.msra.mxu0 %v1281_v63  ;;  %v1321_v26 = vpack.c.bf16 %v372_v20, %v371_v16  ;;  %v342_v29 = vld [vmem:[%s1912_s0 + $0x78] sm:$0xff]  ;;  %v373_v30 = vld [vmem:[%s1912_s0 + $0x170] sm:$0xff]  ;;  %v1323_v31 = vpack.c.bf16 %v390_v24, %v389_v23  ;;  %v407_v33 = vld [vmem:[%s1912_s0 + $0x280] sm:$0xff] }
  0x1c   : > { %1314 = vmatpush3.bf16.msra.mxu1 %v1313_v0  ;;  %1284 = vmatprep.subr.bf16.mxu0 %v1283_v1  ;;  %v374_v32 = vld [vmem:[%s1912_s0 + $0x178] sm:$0xff]  ;;  %v408_v34 = vld [vmem:[%s1912_s0 + $0x288] sm:$0xff]  ;;  %v1293_v35 = vpack.c.bf16 %v342_v29, %v341_v28  ;;  %v423_v36 = vld [vmem:[%s1912_s0 + $0x300] sm:$0xff] }
  0x1d   : > { %1316 = vmatprep.subr.bf16.mxu1 %v1315_v5  ;;  %v1325_v37 = vpack.c.bf16 %v374_v32, %v373_v30  ;;  %v1327_v38 = vpack.c.bf16 %v408_v34, %v407_v33  ;;  %v391_v39 = vld [vmem:[%s1912_s0 + $0x200] sm:$0xff]  ;;  %v392_v40 = vld [vmem:[%s1912_s0 + $0x208] sm:$0xff]  ;;  %v409_v42 = vld [vmem:[%s1912_s0 + $0x290] sm:$0xff] }
  0x1e   : > { %v424_v41 = vld [vmem:[%s1912_s0 + $0x308] sm:$0xff]  ;;  %v410_v43 = vld [vmem:[%s1912_s0 + $0x298] sm:$0xff]  ;;  %v285_v45 = vld [vmem:[%s1648_s12] sm:$0xff]  ;;  %v1329_v46 = vpack.c.bf16 %v392_v40, %v391_v39 }
  0x1f   : > { %1286 = vmatpush3.bf16.msra.mxu0 %v1285_v11  ;;  %v1359_v44 = vpack.c.bf16 %v424_v41, %v423_v36  ;;  %v425_v47 = vld [vmem:[%s1912_s0 + $0x310] sm:$0xff]  ;;  %v426_v48 = vld [vmem:[%s1912_s0 + $0x318] sm:$0xff]  ;;  %v1331_v50 = vpack.c.bf16 %v410_v43, %v409_v42  ;;  %v411_v53 = vld [vmem:[%s1912_s0 + $0x2a0] sm:$0xff] }
  0x20   : > { %1318 = vmatpush3.bf16.msra.mxu1 %v1317_v14  ;;  %1288 = vmatprep.subr.bf16.mxu0 %v1287_v15  ;;  %v287_v49 = vld [vmem:[%s1648_s12 + $0x10] sm:$0xff]  ;;  %v394_v52 = vld [vmem:[%s1912_s0 + $0x218] sm:$0xff]  ;;  %v412_v54 = vld [vmem:[%s1912_s0 + $0x2a8] sm:$0xff]  ;;  %v1363_v57 = vpack.c.bf16 %v426_v48, %v425_v47 }
  0x21   : > { %1320 = vmatprep.subr.bf16.mxu1 %v1319_v19  ;;  %v393_v51 = vld [vmem:[%s1912_s0 + $0x210] sm:$0xff]  ;;  %v293_v55 = vld [vmem:[%s1648_s12 + $0x40] sm:$0xff]  ;;  %v292_v59 = vld [vmem:[%s1648_s12 + $0x38] sm:$0xff]  ;;  %v1335_v62 = vpack.c.bf16 %v412_v54, %v411_v53 }
  0x22   : > { %v295_v56 = vld [vmem:[%s1648_s12 + $0x50] sm:$0xff]  ;;  %v1333_v58 = vpack.c.bf16 %v394_v52, %v393_v51  ;;  %v427_v60 = vld [vmem:[%s1912_s0 + $0x320] sm:$0xff]  ;;  %v428_v61 = vld [vmem:[%s1912_s0 + $0x328] sm:$0xff] }
  0x23   : > { %1290 = vmatpush3.bf16.msra.mxu0 %v1289_v25  ;;  %v395_v63 = vld [vmem:[%s1912_s0 + $0x220] sm:$0xff]  ;;  %v396_v0 = vld [vmem:[%s1912_s0 + $0x228] sm:$0xff]  ;;  %v413_v2 = vld [vmem:[%s1912_s0 + $0x2b0] sm:$0xff]  ;;  %v1367_v6 = vpack.c.bf16 %v428_v61, %v427_v60 }
  0x24   : > { %1322 = vmatpush3.bf16.msra.mxu1 %v1321_v26  ;;  %1292 = vmatprep.subr.bf16.mxu0 %v1291_v27  ;;  %v294_v1 = vld [vmem:[%s1648_s12 + $0x48] sm:$0xff]  ;;  %v414_v3 = vld [vmem:[%s1912_s0 + $0x2b8] sm:$0xff]  ;;  %v1337_v7 = vpack.c.bf16 %v396_v0, %v395_v63  ;;  %v299_v8 = vld [vmem:[%s1648_s12 + $0x70] sm:$0xff] }
  0x25   : > { %1324 = vmatprep.subr.bf16.mxu1 %v1323_v31  ;;  %v300_v4 = vld [vmem:[%s1648_s12 + $0x78] sm:$0xff]  ;;  %v302_v5 = vld [vmem:[%s1648_s12 + $0x88] sm:$0xff]  ;;  %v429_v9 = vld [vmem:[%s1912_s0 + $0x330] sm:$0xff]  ;;  %v1339_v11 = vpack.c.bf16 %v414_v3, %v413_v2 }
  0x26   : > { %v430_v10 = vld [vmem:[%s1912_s0 + $0x338] sm:$0xff]  ;;  %v397_v12 = vld [vmem:[%s1912_s0 + $0x230] sm:$0xff]  ;;  %v301_v14 = vld [vmem:[%s1648_s12 + $0x80] sm:$0xff] }
  0x27   : > { %1294 = vmatpush3.bf16.msra.mxu0 %v1293_v35  ;;  %v398_v13 = vld [vmem:[%s1912_s0 + $0x238] sm:$0xff]  ;;  %v415_v15 = vld [vmem:[%s1912_s0 + $0x2c0] sm:$0xff]  ;;  %v416_v16 = vld [vmem:[%s1912_s0 + $0x2c8] sm:$0xff]  ;;  %v1371_v19 = vpack.c.bf16 %v430_v10, %v429_v9 }
  0x28   : > { %1326 = vmatpush3.bf16.msra.mxu1 %v1325_v37  ;;  %1328 = vmatprep.subr.bf16.mxu0 %v1327_v38  ;;  %v307_v17 = vld [vmem:[%s1648_s12 + $0xb0] sm:$0xff]  ;;  %v309_v18 = vld [vmem:[%s1648_s12 + $0xc0] sm:$0xff]  ;;  %v1341_v20 = vpack.c.bf16 %v398_v13, %v397_v12  ;;  %v306_v21 = vld [vmem:[%s1648_s12 + $0xa8] sm:$0xff]  ;;  %v1343_v24 = vpack.c.bf16 %v416_v16, %v415_v15 }
  0x29   : > { %1360 = vmatprep.subr.bf16.mxu1 %v1359_v44  ;;  %v431_v22 = vld [vmem:[%s1912_s0 + $0x340] sm:$0xff]  ;;  %v432_v23 = vld [vmem:[%s1912_s0 + $0x348] sm:$0xff]  ;;  %v308_v27 = vld [vmem:[%s1648_s12 + $0xb8] sm:$0xff] }
  0x2a   : > { %519 = vmatmul.mubr.f32.vlgmr.msra.gmra.mrb[0].mxu0 %v285_v45  ;;  %v399_v25 = vld [vmem:[%s1912_s0 + $0x240] sm:$0xff]  ;;  %v400_v26 = vld [vmem:[%s1912_s0 + $0x248] sm:$0xff]  ;;  %v417_v28 = vld [vmem:[%s1912_s0 + $0x2d0] sm:$0xff]  ;;  %v1375_v32 = vpack.c.bf16 %v432_v23, %v431_v22 }
  0x2b   : > { %614 = vmatmul.mubr.f32.vlgmr.msra.gmra.mrb[0].mxu1 %v287_v49  ;;  %1330 = vmatpush3.bf16.msra.mxu0 %v1329_v46  ;;  %v418_v29 = vld [vmem:[%s1912_s0 + $0x2d8] sm:$0xff]  ;;  %v314_v30 = vld [vmem:[%s1648_s12 + $0xe8] sm:$0xff]  ;;  %v1345_v33 = vpack.c.bf16 %v400_v26, %v399_v25  ;;  %v313_v34 = vld [vmem:[%s1648_s12 + $0xe0] sm:$0xff] }
  0x2c   : > { %1332 = vmatprep.subr.bf16.mxu0 %v1331_v50  ;;  %523 = vmatprep.mubr.f32.mxu0 %v293_v55  ;;  %v316_v31 = vld [vmem:[%s1648_s12 + $0xf8] sm:$0xff]  ;;  %v433_v35 = vld [vmem:[%s1912_s0 + $0x350] sm:$0xff]  ;;  %v1347_v37 = vpack.c.bf16 %v418_v29, %v417_v28  ;;  %v419_v41 = vld [vmem:[%s1912_s0 + $0x2e0] sm:$0xff] }
  0x2d   : > { %618 = vmatprep.mubr.f32.mxu1 %v295_v56  ;;  %1362 = vmatpush3.bf16.msra.mxu1 %v1359_v44  ;;  %v434_v36 = vld [vmem:[%s1912_s0 + $0x358] sm:$0xff]  ;;  %v401_v38 = vld [vmem:[%s1912_s0 + $0x250] sm:$0xff]  ;;  %v420_v42 = vld [vmem:[%s1912_s0 + $0x2e8] sm:$0xff] }
  0x2e   : > { %524 = vmatmul.mubr.f32.gmra.mrb[2].mxu0 %v292_v59  ;;  %1364 = vmatprep.subr.bf16.mxu1 %v1363_v57  ;;  %v402_v39 = vld [vmem:[%s1912_s0 + $0x258] sm:$0xff]  ;;  %v315_v40 = vld [vmem:[%s1648_s12 + $0xf0] sm:$0xff]  ;;  %v321_v43 = vld [vmem:[%s1648_s12 + $0x120] sm:$0xff]  ;;  %v1379_v45 = vpack.c.bf16 %v434_v36, %v433_v35  ;;  %v1351_v48 = vpack.c.bf16 %v420_v42, %v419_v41 }
  0x2f   : > { %1334 = vmatpush3.bf16.msra.mxu0 %v1333_v58  ;;  %619 = vmatmul.mubr.f32.gmra.mrb[2].mxu1 %v294_v1  ;;  %v323_v44 = vld [vmem:[%s1648_s12 + $0x130] sm:$0xff]  ;;  %v1349_v46 = vpack.c.bf16 %v402_v39, %v401_v38  ;;  %v320_v47 = vld [vmem:[%s1648_s12 + $0x118] sm:$0xff]  ;;  %v403_v49 = vld [vmem:[%s1912_s0 + $0x260] sm:$0xff] }
  0x30   : > { %1336 = vmatprep.subr.bf16.mxu0 %v1335_v62  ;;  %528 = vmatprep.mubr.f32.mxu0 %v300_v4  ;;  %v404_v50 = vld [vmem:[%s1912_s0 + $0x268] sm:$0xff]  ;;  %v421_v52 = vld [vmem:[%s1912_s0 + $0x2f0] sm:$0xff]  ;;  %v422_v53 = vld [vmem:[%s1912_s0 + $0x2f8] sm:$0xff] }
  0x31   : > { %623 = vmatprep.mubr.f32.mxu1 %v302_v5  ;;  %1366 = vmatpush3.bf16.msra.mxu1 %v1363_v57  ;;  %v322_v51 = vld [vmem:[%s1648_s12 + $0x128] sm:$0xff]  ;;  %v291_v55 = vld [vmem:[%s1648_s12 + $0x30] sm:$0xff]  ;;  %v1353_v56 = vpack.c.bf16 %v404_v50, %v403_v49  ;;  %v834_v58 = vld [vmem:[%s1843_s24] sm:$0xff]  ;;  %v1355_v59 = vpack.c.bf16 %v422_v53, %v421_v52 }
  0x32   : > { %529 = vmatmul.mubr.f32.gmra.mrb[4].mxu0 %v299_v8  ;;  %1368 = vmatprep.subr.bf16.mxu1 %v1367_v6  ;;  %v290_v54 = vld [vmem:[%s1648_s12 + $0x28] sm:$0xff]  ;;  %v836_v57 = vld [vmem:[%s1843_s24 + $0x10] sm:$0xff]  ;;  %v406_v61 = vld [vmem:[%s1912_s0 + $0x278] sm:$0xff] }
  0x33   : > { %1338 = vmatpush3.bf16.msra.mxu0 %v1337_v7  ;;  %624 = vmatmul.mubr.f32.gmra.mrb[4].mxu1 %v301_v14  ;;  %v405_v60 = vld [vmem:[%s1912_s0 + $0x270] sm:$0xff]  ;;  %v298_v62 = vld [vmem:[%s1648_s12 + $0x68] sm:$0xff]  ;;  %v305_v63 = vld [vmem:[%s1648_s12 + $0xa0] sm:$0xff] }
  0x34   : > { %1340 = vmatprep.subr.bf16.mxu0 %v1339_v11  ;;  %533 = vmatprep.mubr.f32.mxu0 %v307_v17  ;;  %v1357_v0 = vpack.c.bf16 %v406_v61, %v405_v60  ;;  %v837_v1 = vld [vmem:[%s1843_s24 + $0x18] sm:$0xff]  ;;  %v835_v2 = vld [vmem:[%s1843_s24 + $0x8] sm:$0xff]  ;;  %v319_v4 = vld [vmem:[%s1648_s12 + $0x110] sm:$0xff] }
  0x35   : > { %628 = vmatprep.mubr.f32.mxu1 %v309_v18  ;;  %1370 = vmatpush3.bf16.msra.mxu1 %v1367_v6  ;;  %v312_v3 = vld [vmem:[%s1648_s12 + $0xd8] sm:$0xff]  ;;  %v289_v5 = vld [vmem:[%s1648_s12 + $0x20] sm:$0xff]  ;;  %v839_v6 = vld [vmem:[%s1843_s24 + $0x28] sm:$0xff] }
  0x36   : > { %534 = vmatmul.mubr.f32.gmra.mrb[6].mxu0 %v306_v21  ;;  %1372 = vmatprep.subr.bf16.mxu1 %v1371_v19  ;;  %v297_v7 = vld [vmem:[%s1648_s12 + $0x60] sm:$0xff]  ;;  %v326_v9 = vld [vmem:[%s1648_s12 + $0x148] sm:$0xff]  ;;  %v296_v10 = vld [vmem:[%s1648_s12 + $0x58] sm:$0xff] }
  0x37   : > { %1342 = vmatpush3.bf16.msra.mxu0 %v1341_v20  ;;  %629 = vmatmul.mubr.f32.gmra.mrb[6].mxu1 %v308_v27  ;;  %v838_v8 = vld [vmem:[%s1843_s24 + $0x20] sm:$0xff]  ;;  %v877_v11 = vld [vmem:[%s274_s6 + $0x8] sm:$0xff]  ;;  %v304_v12 = vld [vmem:[%s1648_s12 + $0x98] sm:$0xff] }
  0x38   : > { %1344 = vmatprep.subr.bf16.mxu0 %v1343_v24  ;;  %538 = vmatprep.mubr.f32.mxu0 %v314_v30  ;;  %v876_v13 = vld [vmem:[%s274_s6] sm:$0xff]  ;;  %v303_v14 = vld [vmem:[%s1648_s12 + $0x90] sm:$0xff]  ;;  %v879_v15 = vld [vmem:[%s274_s6 + $0x18] sm:$0xff] }
  0x39   : > { %633 = vmatprep.mubr.f32.mxu1 %v316_v31  ;;  %1374 = vmatpush3.bf16.msra.mxu1 %v1371_v19  ;;  %v311_v16 = vld [vmem:[%s1648_s12 + $0xd0] sm:$0xff]  ;;  %v310_v18 = vld [vmem:[%s1648_s12 + $0xc8] sm:$0xff]  ;;  %v880_v21 = vld [vmem:[%s274_s6 + $0x20] sm:$0xff] }
  0x3a   : > { %539 = vmatmul.mubr.f32.gmra.mrb[8].mxu0 %v313_v34  ;;  %1376 = vmatprep.subr.bf16.mxu1 %v1375_v32  ;;  %v878_v17 = vld [vmem:[%s274_s6 + $0x10] sm:$0xff]  ;;  %v881_v19 = vld [vmem:[%s274_s6 + $0x28] sm:$0xff]  ;;  %v317_v22 = vld [vmem:[%s1648_s12 + $0x100] sm:$0xff] }
  0x3b   : > { %1346 = vmatpush3.bf16.msra.mxu0 %v1345_v33  ;;  %634 = vmatmul.mubr.f32.gmra.mrb[8].mxu1 %v315_v40  ;;  %v318_v20 = vld [vmem:[%s1648_s12 + $0x108] sm:$0xff]  ;;  %v325_v23 = vld [vmem:[%s1648_s12 + $0x140] sm:$0xff]  ;;  %v324_v24 = vld [vmem:[%s1648_s12 + $0x138] sm:$0xff] }
  0x3c   : > { %1348 = vmatprep.subr.bf16.mxu0 %v1347_v37  ;;  %543 = vmatprep.mubr.f32.mxu0 %v321_v43 }
  0x3d   : > { %638 = vmatprep.mubr.f32.mxu1 %v323_v44  ;;  %1378 = vmatpush3.bf16.msra.mxu1 %v1375_v32 }
  0x3e   : > { %544 = vmatmul.mubr.f32.gmra.mrb[10].mxu0 %v320_v47  ;;  %1380 = vmatprep.subr.bf16.mxu1 %v1379_v45 }
  0x3f   : > { %1350 = vmatpush3.bf16.msra.mxu0 %v1349_v46  ;;  %639 = vmatmul.mubr.f32.gmra.mrb[10].mxu1 %v322_v51 }
  0x40   : > { %1352 = vmatprep.subr.bf16.mxu0 %v1351_v48  ;;  %708 = vmatprep.mubr.f32.mxu0 %v290_v54 }
  0x41   : > { %1382 = vmatpush3.bf16.msra.mxu1 %v1379_v45  ;;  %1254 = vmatprep.mubr.msk.f32.mxu1 %vm435_vm0, %v291_v55 }
  0x42   : > { %852 = vperm.xlu1 %1410, %v836_v57   ;;  %842 = vperm.xlu0 %1409, %v834_v58  }
  0x43   : > { %1354 = vmatpush3.bf16.msra.mxu0 %v1353_v56 }
  0x44   : > { %1356 = vmatprep.subr.bf16.mxu0 %v1355_v59  ;;  %1255 = vmatmul.mubr.msk.f32.vlgmr.msra.gmra.mrb[12].mxu1 %vm435_vm0, %v298_v62 }
  0x45   : > { %1257 = vmatprep.mubr.msk.f32.mxu1 %vm435_vm0, %v305_v63 }
  0x46   : > { %857 = vperm.xlu1 %1410, %v837_v1   ;;  %847 = vperm.xlu0 %1409, %v835_v2  }
  0x47   : > { %1358 = vmatpush3.bf16.msra.mxu0 %v1357_v0 }
  0x48   : > { %1258 = vmatmul.mubr.msk.f32.gmra.mrb[14].mxu1 %vm435_vm0, %v312_v3 }
  0x49   : > { %1260 = vmatprep.mubr.msk.f32.mxu1 %vm435_vm0, %v319_v4 }
  0x4a   : > { %709 = vmatmul.mubr.f32.vlgmr.msra.gmra.mrb[12].mxu0 %v289_v5  ;;  %867 = vperm.xlu1 %1410, %v839_v6  }
  0x4b   : > { %713 = vmatprep.mubr.f32.mxu0 %v297_v7  ;;  %862 = vperm.xlu0 %1409, %v838_v8  }
  0x4c   : > { %1261 = vmatmul.mubr.msk.f32.gmra.mrb[16].mxu1 %vm435_vm0, %v326_v9 }
  0x4e   : > { %714 = vmatmul.mubr.f32.gmra.mrb[14].mxu0 %v296_v10  ;;  %889 = vperm.xlu1 %1410, %v877_v11  }
  0x4f   : > { %718 = vmatprep.mubr.f32.mxu0 %v304_v12  ;;  %884 = vperm.xlu0 %1409, %v876_v13  }
  0x52   : > { %719 = vmatmul.mubr.f32.gmra.mrb[16].mxu0 %v303_v14  ;;  %899 = vperm.xlu1 %1410, %v879_v15  }
  0x53   : > { %723 = vmatprep.mubr.f32.mxu0 %v311_v16  ;;  %894 = vperm.xlu0 %1409, %v878_v17  }
  0x56   : > { %724 = vmatmul.mubr.f32.gmra.mrb[18].mxu0 %v310_v18  ;;  %909 = vperm.xlu1 %1410, %v881_v19  }
  0x57   : > { %728 = vmatprep.mubr.f32.mxu0 %v318_v20  ;;  %904 = vperm.xlu0 %1409, %v880_v21  }
  0x5a   : > { %729 = vmatmul.mubr.f32.gmra.mrb[20].mxu0 %v317_v22 }
  0x5b   : > { %733 = vmatprep.mubr.f32.mxu0 %v325_v23 }
  0x5e   : > { %734 = vmatmul.mubr.f32.gmra.mrb[22].mxu0 %v324_v24 }
  0xc1   : > { %v843_v1 = vpop.permute.xlu0 %842  ;;  %v853_v5 = vpop.permute.xlu1 %852 }
  0xc5   : > { %v848_v7 = vpop.permute.xlu0 %847  ;;  %v858_v11 = vpop.permute.xlu1 %857 }
  0xc9   : > { %v868_v22 = vpop.permute.xlu1 %867 }
  0xca   : > { %v863_v15 = vpop.permute.xlu0 %862 }
  0xfd   : > { %v1094_v25 = vpop.f32.mrb[0].mxu0 }
  0xfe   : > { %v1144_v26 = vpop.f32.mrb[0].mxu1  ;;  %v1095_v27 = vpop.f32.mrb[1].mxu0 }
  0xff   : > { %v1096_v28 = vadd.f32 %v1095_v27, %v1094_v25  ;;  %v1145_v29 = vpop.f32.mrb[1].mxu1 }
 0x100   : > { %v1146_v30 = vadd.f32 %v1145_v29, %v1144_v26  ;;  %v885_v26 = vpop.permute.xlu0 %884 }
 0x101   : > { %v1097_v31 = vpop.f32.mrb[2].mxu0 }
 0x102   : > { %v616_v32 = vadd.f32 %v1146_v30, %v1096_v28  ;;  %v1147_v33 = vpop.f32.mrb[2].mxu1  ;;  %v1098_v34 = vpop.f32.mrb[3].mxu0 }
 0x103   : > { %v1099_v35 = vadd.f32 %v1098_v34, %v1097_v31  ;;  %v1148_v36 = vpop.f32.mrb[3].mxu1 }
 0x104   : > { %v1149_v37 = vadd.f32 %v1148_v36, %v1147_v33 }
 0x105   : > { %v1100_v38 = vpop.f32.mrb[4].mxu0 }
 0x106   : > { %v621_v39 = vadd.f32 %v1149_v37, %v1099_v35  ;;  %v1150_v40 = vpop.f32.mrb[4].mxu1  ;;  %v1101_v41 = vpop.f32.mrb[5].mxu0 }
 0x107   : > { %v1102_v42 = vadd.f32 %v1101_v41, %v1100_v38  ;;  %v1151_v43 = vpop.f32.mrb[5].mxu1  ;;  %v890_v35 = vpop.permute.xlu1 %889 }
 0x108   : > { %v1152_v44 = vadd.f32 %v1151_v43, %v1150_v40 }
 0x109   : > { %v1103_v45 = vpop.f32.mrb[6].mxu0 }
 0x10a   : > { %v626_v46 = vadd.f32 %v1152_v44, %v1102_v42  ;;  %v1153_v47 = vpop.f32.mrb[6].mxu1  ;;  %v1104_v48 = vpop.f32.mrb[7].mxu0 }
 0x10b   : > { %v1105_v49 = vadd.f32 %v1104_v48, %v1103_v45  ;;  %v1154_v50 = vpop.f32.mrb[7].mxu1  ;;  %v895_v44 = vpop.permute.xlu0 %894 }
 0x10c   : > { %v1155_v51 = vadd.f32 %v1154_v50, %v1153_v47 }
 0x10d   : > { %v1106_v52 = vpop.f32.mrb[8].mxu0 }
 0x10e   : > { %v631_v53 = vadd.f32 %v1155_v51, %v1105_v49  ;;  %v1156_v54 = vpop.f32.mrb[8].mxu1  ;;  %v1107_v55 = vpop.f32.mrb[9].mxu0 }
 0x10f   : > { %v1108_v56 = vadd.f32 %v1107_v55, %v1106_v52  ;;  %v1157_v57 = vpop.f32.mrb[9].mxu1 }
 0x110   : > { %v1158_v58 = vadd.f32 %v1157_v57, %v1156_v54  ;;  %v900_v54 = vpop.permute.xlu1 %899 }
 0x111   : > { %v1109_v59 = vpop.f32.mrb[10].mxu0 }
 0x112   : > { %v636_v60 = vadd.f32 %v1158_v58, %v1108_v56  ;;  %v1159_v61 = vpop.f32.mrb[10].mxu1  ;;  %v1110_v62 = vpop.f32.mrb[11].mxu0 }
 0x113   : > { %v1111_v63 = vadd.f32 %v1110_v62, %v1109_v59  ;;  %v1160_v0 = vpop.f32.mrb[11].mxu1  ;;  %v905_v62 = vpop.permute.xlu0 %904 }
 0x114   : > { %v1161_v2 = vadd.f32 %v1160_v0, %v1159_v61 }
 0x116   : > { %v641_v3 = vadd.f32 %v1161_v2, %v1111_v63 }
 0x117   : > { %v1256_v4 = vpop.f32.mrb[12].mxu1 }
 0x118   : > { %v805_v6 = vpop.f32.mrb[13].mxu1 }
 0x11b   : > { %v1259_v8 = vpop.f32.mrb[14].mxu1 }
 0x11c   : > { %v815_v9 = vpop.f32.mrb[15].mxu1 }
 0x11d   : > { %v1194_v10 = vpop.f32.mrb[12].mxu0 }
 0x11e   : > { %v1195_v12 = vpop.f32.mrb[13].mxu0 }
 0x11f   : > { %v1196_v13 = vadd.f32 %v1195_v12, %v1194_v10  ;;  %v1262_v14 = vpop.f32.mrb[16].mxu1 }
 0x120   : > { %v825_v16 = vpop.f32.mrb[17].mxu1 }
 0x121   : > { %v1197_v17 = vpop.f32.mrb[14].mxu0  ;;  %v711_v18 = vadd.f32 %v1196_v13, %v616_v32 }
 0x122   : > { %v1198_v19 = vpop.f32.mrb[15].mxu0 }
 0x123   : > { %v1199_v20 = vadd.f32 %v1198_v19, %v1197_v17  ;;  %v806_v21 = vadd.f32 %v805_v6, %v711_v18 }
 0x125   : > { %v716_v23 = vadd.f32 %v1199_v20, %v621_v39  ;;  %v870_v24 = vmul.f32 %v843_v1, %v806_v21  ;;  %v1200_v25 = vpop.f32.mrb[16].mxu0 }
 0x126   : > { %v1201_v27 = vpop.f32.mrb[17].mxu0 }
 0x127   : > { %v811_v28 = vadd.f32 %v1256_v4, %v716_v23  ;;  %v912_v29 = vadd.f32 %v885_v26, %v870_v24  ;;  %v1202_v30 = vadd.f32 %v1201_v27, %v1200_v25  ;;  %v910_v4 = vpop.permute.xlu1 %909 }
 0x129   : > { %v871_v31 = vmul.f32 %v848_v7, %v811_v28  ;;  %v918_v32 = vmax.f32 %v912_v29, 0.0  ;;  %v1203_v33 = vpop.f32.mrb[18].mxu0  ;;  %v721_v34 = vadd.f32 %v1202_v30, %v626_v46 }
 0x12a   : > { %v1204_v36 = vpop.f32.mrb[19].mxu0 }
 0x12b   : > { %v913_v37 = vadd.f32 %v890_v35, %v871_v31  ;;  %924 = vst [vmem:[%s1895_s8] sm:$0xff] %v918_v32  ;;  %v1205_v38 = vadd.f32 %v1204_v36, %v1203_v33  ;;  %v816_v39 = vadd.f32 %v815_v9, %v721_v34 }
 0x12d   : > { %v919_v40 = vmax.f32 %v913_v37, 0.0  ;;  %v726_v41 = vadd.f32 %v1205_v38, %v631_v53  ;;  %v872_v42 = vmul.f32 %v853_v5, %v816_v39  ;;  %v1206_v43 = vpop.f32.mrb[20].mxu0 }
 0x12e   : > { %v1207_v45 = vpop.f32.mrb[21].mxu0 }
 0x12f   : > { %925 = vst [vmem:[%s1895_s8 + $0x8] sm:$0xff] %v919_v40  ;;  %v821_v47 = vadd.f32 %v1259_v8, %v726_v41  ;;  %v914_v48 = vadd.f32 %v895_v44, %v872_v42  ;;  %v1208_v49 = vadd.f32 %v1207_v45, %v1206_v43 }
 0x131   : > { %v873_v50 = vmul.f32 %v858_v11, %v821_v47  ;;  %v920_v46 = vmax.f32 %v914_v48, 0.0  ;;  %v1209_v51 = vpop.f32.mrb[22].mxu0  ;;  %v731_v52 = vadd.f32 %v1208_v49, %v636_v60 }
 0x132   : > { %v1210_v55 = vpop.f32.mrb[23].mxu0 }
 0x133   : > { %v915_v56 = vadd.f32 %v900_v54, %v873_v50  ;;  %926 = vst [vmem:[%s1895_s8 + $0x10] sm:$0xff] %v920_v46  ;;  %v1211_v53 = vadd.f32 %v1210_v55, %v1209_v51  ;;  %v826_v57 = vadd.f32 %v825_v16, %v731_v52 }
 0x135   : > { %v921_v58 = vmax.f32 %v915_v56, 0.0  ;;  %v736_v59 = vadd.f32 %v1211_v53, %v641_v3  ;;  %v874_v61 = vmul.f32 %v863_v15, %v826_v57 }
 0x137   : > { %927 = vst [vmem:[%s1895_s8 + $0x18] sm:$0xff] %v921_v58  ;;  %v831_v63 = vadd.f32 %v1262_v14, %v736_v59  ;;  %v916_v0 = vadd.f32 %v905_v62, %v874_v61 }
 0x139   : > { %v875_v1 = vmul.f32 %v868_v22, %v831_v63  ;;  %v922_v2 = vmax.f32 %v916_v0, 0.0 }
 0x13b   : > { %v917_v5 = vadd.f32 %v910_v4, %v875_v1  ;;  %928 = vst [vmem:[%s1895_s8 + $0x20] sm:$0xff] %v922_v2 }
 0x13d   : > { %v923_v60 = vmax.f32 %v917_v5, 0.0 }
 0x13f   : > { %929 = vst [vmem:[%s1895_s8 + $0x28] sm:$0xff] %v923_v60 }
 0x140 PF: > { %s14_s17 = sadd.s32 1, %s1433_s17   ;;  %s1918_s15 = smov %s1429_s16 }
 0x141   : > { %p11_p5 = scmp.ge.s32.totalorder %s14_s17, 4   ;;  %s1919_s16 = smov %s1921_s18 }
 0x143   :  { %13 = sbr.rel (!%p11_p5) target bundleno = 2 (0x2), region = 75 }

// kernel: inception_b_forward.5
= control target key start
LH: loop header
LB: loop body
LE: loop exit
PB: predicated region body
PF: predicated region fallthrough
CT: control target
= control target key end

     0   :  { %s1274_s15 = smov 0   ;;  %s1276_s16 = smov 0   ;;  %s1541_s0 = inlined_call_operand.vmem [shape: f32[36,128], index: 0, kind: input, shape index: {}]   ;;  %s1542_s1 = inlined_call_operand.vmem [shape: f32[384,36], index: 1, kind: input, shape index: {}]   ;;  %s1543_s2 = inlined_call_operand.vmem [shape: f32[384,1], index: 2, kind: input, shape index: {}]   ;;  %s1544_s3 = inlined_call_operand.vmem [shape: f32[384,1], index: 3, kind: input, shape index: {}]   ;;  %s1545_s4 = inlined_call_operand.vmem [shape: f32[384,128], index: 4, kind: output, shape index: {}]  }
   0x1   :  { %s1278_s17 = smov 0  }
   0x2 LB: > { %s26_s18 = sadd.s32 1, %s1242_s16  ;;  %p1076_p0 = scmp.ge.s32.totalorder %s1246_s17, 1  ;;  %s1246_s17 = sphi %s1278_s17, %s14_s17   ;;  %s1242_s16 = sphi %s1276_s16, %s1547_s16   ;;  %s1238_s15 = sphi %s1274_s15, %s1546_s15  }
   0x3   : > { %p28_p1 = scmp.ge.s32.totalorder %s26_s18, 2  ;;  %p208_p2 = scmp.lt.s32.totalorder %s1246_s17, 3 }
   0x5   : > { %s1549_s18 = smov (%p28_p1, %s26_s18), 0  ;;  %p209_p3 = pnand %p1076_p0, %p208_p2 }
   0x6   : > { %v306_v0 = vld [vmem:[%s1541_s0] sm:$0xff] (!%p209_p3)  ;;  %v307_v1 = vld [vmem:[%s1541_s0 + $0x8] sm:$0xff] (!%p209_p3)  ;;  %v308_v2 = vld [vmem:[%s1541_s0 + $0x10] sm:$0xff] (!%p209_p3)  ;;  %s255_s25 = smul.u32 (!%p209_p3), 24, %s1238_s15  ;;  %v1248_v5 = vmov (!%p209_p3), 0   ;;  %vm384_vm0 = vcmask (!%p209_p3), 1043456  }
   0x7   : > { %212 = sbr.rel (%p209_p3) target bundleno = 261 (0x105), region = 36  ;;  %v1183_v3 = vpack.c.bf16 (!%p209_p3), %v307_v1, %v306_v0  ;;  %v309_v4 = vld [vmem:[%s1541_s0 + $0x18] sm:$0xff] (!%p209_p3)  ;;  %1223 = vset.pattern.permute.xlu1 (!%p209_p3), %v1248_v5  ;;  %1222 = vset.pattern.permute.xlu0 (!%p209_p3), %v1248_v5  ;;  %v310_v7 = vld [vmem:[%s1541_s0 + $0x20] sm:$0xf] (!%p209_p3)  ;;  %vm311_vm1 = vcmask (!%p209_p3), 293888  }
   0x8   : > { %v1187_v6 = vpack.c.bf16 (!%p209_p3), %v309_v4, %v308_v2  ;;  %p256_p4 = scmp.lt.s32.totalorder (!%p209_p3), %s255_s25, 47 }
   0x9   : > { %1184 = vmatprep.subr.bf16.mxu0 (!%p209_p3), %v1183_v3  ;;  %1191 = vmatprep.subr.bf16.mxu1 (!%p209_p3), %v1183_v3 }
   0xa   : > { %1186 = vmatpush3.bf16.msra.mxu0 (!%p209_p3), %v1183_v3  ;;  %1194 = vmatpush3.bf16.msra.mxu1 (!%p209_p3), %v1183_v3 }
   0xb   : > { %1188 = vmatprep.subr.bf16.mxu0 (!%p209_p3), %v1187_v6  ;;  %1192 = vmatprep.subr.bf16.mxu1 (!%p209_p3), %v1187_v6 }
   0xe   : > { %s1551_s25 = smov (!%p256_p4, %s255_s25), 47  ;;  %1190 = vmatpush3.bf16.msra.mxu0 %v1187_v6  ;;  %1195 = vmatpush3.bf16.msra.mxu1 %v1187_v6 }
   0xf   : > { %s1304_s28 = sshll.u32 %s1551_s25, 3  ;;  %1145 = vmatprep.subr.msk.mxu0 %vm384_vm0, %v310_v7  ;;  %1193 = vmatprep.subr.msk.mxu1 %vm384_vm0, %v310_v7 }
  0x10   : > { %s1310_s5 = scalar_lea.vmem %s1543_s2, %s1304_s28  ;;  %s1319_s10 = scalar_lea.vmem %s1542_s1, %s1304_s28 }
  0x11   : > { %v575_v8 = vld [vmem:[%s1310_s5 + $0x10] sm:$0xff]  ;;  %v573_v9 = vld [vmem:[%s1310_s5] sm:$0xff]  ;;  %v576_v12 = vld [vmem:[%s1310_s5 + $0x18] sm:$0xff]  ;;  %s1401_s13 = scalar_lea.vmem %s1544_s3, %s1304_s28  ;;  %s1481_s19 = scalar_lea.vmem %s1545_s4, %s1304_s28 }
  0x12   : > { %v282_v10 = vld [vmem:[%s1319_s10] sm:$0xff]  ;;  %609 = vperm.xlu1 %1223, %v575_v8   ;;  %599 = vperm.xlu0 %1222, %v573_v9   ;;  %v574_v13 = vld [vmem:[%s1310_s5 + $0x8] sm:$0xff]  ;;  %v284_v16 = vld [vmem:[%s1319_s10 + $0x10] sm:$0xff] }
  0x13   : > { %v294_v11 = vld [vmem:[%s1319_s10 + $0x60] sm:$0xff]  ;;  %1147 = vmatprep.mubr.msk.f32.mxu0 %vm311_vm1, %v282_v10  ;;  %v283_v14 = vld [vmem:[%s1319_s10 + $0x8] sm:$0xff]  ;;  %1146 = vmatpush3.msk.msra.mxu0 %vm384_vm0, %v310_v7  ;;  %v296_v17 = vld [vmem:[%s1319_s10 + $0x70] sm:$0xff] }
  0x14   : > { %1165 = vmatprep.mubr.msk.f32.mxu1 %vm311_vm1, %v294_v11  ;;  %v295_v15 = vld [vmem:[%s1319_s10 + $0x68] sm:$0xff]  ;;  %1196 = vmatpush3.msk.msra.mxu1 %vm384_vm0, %v310_v7  ;;  %v577_v19 = vld [vmem:[%s1310_s5 + $0x20] sm:$0xff]  ;;  %v285_v20 = vld [vmem:[%s1319_s10 + $0x18] sm:$0xff] }
  0x15   : > { %1148 = vmatmul.mubr.msk.f32.vlgmr.msra.gmra.mrb[0].mxu0 %vm311_vm1, %v283_v14  ;;  %1166 = vmatmul.mubr.msk.f32.vlgmr.msra.gmra.mrb[0].mxu1 %vm311_vm1, %v295_v15  ;;  %v578_v18 = vld [vmem:[%s1310_s5 + $0x28] sm:$0xff]  ;;  %v297_v21 = vld [vmem:[%s1319_s10 + $0x78] sm:$0xff]  ;;  %v286_v22 = vld [vmem:[%s1319_s10 + $0x20] sm:$0xff] }
  0x16   : > { %614 = vperm.xlu1 %1223, %v576_v12   ;;  %604 = vperm.xlu0 %1222, %v574_v13   ;;  %v298_v23 = vld [vmem:[%s1319_s10 + $0x80] sm:$0xff]  ;;  %v580_v24 = vld [vmem:[%s1310_s5 + $0x38] sm:$0xff]  ;;  %v579_v25 = vld [vmem:[%s1310_s5 + $0x30] sm:$0xff] }
  0x17   : > { %1150 = vmatprep.mubr.msk.f32.mxu0 %vm311_vm1, %v284_v16  ;;  %1168 = vmatprep.mubr.msk.f32.mxu1 %vm311_vm1, %v296_v17  ;;  %v287_v26 = vld [vmem:[%s1319_s10 + $0x28] sm:$0xff]  ;;  %v288_v28 = vld [vmem:[%s1319_s10 + $0x30] sm:$0xff]  ;;  %v581_v31 = vld [vmem:[%s1310_s5 + $0x40] sm:$0xff] }
  0x18   : > { %v299_v27 = vld [vmem:[%s1319_s10 + $0x88] sm:$0xff]  ;;  %v300_v29 = vld [vmem:[%s1319_s10 + $0x90] sm:$0xff]  ;;  %v289_v32 = vld [vmem:[%s1319_s10 + $0x38] sm:$0xff] }
  0x19   : > { %1151 = vmatmul.mubr.msk.f32.gmra.mrb[2].mxu0 %vm311_vm1, %v285_v20  ;;  %1169 = vmatmul.mubr.msk.f32.gmra.mrb[2].mxu1 %vm311_vm1, %v297_v21  ;;  %v582_v30 = vld [vmem:[%s1310_s5 + $0x48] sm:$0xff]  ;;  %v301_v33 = vld [vmem:[%s1319_s10 + $0x98] sm:$0xff]  ;;  %v290_v34 = vld [vmem:[%s1319_s10 + $0x40] sm:$0xff] }
  0x1a   : > { %624 = vperm.xlu1 %1223, %v578_v18   ;;  %619 = vperm.xlu0 %1222, %v577_v19   ;;  %v302_v35 = vld [vmem:[%s1319_s10 + $0xa0] sm:$0xff]  ;;  %v584_v36 = vld [vmem:[%s1310_s5 + $0x58] sm:$0xff]  ;;  %v583_v37 = vld [vmem:[%s1310_s5 + $0x50] sm:$0xff] }
  0x1b   : > { %1153 = vmatprep.mubr.msk.f32.mxu0 %vm311_vm1, %v286_v22  ;;  %1171 = vmatprep.mubr.msk.f32.mxu1 %vm311_vm1, %v298_v23  ;;  %v291_v38 = vld [vmem:[%s1319_s10 + $0x48] sm:$0xff]  ;;  %v292_v40 = vld [vmem:[%s1319_s10 + $0x50] sm:$0xff]  ;;  %v585_v43 = vld [vmem:[%s1310_s5 + $0x60] sm:$0xff] }
  0x1c   : > { %v303_v39 = vld [vmem:[%s1319_s10 + $0xa8] sm:$0xff]  ;;  %v304_v41 = vld [vmem:[%s1319_s10 + $0xb0] sm:$0xff]  ;;  %v293_v44 = vld [vmem:[%s1319_s10 + $0x58] sm:$0xff] }
  0x1d   : > { %1154 = vmatmul.mubr.msk.f32.gmra.mrb[4].mxu0 %vm311_vm1, %v287_v26  ;;  %1172 = vmatmul.mubr.msk.f32.gmra.mrb[4].mxu1 %vm311_vm1, %v299_v27  ;;  %v586_v42 = vld [vmem:[%s1310_s5 + $0x68] sm:$0xff]  ;;  %v305_v45 = vld [vmem:[%s1319_s10 + $0xb8] sm:$0xff]  ;;  %v587_v47 = vld [vmem:[%s1310_s5 + $0x70] sm:$0xff] }
  0x1e   : > { %634 = vperm.xlu1 %1223, %v580_v24   ;;  %629 = vperm.xlu0 %1222, %v579_v25   ;;  %v588_v46 = vld [vmem:[%s1310_s5 + $0x78] sm:$0xff]  ;;  %v590_v48 = vld [vmem:[%s1310_s5 + $0x88] sm:$0xff]  ;;  %v589_v49 = vld [vmem:[%s1310_s5 + $0x80] sm:$0xff] }
  0x1f   : > { %1156 = vmatprep.mubr.msk.f32.mxu0 %vm311_vm1, %v288_v28  ;;  %1174 = vmatprep.mubr.msk.f32.mxu1 %vm311_vm1, %v300_v29  ;;  %v592_v50 = vld [vmem:[%s1310_s5 + $0x98] sm:$0xff]  ;;  %v591_v51 = vld [vmem:[%s1310_s5 + $0x90] sm:$0xff]  ;;  %v594_v52 = vld [vmem:[%s1310_s5 + $0xa8] sm:$0xff] }
  0x20   : > { %v593_v53 = vld [vmem:[%s1310_s5 + $0xa0] sm:$0xff]  ;;  %v596_v54 = vld [vmem:[%s1310_s5 + $0xb8] sm:$0xff]  ;;  %v595_v55 = vld [vmem:[%s1310_s5 + $0xb0] sm:$0xff] }
  0x21   : > { %1157 = vmatmul.mubr.msk.f32.gmra.mrb[6].mxu0 %vm311_vm1, %v289_v32  ;;  %1175 = vmatmul.mubr.msk.f32.gmra.mrb[6].mxu1 %vm311_vm1, %v301_v33  ;;  %v742_v56 = vld [vmem:[%s1401_s13 + $0x8] sm:$0xff]  ;;  %v741_v57 = vld [vmem:[%s1401_s13] sm:$0xff]  ;;  %v744_v58 = vld [vmem:[%s1401_s13 + $0x18] sm:$0xff] }
  0x22   : > { %644 = vperm.xlu1 %1223, %v582_v30   ;;  %639 = vperm.xlu0 %1222, %v581_v31   ;;  %v743_v59 = vld [vmem:[%s1401_s13 + $0x10] sm:$0xff]  ;;  %v746_v60 = vld [vmem:[%s1401_s13 + $0x28] sm:$0xff]  ;;  %v745_v61 = vld [vmem:[%s1401_s13 + $0x20] sm:$0xff] }
  0x23   : > { %1159 = vmatprep.mubr.msk.f32.mxu0 %vm311_vm1, %v290_v34  ;;  %1177 = vmatprep.mubr.msk.f32.mxu1 %vm311_vm1, %v302_v35  ;;  %v748_v62 = vld [vmem:[%s1401_s13 + $0x38] sm:$0xff]  ;;  %v747_v63 = vld [vmem:[%s1401_s13 + $0x30] sm:$0xff]  ;;  %v750_v0 = vld [vmem:[%s1401_s13 + $0x48] sm:$0xff] }
  0x24   : > { %v749_v1 = vld [vmem:[%s1401_s13 + $0x40] sm:$0xff]  ;;  %v752_v2 = vld [vmem:[%s1401_s13 + $0x58] sm:$0xff]  ;;  %v751_v3 = vld [vmem:[%s1401_s13 + $0x50] sm:$0xff] }
  0x25   : > { %1160 = vmatmul.mubr.msk.f32.gmra.mrb[8].mxu0 %vm311_vm1, %v291_v38  ;;  %1178 = vmatmul.mubr.msk.f32.gmra.mrb[8].mxu1 %vm311_vm1, %v303_v39  ;;  %v754_v4 = vld [vmem:[%s1401_s13 + $0x68] sm:$0xff]  ;;  %v753_v5 = vld [vmem:[%s1401_s13 + $0x60] sm:$0xff]  ;;  %v756_v6 = vld [vmem:[%s1401_s13 + $0x78] sm:$0xff] }
  0x26   : > { %654 = vperm.xlu1 %1223, %v584_v36   ;;  %649 = vperm.xlu0 %1222, %v583_v37   ;;  %v755_v7 = vld [vmem:[%s1401_s13 + $0x70] sm:$0xff]  ;;  %v758_v8 = vld [vmem:[%s1401_s13 + $0x88] sm:$0xff]  ;;  %v757_v9 = vld [vmem:[%s1401_s13 + $0x80] sm:$0xff] }
  0x27   : > { %1162 = vmatprep.mubr.msk.f32.mxu0 %vm311_vm1, %v292_v40  ;;  %1180 = vmatprep.mubr.msk.f32.mxu1 %vm311_vm1, %v304_v41  ;;  %v760_v10 = vld [vmem:[%s1401_s13 + $0x98] sm:$0xff]  ;;  %v759_v11 = vld [vmem:[%s1401_s13 + $0x90] sm:$0xff]  ;;  %v762_v12 = vld [vmem:[%s1401_s13 + $0xa8] sm:$0xff] }
  0x28   : > { %v761_v13 = vld [vmem:[%s1401_s13 + $0xa0] sm:$0xff]  ;;  %v764_v14 = vld [vmem:[%s1401_s13 + $0xb8] sm:$0xff]  ;;  %v763_v15 = vld [vmem:[%s1401_s13 + $0xb0] sm:$0xff] }
  0x29   : > { %1163 = vmatmul.mubr.msk.f32.gmra.mrb[10].mxu0 %vm311_vm1, %v293_v44  ;;  %1181 = vmatmul.mubr.msk.f32.gmra.mrb[10].mxu1 %vm311_vm1, %v305_v45 }
  0x2a   : > { %664 = vperm.xlu1 %1223, %v586_v42   ;;  %659 = vperm.xlu0 %1222, %v585_v43  }
  0x2e   : > { %674 = vperm.xlu1 %1223, %v588_v46   ;;  %669 = vperm.xlu0 %1222, %v587_v47  }
  0x32   : > { %684 = vperm.xlu1 %1223, %v590_v48   ;;  %679 = vperm.xlu0 %1222, %v589_v49  }
  0x36   : > { %694 = vperm.xlu1 %1223, %v592_v50   ;;  %689 = vperm.xlu0 %1222, %v591_v51  }
  0x3a   : > { %704 = vperm.xlu1 %1223, %v594_v52   ;;  %699 = vperm.xlu0 %1222, %v593_v53  }
  0x3e   : > { %714 = vperm.xlu1 %1223, %v596_v54   ;;  %709 = vperm.xlu0 %1222, %v595_v55  }
  0x42   : > { %772 = vperm.xlu1 %1223, %v742_v56   ;;  %767 = vperm.xlu0 %1222, %v741_v57  }
  0x46   : > { %782 = vperm.xlu1 %1223, %v744_v58   ;;  %777 = vperm.xlu0 %1222, %v743_v59  }
  0x4a   : > { %792 = vperm.xlu1 %1223, %v746_v60   ;;  %787 = vperm.xlu0 %1222, %v745_v61  }
  0x4e   : > { %802 = vperm.xlu1 %1223, %v748_v62   ;;  %797 = vperm.xlu0 %1222, %v747_v63  }
  0x52   : > { %812 = vperm.xlu1 %1223, %v750_v0   ;;  %807 = vperm.xlu0 %1222, %v749_v1  }
  0x56   : > { %822 = vperm.xlu1 %1223, %v752_v2   ;;  %817 = vperm.xlu0 %1222, %v751_v3  }
  0x5a   : > { %832 = vperm.xlu1 %1223, %v754_v4   ;;  %827 = vperm.xlu0 %1222, %v753_v5  }
  0x5e   : > { %842 = vperm.xlu1 %1223, %v756_v6   ;;  %837 = vperm.xlu0 %1222, %v755_v7  }
  0x62   : > { %852 = vperm.xlu1 %1223, %v758_v8   ;;  %847 = vperm.xlu0 %1222, %v757_v9  }
  0x66   : > { %862 = vperm.xlu1 %1223, %v760_v10   ;;  %857 = vperm.xlu0 %1222, %v759_v11  }
  0x6a   : > { %872 = vperm.xlu1 %1223, %v762_v12   ;;  %867 = vperm.xlu0 %1222, %v761_v13  }
  0x6e   : > { %882 = vperm.xlu1 %1223, %v764_v14   ;;  %877 = vperm.xlu0 %1222, %v763_v15  }
  0x91   : > { %v1427_v16 = vpop.permute.xlu1 %609  ;;  %v600_v17 = vpop.permute.xlu0 %599 }
  0x95   : > { %v615_v18 = vpop.permute.xlu1 %614  ;;  %v605_v19 = vpop.permute.xlu0 %604 }
  0x99   : > { %v1429_v20 = vpop.permute.xlu1 %624  ;;  %v1431_v21 = vpop.permute.xlu0 %619 }
  0x9d   : > { %v1433_v22 = vpop.permute.xlu1 %634  ;;  %v1435_v23 = vpop.permute.xlu0 %629 }
  0xa1   : > { %v1437_v24 = vpop.permute.xlu1 %644  ;;  %v1439_v25 = vpop.permute.xlu0 %639 }
  0xa5   : > { %v1441_v26 = vpop.permute.xlu1 %654  ;;  %v1443_v27 = vpop.permute.xlu0 %649 }
  0xa9   : > { %v665_v28 = vpop.permute.xlu1 %664  ;;  %v660_v29 = vpop.permute.xlu0 %659 }
  0xad   : > { %v675_v30 = vpop.permute.xlu1 %674  ;;  %v670_v31 = vpop.permute.xlu0 %669 }
  0xb1   : > { %v1445_v32 = vpop.permute.xlu1 %684  ;;  %v1447_v33 = vpop.permute.xlu0 %679 }
  0xb5   : > { %v1449_v34 = vpop.permute.xlu1 %694  ;;  %v1451_v35 = vpop.permute.xlu0 %689 }
  0xb9   : > { %v1453_v36 = vpop.permute.xlu1 %704  ;;  %v1455_v37 = vpop.permute.xlu0 %699 }
  0xbd   : > { %v1457_v38 = vpop.permute.xlu1 %714  ;;  %v1459_v39 = vpop.permute.xlu0 %709 }
  0xc1   : > { %v773_v40 = vpop.permute.xlu1 %772  ;;  %v768_v41 = vpop.permute.xlu0 %767 }
  0xc5   : > { %v783_v42 = vpop.permute.xlu1 %782  ;;  %v778_v43 = vpop.permute.xlu0 %777 }
  0xc9   : > { %v1461_v44 = vpop.permute.xlu1 %792  ;;  %v1463_v45 = vpop.permute.xlu0 %787 }
  0xcd   : > { %v1465_v46 = vpop.permute.xlu1 %802  ;;  %v1467_v47 = vpop.permute.xlu0 %797 }
  0xd1   : > { %v1469_v48 = vpop.permute.xlu1 %812  ;;  %v1471_v49 = vpop.permute.xlu0 %807 }
  0xd5   : > { %v1473_v50 = vpop.permute.xlu1 %822  ;;  %v1475_v51 = vpop.permute.xlu0 %817 }
  0xd9   : > { %v833_v52 = vpop.permute.xlu1 %832  ;;  %v828_v53 = vpop.permute.xlu0 %827 }
  0xdd   : > { %v843_v54 = vpop.permute.xlu1 %842  ;;  %v838_v55 = vpop.permute.xlu0 %837 }
  0xe1   : > { %v853_v56 = vpop.permute.xlu1 %852  ;;  %v848_v57 = vpop.permute.xlu0 %847 }
  0xe8   : > { %v1149_v58 = vpop.f32.mrb[0].mxu0  ;;  %v1167_v59 = vpop.f32.mrb[0].mxu1 }
  0xe9   : > { %v718_v60 = vmul.f32 %v1149_v58, %v605_v19  ;;  %v730_v61 = vmul.f32 %v1167_v59, %v665_v28  ;;  %v454_v62 = vpop.f32.mrb[1].mxu0  ;;  %v514_v63 = vpop.f32.mrb[1].mxu1 }
  0xea   : > { %v717_v0 = vmul.f32 %v600_v17, %v454_v62  ;;  %v729_v1 = vmul.f32 %v660_v29, %v514_v63  ;;  %v863_v28 = vpop.permute.xlu1 %862  ;;  %v858_v29 = vpop.permute.xlu0 %857 }
  0xeb   : > { %v886_v2 = vadd.f32 %v773_v40, %v718_v60  ;;  %v898_v3 = vadd.f32 %v833_v52, %v730_v61 }
  0xec   : > { %v885_v4 = vadd.f32 %v768_v41, %v717_v0  ;;  %v897_v5 = vadd.f32 %v828_v53, %v729_v1  ;;  %v1152_v6 = vpop.f32.mrb[2].mxu0  ;;  %v1170_v7 = vpop.f32.mrb[2].mxu1 }
  0xed   : > { %v910_v8 = vmax.f32 %v886_v2, 0.0  ;;  %v922_v9 = vmax.f32 %v898_v3, 0.0  ;;  %v720_v10 = vmul.f32 %v1152_v6, %v615_v18  ;;  %v732_v11 = vmul.f32 %v1170_v7, %v675_v30  ;;  %v464_v12 = vpop.f32.mrb[3].mxu0  ;;  %v524_v13 = vpop.f32.mrb[3].mxu1 }
  0xee   : > { %v909_v14 = vmax.f32 %v885_v4, 0.0  ;;  %v921_v15 = vmax.f32 %v897_v5, 0.0  ;;  %v719_v17 = vmul.f32 %v1427_v16, %v464_v12  ;;  %v731_v19 = vmul.f32 %v670_v31, %v524_v13  ;;  %v868_v7 = vpop.permute.xlu0 %867 }
  0xef   : > { %934 = vst [vmem:[%s1481_s19 + $0x8] sm:$0xff] %v910_v8  ;;  %946 = vst [vmem:[%s1481_s19 + $0x68] sm:$0xff] %v922_v9  ;;  %v888_v40 = vadd.f32 %v783_v42, %v720_v10  ;;  %v900_v41 = vadd.f32 %v843_v54, %v732_v11 }
  0xf0   : > { %933 = vst [vmem:[%s1481_s19] sm:$0xff] %v909_v14  ;;  %945 = vst [vmem:[%s1481_s19 + $0x60] sm:$0xff] %v921_v15  ;;  %v887_v52 = vadd.f32 %v778_v43, %v719_v17  ;;  %v899_v18 = vadd.f32 %v838_v55, %v731_v19  ;;  %v1155_v30 = vpop.f32.mrb[4].mxu0  ;;  %v1173_v53 = vpop.f32.mrb[4].mxu1 }
  0xf1   : > { %v912_v58 = vmax.f32 %v888_v40, 0.0  ;;  %v924_v59 = vmax.f32 %v900_v41, 0.0  ;;  %v722_v16 = vmul.f32 %v1155_v30, %v1429_v20  ;;  %v734_v31 = vmul.f32 %v1173_v53, %v1445_v32  ;;  %v474_v60 = vpop.f32.mrb[5].mxu0  ;;  %v534_v61 = vpop.f32.mrb[5].mxu1 }
  0xf2   : > { %v911_v42 = vmax.f32 %v887_v52, 0.0  ;;  %v923_v54 = vmax.f32 %v899_v18, 0.0  ;;  %v721_v62 = vmul.f32 %v1431_v21, %v474_v60  ;;  %v733_v63 = vmul.f32 %v1447_v33, %v534_v61 }
  0xf3   : > { %936 = vst [vmem:[%s1481_s19 + $0x18] sm:$0xff] %v912_v58  ;;  %948 = vst [vmem:[%s1481_s19 + $0x78] sm:$0xff] %v924_v59  ;;  %v890_v43 = vadd.f32 %v1461_v44, %v722_v16  ;;  %v902_v55 = vadd.f32 %v853_v56, %v734_v31  ;;  %v878_v31 = vpop.permute.xlu0 %877 }
  0xf4   : > { %935 = vst [vmem:[%s1481_s19 + $0x10] sm:$0xff] %v911_v42  ;;  %947 = vst [vmem:[%s1481_s19 + $0x70] sm:$0xff] %v923_v54  ;;  %v889_v0 = vadd.f32 %v1463_v45, %v721_v62  ;;  %v901_v20 = vadd.f32 %v848_v57, %v733_v63  ;;  %v1158_v32 = vpop.f32.mrb[6].mxu0  ;;  %v1176_v1 = vpop.f32.mrb[6].mxu1 }
  0xf5   : > { %v914_v2 = vmax.f32 %v890_v43, 0.0  ;;  %v926_v3 = vmax.f32 %v902_v55, 0.0  ;;  %v724_v21 = vmul.f32 %v1158_v32, %v1433_v22  ;;  %v736_v33 = vmul.f32 %v1176_v1, %v1449_v34  ;;  %v484_v4 = vpop.f32.mrb[7].mxu0  ;;  %v544_v44 = vpop.f32.mrb[7].mxu1 }
  0xf6   : > { %v913_v56 = vmax.f32 %v889_v0, 0.0  ;;  %v925_v5 = vmax.f32 %v901_v20, 0.0  ;;  %v723_v6 = vmul.f32 %v1435_v23, %v484_v4  ;;  %v735_v45 = vmul.f32 %v1451_v35, %v544_v44  ;;  %v873_v57 = vpop.permute.xlu1 %872 }
  0xf7   : > { %938 = vst [vmem:[%s1481_s19 + $0x28] sm:$0xff] %v914_v2  ;;  %950 = vst [vmem:[%s1481_s19 + $0x88] sm:$0xff] %v926_v3  ;;  %v892_v8 = vadd.f32 %v1465_v46, %v724_v21  ;;  %v904_v9 = vadd.f32 %v863_v28, %v736_v33 }
  0xf8   : > { %937 = vst [vmem:[%s1481_s19 + $0x20] sm:$0xff] %v913_v56  ;;  %949 = vst [vmem:[%s1481_s19 + $0x80] sm:$0xff] %v925_v5  ;;  %v891_v22 = vadd.f32 %v1467_v47, %v723_v6  ;;  %v903_v34 = vadd.f32 %v858_v29, %v735_v45  ;;  %v1161_v10 = vpop.f32.mrb[8].mxu0  ;;  %v1179_v11 = vpop.f32.mrb[8].mxu1 }
  0xf9   : > { %v916_v23 = vmax.f32 %v892_v8, 0.0  ;;  %v928_v35 = vmax.f32 %v904_v9, 0.0  ;;  %v726_v12 = vmul.f32 %v1161_v10, %v1437_v24  ;;  %v738_v13 = vmul.f32 %v1179_v11, %v1453_v36  ;;  %v494_v14 = vpop.f32.mrb[9].mxu0  ;;  %v554_v46 = vpop.f32.mrb[9].mxu1 }
  0xfa   : > { %v915_v15 = vmax.f32 %v891_v22, 0.0  ;;  %v927_v17 = vmax.f32 %v903_v34, 0.0  ;;  %v725_v19 = vmul.f32 %v1439_v25, %v494_v14  ;;  %v737_v28 = vmul.f32 %v1455_v37, %v554_v46  ;;  %v883_v53 = vpop.permute.xlu1 %882 }
  0xfb   : > { %940 = vst [vmem:[%s1481_s19 + $0x38] sm:$0xff] %v916_v23  ;;  %952 = vst [vmem:[%s1481_s19 + $0x98] sm:$0xff] %v928_v35  ;;  %v894_v47 = vadd.f32 %v1469_v48, %v726_v12  ;;  %v906_v29 = vadd.f32 %v873_v57, %v738_v13 }
  0xfc   : > { %939 = vst [vmem:[%s1481_s19 + $0x30] sm:$0xff] %v915_v15  ;;  %951 = vst [vmem:[%s1481_s19 + $0x90] sm:$0xff] %v927_v17  ;;  %v893_v40 = vadd.f32 %v1471_v49, %v725_v19  ;;  %v905_v24 = vadd.f32 %v868_v7, %v737_v28  ;;  %v1164_v36 = vpop.f32.mrb[10].mxu0  ;;  %v1182_v41 = vpop.f32.mrb[10].mxu1 }
  0xfd   : > { %v918_v52 = vmax.f32 %v894_v47, 0.0  ;;  %v930_v18 = vmax.f32 %v906_v29, 0.0  ;;  %v728_v25 = vmul.f32 %v1164_v36, %v1441_v26  ;;  %v740_v37 = vmul.f32 %v1182_v41, %v1457_v38  ;;  %v504_v30 = vpop.f32.mrb[11].mxu0  ;;  %v564_v48 = vpop.f32.mrb[11].mxu1 }
  0xfe   : > { %v917_v58 = vmax.f32 %v893_v40, 0.0  ;;  %v929_v59 = vmax.f32 %v905_v24, 0.0  ;;  %v727_v49 = vmul.f32 %v1443_v27, %v504_v30  ;;  %v739_v16 = vmul.f32 %v1459_v39, %v564_v48 }
  0xff   : > { %942 = vst [vmem:[%s1481_s19 + $0x48] sm:$0xff] %v918_v52  ;;  %954 = vst [vmem:[%s1481_s19 + $0xa8] sm:$0xff] %v930_v18  ;;  %v896_v26 = vadd.f32 %v1473_v50, %v728_v25  ;;  %v908_v60 = vadd.f32 %v883_v53, %v740_v37 }
 0x100   : > { %941 = vst [vmem:[%s1481_s19 + $0x40] sm:$0xff] %v917_v58  ;;  %953 = vst [vmem:[%s1481_s19 + $0xa0] sm:$0xff] %v929_v59  ;;  %v895_v38 = vadd.f32 %v1475_v51, %v727_v49  ;;  %v907_v61 = vadd.f32 %v878_v31, %v739_v16 }
 0x101   : > { %v920_v42 = vmax.f32 %v896_v26, 0.0  ;;  %v932_v54 = vmax.f32 %v908_v60, 0.0 }
 0x102   : > { %v919_v62 = vmax.f32 %v895_v38, 0.0  ;;  %v931_v27 = vmax.f32 %v907_v61, 0.0 }
 0x103   : > { %944 = vst [vmem:[%s1481_s19 + $0x58] sm:$0xff] %v920_v42  ;;  %956 = vst [vmem:[%s1481_s19 + $0xb8] sm:$0xff] %v932_v54 }
 0x104   : > { %943 = vst [vmem:[%s1481_s19 + $0x50] sm:$0xff] %v919_v62  ;;  %955 = vst [vmem:[%s1481_s19 + $0xb0] sm:$0xff] %v931_v27 }
 0x105 PF: > { %s14_s17 = sadd.s32 1, %s1246_s17   ;;  %s1546_s15 = smov %s1242_s16 }
 0x106   : > { %p11_p5 = scmp.ge.s32.totalorder %s14_s17, 4   ;;  %s1547_s16 = smov %s1549_s18 }
 0x108   :  { %13 = sbr.rel (!%p11_p5) target bundleno = 2 (0x2), region = 75 }

// kernel: inception_b_forward.9
= control target key start
LH: loop header
LB: loop body
LE: loop exit
PB: predicated region body
PF: predicated region fallthrough
CT: control target
= control target key end

     0   :  { %s586_s6 = smov 0   ;;  %s588_s7 = smov 0   ;;  %s785_s0 = inlined_call_operand.vmem [shape: f32[2,2,8,9,9], index: 0, kind: input, shape index: {}]   ;;  %s786_s1 = inlined_call_operand.vmem [shape: f32[8,8,8], index: 1, kind: output, shape index: {}]  }
   0x1   :  { %s590_s8 = smov 0  }
   0x2 LB: > { %s494_s9 = sadd.s32 4294967295, %s573_s8   ;;  %s603_s10 = sadd.s32 1, %s573_s8   ;;  %s573_s8 = sphi %s590_s8, %s789_s8   ;;  %s569_s7 = sphi %s588_s7, %s788_s7   ;;  %s565_s6 = sphi %s586_s6, %s787_s6  }
   0x3   : > { %s15_s11 = ssub.s32 %s573_s8, %s603_s10  ;;  %s18_s12 = sadd.s32 1, %s569_s7 }
   0x4   : > { %p16_p0 = scmp.eq.s32.totalorder %s15_s11, 0  ;;  %p25_p1 = scmp.ne.s32.totalorder %s569_s7, %s565_s6 }
   0x5   : > { %p26_p2 = scmp.eq.s32.totalorder %s573_s8, 0  ;;  %p497_p4 = scmp.ge.s32.totalorder %s573_s8, 2 }
   0x6   : > { %s612_s13 = scalar_select %p16_p0, %s569_s7, %s18_s12  }
   0x7   : > { %p27_p3 = por %p26_p2, %p25_p1  ;;  %77 = sbr.rel (%p497_p4) target bundleno = 34 (0x22), region = 16 }
   0xe   : > { %80 = sbr.rel (!%p27_p3) target bundleno = 34 (0x22), region = 20  ;;  %s82_s14 = sand.u32 (%p27_p3), 1, %s569_s7  }
   0xf   : > { %s525_s15 = sshll.u32 (%p27_p3), %s573_s8, 6  ;;  %s498_s16 = sshll.u32 (%p27_p3), %s82_s14, 8 }
  0x10   : > { %s620_s19 = scalar_lea.vmem (%p27_p3), %s785_s0, %s525_s15  ;;  %s625_s20 = scalar_lea.vmem (%p27_p3), [#allocation2], %s498_s16 }
  0x11   : > { %v178_v0 = vld [vmem:[%s620_s19] sm:$0xff] (%p27_p3)  ;;  %v180_v1 = vld [vmem:[%s620_s19 + $0x8] sm:$0xff] (%p27_p3)  ;;  %v182_v2 = vld [vmem:[%s620_s19 + $0x10] sm:$0xff] (%p27_p3) }
  0x12   : > { %179 = vst [vmem:[%s625_s20] sm:$0xff] (%p27_p3), %v178_v0  ;;  %181 = vst [vmem:[%s625_s20 + $0x8] sm:$0xff] (%p27_p3), %v180_v1  ;;  %v184_v3 = vld [vmem:[%s620_s19 + $0x18] sm:$0xff] (%p27_p3)  ;;  %v186_v4 = vld [vmem:[%s620_s19 + $0x20] sm:$0xff] (%p27_p3) }
  0x13   : > { %183 = vst [vmem:[%s625_s20 + $0x10] sm:$0xff] (%p27_p3), %v182_v2  ;;  %v188_v5 = vld [vmem:[%s620_s19 + $0x28] sm:$0xff] (%p27_p3)  ;;  %185 = vst [vmem:[%s625_s20 + $0x18] sm:$0xff] (%p27_p3), %v184_v3  ;;  %v190_v6 = vld [vmem:[%s620_s19 + $0x30] sm:$0xff] (%p27_p3) }
  0x14   : > { %187 = vst [vmem:[%s625_s20 + $0x20] sm:$0xff] (%p27_p3), %v186_v4  ;;  %189 = vst [vmem:[%s625_s20 + $0x28] sm:$0xff] (%p27_p3), %v188_v5  ;;  %v192_v7 = vld [vmem:[%s620_s19 + $0x38] sm:$0xff] (%p27_p3)  ;;  %v194_v8 = vld [vmem:[%s620_s19 + $0x80] sm:$0xff] (%p27_p3) }
  0x15   : > { %191 = vst [vmem:[%s625_s20 + $0x30] sm:$0xff] %v190_v6  ;;  %193 = vst [vmem:[%s625_s20 + $0x38] sm:$0xff] %v192_v7  ;;  %v196_v9 = vld [vmem:[%s620_s19 + $0x88] sm:$0xff]  ;;  %v198_v10 = vld [vmem:[%s620_s19 + $0x90] sm:$0xff] }
  0x16   : > { %195 = vst [vmem:[%s625_s20 + $0x40] sm:$0xff] %v194_v8  ;;  %v200_v11 = vld [vmem:[%s620_s19 + $0x98] sm:$0xff]  ;;  %197 = vst [vmem:[%s625_s20 + $0x48] sm:$0xff] %v196_v9  ;;  %v202_v12 = vld [vmem:[%s620_s19 + $0xa0] sm:$0xff] }
  0x17   : > { %199 = vst [vmem:[%s625_s20 + $0x50] sm:$0xff] %v198_v10  ;;  %201 = vst [vmem:[%s625_s20 + $0x58] sm:$0xff] %v200_v11  ;;  %v204_v13 = vld [vmem:[%s620_s19 + $0xa8] sm:$0xff]  ;;  %v206_v14 = vld [vmem:[%s620_s19 + $0xb0] sm:$0xff] }
  0x18   : > { %203 = vst [vmem:[%s625_s20 + $0x60] sm:$0xff] %v202_v12  ;;  %205 = vst [vmem:[%s625_s20 + $0x68] sm:$0xff] %v204_v13  ;;  %v208_v15 = vld [vmem:[%s620_s19 + $0xb8] sm:$0xff]  ;;  %v210_v16 = vld [vmem:[%s620_s19 + $0x100] sm:$0xff] }
  0x19   : > { %207 = vst [vmem:[%s625_s20 + $0x70] sm:$0xff] %v206_v14  ;;  %v212_v17 = vld [vmem:[%s620_s19 + $0x108] sm:$0xff]  ;;  %209 = vst [vmem:[%s625_s20 + $0x78] sm:$0xff] %v208_v15  ;;  %v214_v18 = vld [vmem:[%s620_s19 + $0x110] sm:$0xff] }
  0x1a   : > { %211 = vst [vmem:[%s625_s20 + $0x80] sm:$0xff] %v210_v16  ;;  %213 = vst [vmem:[%s625_s20 + $0x88] sm:$0xff] %v212_v17  ;;  %v216_v19 = vld [vmem:[%s620_s19 + $0x118] sm:$0xff]  ;;  %v218_v20 = vld [vmem:[%s620_s19 + $0x120] sm:$0xff] }
  0x1b   : > { %215 = vst [vmem:[%s625_s20 + $0x90] sm:$0xff] %v214_v18  ;;  %217 = vst [vmem:[%s625_s20 + $0x98] sm:$0xff] %v216_v19  ;;  %v220_v21 = vld [vmem:[%s620_s19 + $0x128] sm:$0xff]  ;;  %v222_v22 = vld [vmem:[%s620_s19 + $0x130] sm:$0xff] }
  0x1c   : > { %219 = vst [vmem:[%s625_s20 + $0xa0] sm:$0xff] %v218_v20  ;;  %v224_v23 = vld [vmem:[%s620_s19 + $0x138] sm:$0xff]  ;;  %221 = vst [vmem:[%s625_s20 + $0xa8] sm:$0xff] %v220_v21  ;;  %v226_v24 = vld [vmem:[%s620_s19 + $0x180] sm:$0xff] }
  0x1d   : > { %223 = vst [vmem:[%s625_s20 + $0xb0] sm:$0xff] %v222_v22  ;;  %225 = vst [vmem:[%s625_s20 + $0xb8] sm:$0xff] %v224_v23  ;;  %v228_v25 = vld [vmem:[%s620_s19 + $0x188] sm:$0xff]  ;;  %v230_v26 = vld [vmem:[%s620_s19 + $0x190] sm:$0xff] }
  0x1e   : > { %227 = vst [vmem:[%s625_s20 + $0xc0] sm:$0xff] %v226_v24  ;;  %229 = vst [vmem:[%s625_s20 + $0xc8] sm:$0xff] %v228_v25  ;;  %v232_v27 = vld [vmem:[%s620_s19 + $0x198] sm:$0xff]  ;;  %v234_v28 = vld [vmem:[%s620_s19 + $0x1a0] sm:$0xff] }
  0x1f   : > { %231 = vst [vmem:[%s625_s20 + $0xd0] sm:$0xff] %v230_v26  ;;  %v236_v29 = vld [vmem:[%s620_s19 + $0x1a8] sm:$0xff]  ;;  %233 = vst [vmem:[%s625_s20 + $0xd8] sm:$0xff] %v232_v27  ;;  %v238_v30 = vld [vmem:[%s620_s19 + $0x1b0] sm:$0xff] }
  0x20   : > { %235 = vst [vmem:[%s625_s20 + $0xe0] sm:$0xff] %v234_v28  ;;  %237 = vst [vmem:[%s625_s20 + $0xe8] sm:$0xff] %v236_v29  ;;  %v240_v31 = vld [vmem:[%s620_s19 + $0x1b8] sm:$0xff] }
  0x21   : > { %239 = vst [vmem:[%s625_s20 + $0xf0] sm:$0xff] %v238_v30  ;;  %241 = vst [vmem:[%s625_s20 + $0xf8] sm:$0xff] %v240_v31 }
  0x22 PF: > { %p502_p5 = scmp.ge.s32.totalorder %s573_s8, 1  ;;  %p246_p6 = scmp.lt.s32.totalorder %s573_s8, 3 }
  0x24   : > { %p247_p7 = pnand %p502_p5, %p246_p6 }
  0x25   : > { %s253_s21 = sand.u32 (!%p247_p7), 1, %s565_s6   ;;  %s575_s24 = smov (!%p247_p7), 127   ;;  %vm362_vm0 = vcmask (!%p247_p7), 1046528   ;;  %vm427_vm1 = vcmask (!%p247_p7), 64512  }
  0x26   : > { %250 = sbr.rel (%p247_p7) target bundleno = 180 (0xb4), region = 58  ;;  %s503_s22 = sshll.u32 (!%p247_p7), %s253_s21, 8 }
  0x27   : > { %s691_s23 = scalar_lea.vmem (!%p247_p7), [#allocation2], %s503_s22  ;;  %s504_s25 = sshll.u32 (!%p247_p7), %s494_s9, 2 }
  0x28   : > { %v694_v32 = vld [vmem:[%s691_s23 + $0x20] sm:$0xff] (!%p247_p7)  ;;  %v704_v34 = vld [vmem:[%s691_s23 + $0x30] sm:$0xff] (!%p247_p7)  ;;  %v282_v42 = vld [vmem:[%s691_s23 + $0x18] sm:$0x1] (!%p247_p7)  ;;  %p274_p8 = scmp.lt.s32.totalorder (!%p247_p7), %s504_s25, 7 }
  0x29   : > { %v697_v33 = vld [vmem:[%s691_s23] sm:$0xff] (!%p247_p7)  ;;  %318 = vrot.lane.b32.xlu1 (!%p247_p7), %v694_v32, %s575_s24  ;;  %v707_v35 = vld [vmem:[%s691_s23 + $0x10] sm:$0xff] (!%p247_p7)  ;;  %v280_v45 = vld [vmem:[%s691_s23 + $0x8] sm:$0x1] (!%p247_p7)  ;;  %v367_v63 = vrot.slane (!%p247_p7), %v282_v42, 1  ;;  %v369_v8 = vrot.slane (!%p247_p7), %v694_v32, 1 }
  0x2a   : > { %314 = vrot.lane.b32.xlu0 (!%p247_p7), %v697_v33, %s575_s24  ;;  %v710_v36 = vld [vmem:[%s691_s23 + $0x90] sm:$0xff] (!%p247_p7)  ;;  %v510_v37 = vld [vmem:[%s691_s23 + $0x60] sm:$0xff] (!%p247_p7)  ;;  %v509_v50 = vld [vmem:[%s691_s23 + $0x58] sm:$0x1] (!%p247_p7)  ;;  %v363_v56 = vrot.slane (!%p247_p7), %v697_v33, 1  ;;  %v366_v57 = vrot.slane (!%p247_p7), %v707_v35, 1 }
  0x2b   : > { %v308_v38 = vmax.f32 (!%p247_p7), %v694_v32, %v510_v37  ;;  %v506_v39 = vld [vmem:[%s691_s23 + $0x40] sm:$0xff] (!%p247_p7)  ;;  %v512_v40 = vld [vmem:[%s691_s23 + $0x70] sm:$0xff] (!%p247_p7)  ;;  %v397_v43 = vrot.slane (!%p247_p7), %v510_v37, 1  ;;  %v395_v53 = vrot.slane (!%p247_p7), %v509_v50, 1  ;;  %v507_v54 = vld [vmem:[%s691_s23 + $0x48] sm:$0x1] (!%p247_p7) }
  0x2c   : > { %v514_v41 = vld [vmem:[%s691_s23 + $0x80] sm:$0xff] (!%p247_p7)  ;;  %v508_v44 = vld [vmem:[%s691_s23 + $0x50] sm:$0xff] (!%p247_p7)  ;;  %v391_v46 = vrot.slane (!%p247_p7), %v506_v39, 1  ;;  %v306_v47 = vmax.f32 (!%p247_p7), %v697_v33, %v506_v39  ;;  %v309_v48 = vmax.f32 (!%p247_p7), %v704_v34, %v512_v40  ;;  %v400_v49 = vrot.slane (!%p247_p7), %v512_v40, 1  ;;  %v513_v55 = vld [vmem:[%s691_s23 + $0x78] sm:$0x1] (!%p247_p7) }
  0x2d   : > { %320 = vrot.lane.b32.xlu1 %v704_v34, %s575_s24  ;;  %v307_v51 = vmax.f32 %v707_v35, %v508_v44  ;;  %v394_v52 = vrot.slane %v508_v44, 1  ;;  %v392_v58 = vrot.slane %v507_v54, 1  ;;  %v401_v59 = vrot.slane %v513_v55, 1  ;;  %v511_v60 = vld [vmem:[%s691_s23 + $0x68] sm:$0x1]  ;;  %v517_v61 = vld [vmem:[%s691_s23 + $0xb0] sm:$0xff] }
  0x2e   : > { %316 = vrot.lane.b32.xlu0 %v707_v35, %s575_s24  ;;  %v516_v62 = vld [vmem:[%s691_s23 + $0xa0] sm:$0xff]  ;;  %v364_v0 = vrot.slane %v280_v45, 1  ;;  %v398_v2 = vrot.slane %v511_v60, 1  ;;  %v286_v3 = vld [vmem:[%s691_s23 + $0x38] sm:$0x1]  ;;  %v372_v9 = vrot.slane %v704_v34, 1  ;;  %v368_v10 = vsel %vm362_vm0, %v366_v57, %v367_v63 }
  0x2f   : > { %v739_v1 = vsel %vm362_vm0, %v394_v52, %v395_v53  ;;  %v284_v4 = vld [vmem:[%s691_s23 + $0x28] sm:$0x1]  ;;  %v393_v5 = vsel %vm362_vm0, %v391_v46, %v392_v58  ;;  %v745_v6 = vsel %vm362_vm0, %v400_v49, %v401_v59  ;;  %v373_v12 = vrot.slane %v286_v3, 1  ;;  %v518_v20 = vld [vmem:[%s691_s23 + $0xc0] sm:$0xff]  ;;  %v519_v30 = vld [vmem:[%s691_s23 + $0xd0] sm:$0xff]  ;;  %s791_s25 = smov (!%p274_p8, %s504_s25), 7 }
  0x30   : > { %v748_v7 = vsel %vm362_vm0, %v397_v43, %v398_v2  ;;  %v365_v11 = vsel %vm362_vm0, %v363_v56, %v364_v0  ;;  %v370_v13 = vrot.slane %v284_v4, 1  ;;  %v520_v21 = vld [vmem:[%s691_s23 + $0xe0] sm:$0xff]  ;;  %v521_v31 = vld [vmem:[%s691_s23 + $0xf0] sm:$0xff]  ;;  %s505_s26 = sshll.u32 %s791_s25, 3 }
  0x31   : > { %344 = vrot.lane.b32.xlu1 %v710_v36, %s575_s24  ;;  %v374_v14 = vsel %vm362_vm0, %v372_v9, %v373_v12  ;;  %s277_s29 = scalar_lea.vmem %s786_s1, %s505_s26 }
  0x32   : > { %342 = vrot.lane.b32.xlu0 %v514_v41, %s575_s24  ;;  %v371_v15 = vsel %vm362_vm0, %v369_v8, %v370_v13 }
  0x35   : > { %348 = vrot.lane.b32.xlu1 %v517_v61, %s575_s24 }
  0x36   : > { %346 = vrot.lane.b32.xlu0 %v516_v62, %s575_s24 }
  0x39   : > { %413 = vrot.lane.b32.xlu1 %v368_v10, %s575_s24 }
  0x3a   : > { %411 = vrot.lane.b32.xlu0 %v365_v11, %s575_s24 }
  0x3d   : > { %417 = vrot.lane.b32.xlu1 %v374_v14, %s575_s24 }
  0x3e   : > { %415 = vrot.lane.b32.xlu0 %v371_v15, %s575_s24 }
  0x9b   : > { %v319_v16 = vpop.permute.xlu1 %318 }
  0x9c   : > { %v315_v17 = vpop.permute.xlu0 %314  ;;  %v328_v18 = vmax.f32 %v308_v38, %v319_v16 }
  0x9d   : > { %v326_v19 = vmax.f32 %v306_v47, %v315_v17 }
  0x9e   : > { %v332_v22 = vmax.f32 %v328_v18, %v516_v62 }
  0x9f   : > { %v330_v23 = vmax.f32 %v326_v19, %v514_v41  ;;  %v321_v24 = vpop.permute.xlu1 %320 }
  0xa0   : > { %v317_v25 = vpop.permute.xlu0 %316  ;;  %v329_v26 = vmax.f32 %v309_v48, %v321_v24  ;;  %v336_v29 = vmax.f32 %v332_v22, %v520_v21 }
  0xa1   : > { %v327_v27 = vmax.f32 %v307_v51, %v317_v25  ;;  %v334_v28 = vmax.f32 %v330_v23, %v518_v20 }
  0xa2   : > { %v333_v32 = vmax.f32 %v329_v26, %v517_v61 }
  0xa3   : > { %v331_v33 = vmax.f32 %v327_v27, %v710_v36  ;;  %v345_v34 = vpop.permute.xlu1 %344 }
  0xa4   : > { %v343_v35 = vpop.permute.xlu0 %342  ;;  %v337_v39 = vmax.f32 %v333_v32, %v521_v31 }
  0xa5   : > { %v335_v37 = vmax.f32 %v331_v33, %v519_v30  ;;  %v354_v38 = vmax.f32 %v334_v28, %v343_v35 }
  0xa7   : > { %v355_v40 = vmax.f32 %v335_v37, %v345_v34  ;;  %v379_v41 = vmax.f32 %v354_v38, %v365_v11  ;;  %v349_v42 = vpop.permute.xlu1 %348 }
  0xa8   : > { %v347_v43 = vpop.permute.xlu0 %346  ;;  %v357_v45 = vmax.f32 %v337_v39, %v349_v42 }
  0xa9   : > { %v380_v44 = vmax.f32 %v355_v40, %v368_v10  ;;  %v356_v46 = vmax.f32 %v336_v29, %v347_v43  ;;  %v407_v47 = vmax.f32 %v379_v41, %v393_v5 }
  0xaa   : > { %v382_v48 = vmax.f32 %v357_v45, %v374_v14 }
  0xab   : > { %v381_v49 = vmax.f32 %v356_v46, %v371_v15  ;;  %v408_v50 = vmax.f32 %v380_v44, %v739_v1  ;;  %v414_v36 = vpop.permute.xlu1 %413 }
  0xac   : > { %v412_v51 = vpop.permute.xlu0 %411  ;;  %v410_v54 = vmax.f32 %v382_v48, %v745_v6 }
  0xad   : > { %v424_v52 = vmax.f32 %v408_v50, %v414_v36  ;;  %v423_v53 = vmax.f32 %v407_v47, %v412_v51  ;;  %v409_v55 = vmax.f32 %v381_v49, %v748_v7 }
  0xaf   : > { %428 = vst.msk [vmem:[%s277_s29] sm:$0xff] %vm427_vm1, %v423_v53  ;;  %429 = vst.msk [vmem:[%s277_s29 + $0x8] sm:$0xff] %vm427_vm1, %v424_v52  ;;  %v418_v56 = vpop.permute.xlu1 %417 }
  0xb0   : > { %v416_v57 = vpop.permute.xlu0 %415  ;;  %v426_v58 = vmax.f32 %v410_v54, %v418_v56 }
  0xb1   : > { %v425_v59 = vmax.f32 %v409_v55, %v416_v57 }
  0xb2   : > { %431 = vst.msk [vmem:[%s277_s29 + $0x18] sm:$0xff] %vm427_vm1, %v426_v58 }
  0xb3   : > { %430 = vst.msk [vmem:[%s277_s29 + $0x10] sm:$0xff] %vm427_vm1, %v425_v59 }
  0xb4 PF: > { %p8_p9 = scmp.ge.s32.totalorder %s603_s10, 4   ;;  %s787_s6 = smov %s569_s7 }
  0xb5   : > { %s788_s7 = smov %s612_s13  ;;  %s789_s8 = smov %s603_s10 }
  0xb6   :  { %10 = sbr.rel (!%p8_p9) target bundleno = 2 (0x2), region = 100 }

</bundles_post_ra>
